<compile_context>
chip_gen: v7x
topology: tpu7x:2x2x1
jax: 0.10.0
libtpu: 0.0.40
codegen_flags: <defaults>
</compile_context>

<pallas_src>
import functools
import math

import jax
import jax.numpy as jnp
import numpy as np
from jax.experimental import pallas as pl
from jax.experimental.pallas import tpu as pltpu

_MIN_BIN_WIDTH = 1e-3
_MIN_BIN_HEIGHT = 1e-3
_MIN_DERIVATIVE = 1e-3
_LN_EPS = 1e-5
_PREC = jax.lax.Precision.HIGHEST  # reference only


def _erf(z):
    # Abramowitz & Stegun 7.1.26 (|err| < 1.5e-7); uses only exp/abs/where so it
    # lowers on all TPU generations.  PyTorch F.gelu uses the exact erf form.
    a1, a2, a3, a4, a5 = 0.254829592, -0.284496736, 1.421413741, -1.453152027, 1.061405429
    p = 0.3275911
    za = jnp.abs(z)
    t = 1.0 / (1.0 + p * za)
    poly = ((((a5 * t + a4) * t + a3) * t + a2) * t + a1) * t
    y = 1.0 - poly * jnp.exp(-za * za)
    return jnp.where(z >= 0, y, -y)


def _gelu(z):
    return 0.5 * z * (1.0 + _erf(z * (1.0 / math.sqrt(2.0))))


def _softplus(z):
    return jnp.maximum(z, 0.0) + jnp.log(1.0 + jnp.exp(-jnp.abs(z)))


def _conv_flow_kernel(x_ref, mask_ref, pre_w_ref, pre_b_ref, dw_w_ref, dw_b_ref,
                      g1_ref, b1_ref, pw_w_ref, pw_b_ref, g2_ref, b2_ref,
                      proj_w_ref, proj_b_ref, tri_ref, xo_ref, lad_ref, *,
                      half, filter_channels, kernel_size, n_layers,
                      num_bins, tail_bound):
    F = filter_channels
    nb = num_bins
    tb = tail_bound
    T = x_ref.shape[-1]

    x = x_ref[0]                        # (C, T)  channel-first, T on lanes
    mask = mask_ref[0]                  # (1, T)
    x0 = x[:half, :]
    x1 = x[half:, :]

    lane = jax.lax.broadcasted_iota(jnp.int32, (1, T), 1)
    mask_f = jnp.broadcast_to(mask, (F, T))   # hoisted once, reused every layer

    def shift_lanes(a, s):
        # z[:, t] = a[:, t + s] for valid t, 0 outside (zero-padded conv tap).
        if s == 0:
            return a
        r = pltpu.roll(a, shift=(-s) % T, axis=1)
        if s > 0:
            return jnp.where(lane < T - s, r, 0.0)
        return jnp.where(lane >= -s, r, 0.0)

    def depthwise_conv(h, w, b, dilation):
        # h: (F, T), w: (F, K), b: (F, 1).  Taps are lane shifts, weights are
        # per-channel (sublane) scalars broadcast along lanes -- pure VPU work,
        # no concat padding and no sublane-crossing copies.
        acc = jnp.broadcast_to(b, (F, T))
        center = (kernel_size - 1) // 2
        for k in range(kernel_size):
            acc = acc + w[:, k:k + 1] * shift_lanes(h, (k - center) * dilation)
        return acc

    def layer_norm(h, g, b):
        # LayerNorm over the channel (sublane) axis, one pass (sum + sum-of-squares).
        s1 = jnp.sum(h, axis=0, keepdims=True)
        s2 = jnp.sum(h * h, axis=0, keepdims=True)
        mu = s1 * (1.0 / F)
        var = s2 * (1.0 / F) - mu * mu
        return (h - mu) * jax.lax.rsqrt(var + _LN_EPS) * g + b

    # pre 1x1 conv (half -> F): tiny contraction -> VPU broadcast-FMA.
    pre_w = pre_w_ref[...]
    h = jnp.broadcast_to(pre_b_ref[...], (F, T))
    for c in range(half):
        h = h + pre_w[:, c:c + 1] * x0[c:c + 1, :]
    # TODO(synk): optional conditioning input g (x = x + g) not supported (g=None path).

    # DDSConv (p_dropout = 0.0 -> dropout is identity).
    for i in range(n_layers):
        dilation = kernel_size ** i
        y = depthwise_conv(h * mask_f, dw_w_ref[i], dw_b_ref[i], dilation)
        y = layer_norm(y, g1_ref[i], b1_ref[i])
        y = _gelu(y)
        y = jnp.dot(pw_w_ref[i], y, preferred_element_type=jnp.float32) + pw_b_ref[i]
        y = layer_norm(y, g2_ref[i], b2_ref[i])
        y = _gelu(y)
        h = h + y
    h = h * mask_f

    # projection to spline parameters: (half*(3*nb-1), T), masked.
    hp = jnp.dot(proj_w_ref[...], h, preferred_element_type=jnp.float32) + proj_b_ref[...]
    hp = hp * mask

    # piecewise rational-quadratic spline with linear tails, forward direction.
    tri = tri_ref[...]                                        # (nb+1, nb) cumsum matrix
    bin_rows = jax.lax.broadcasted_iota(jnp.int32, (nb + 1, T), 0)
    inv_sqrt_f = 1.0 / math.sqrt(F)
    ones_row = jnp.ones((1, T), jnp.float32)

    def softmax_bins(u):
        m = jnp.max(u, axis=0, keepdims=True)
        e = jnp.exp(u - m)
        return e / jnp.sum(e, axis=0, keepdims=True)

    def knots(u, min_size):
        # softmax over bins -> cumulative knots in [-tb, tb], ends clamped.
        v = min_size + (1.0 - min_size * nb) * softmax_bins(u)
        c = jnp.dot(tri, v, preferred_element_type=jnp.float32)   # (nb+1, T)
        c = (2.0 * tb) * c - tb
        return jnp.where(bin_rows == 0, -tb, jnp.where(bin_rows == nb, tb, c))

    def spline(xc, uw, uh, ud):
        # xc: (1, T); uw, uh: (nb, T); ud: (nb-1, T).  Bins live on sublanes.
        inside = jnp.logical_and(xc >= -tb, xc <= tb)
        xcl = jnp.clip(xc, -tb, tb)

        cw = knots(uw, _MIN_BIN_WIDTH)                           # cumulative widths
        ch = knots(uh, _MIN_BIN_HEIGHT)                          # cumulative heights

        # linear-tail padded derivatives: both ends are exactly 1.0.
        der = jnp.concatenate(
            [ones_row, _MIN_DERIVATIVE + _softplus(ud), ones_row], axis=0)  # (nb+1, T)

        # searchsorted(cumwidths with last += 1e-6) as a sublane count.
        bl = jnp.where(bin_rows == nb, tb + 1e-6, cw)
        cnt = jnp.sum((xcl >= bl).astype(jnp.float32), axis=0, keepdims=True)
        bidx = jnp.clip(cnt - 1.0, 0.0, float(nb - 1)).astype(jnp.int32)    # (1, T)

        oh = (bin_rows == bidx).astype(jnp.float32)
        oh1 = (bin_rows == bidx + 1).astype(jnp.float32)

        def gather(a, onehot):
            return jnp.sum(a * onehot, axis=0, keepdims=True)

        # Gather the two surrounding knots and derive width/height/slope from
        # them -- avoids materializing full (nb, T) width/height/slope arrays.
        icw = gather(cw, oh)
        icw1 = gather(cw, oh1)
        ich = gather(ch, oh)
        ich1 = gather(ch, oh1)
        ider = gather(der, oh)
        ider1 = gather(der, oh1)

        ibw = icw1 - icw
        ihei = ich1 - ich
        inv_ibw = 1.0 / ibw
        idel = ihei * inv_ibw

        theta = (xcl - icw) * inv_ibw
        tomt = theta * (1.0 - theta)
        num = ihei * (idel * theta * theta + ider * tomt)
        den = idel + (ider + ider1 - 2.0 * idel) * tomt
        y = ich + num / den
        dnum = (idel * idel) * (ider1 * theta * theta + 2.0 * idel * tomt
                                + ider * (1.0 - theta) * (1.0 - theta))
        lad = jnp.log(dnum) - 2.0 * jnp.log(den)

        y = jnp.where(inside, y, xc)
        lad = jnp.where(inside, lad, 0.0)
        return y, lad

    ys, lads = [], []
    p_per = 3 * nb - 1
    for c in range(half):                                   # static unroll, half is tiny
        base = c * p_per
        uw = hp[base:base + nb, :] * inv_sqrt_f
        uh = hp[base + nb:base + 2 * nb, :] * inv_sqrt_f
        ud = hp[base + 2 * nb:base + p_per, :]
        y_c, lad_c = spline(x1[c:c + 1, :], uw, uh, ud)
        ys.append(y_c)
        lads.append(lad_c)

    x1_new = jnp.concatenate(ys, axis=0)                    # (half, T)
    lad = jnp.concatenate(lads, axis=0)                     # (half, T)

    xo_ref[0] = (jnp.concatenate([x0, x1_new], axis=0) * mask).astype(xo_ref.dtype)
    lad_ref[0] = (lad * mask).astype(lad_ref.dtype)
    # TODO(synk): reverse=True (inverse spline) path not implemented.


def conv_flow(x, x_mask, params, *, kernel_size, n_layers, num_bins, tail_bound):
    """x: (B, C, T) f32;  x_mask: (B, 1, T) f32.  Returns ((B, C, T), (B,))."""
    B, C, T = x.shape
    half = C // 2
    F = params["pre_w"].shape[0]
    P = params["proj_w"].shape[0]
    nb = num_bins

    # (nb+1, nb) lower-triangular cumsum matrix (first row zero), passed as input.
    tri = jnp.asarray(np.concatenate(
        [np.zeros((1, nb), np.float32), np.tril(np.ones((nb, nb), np.float32))], axis=0))

    kernel = functools.partial(_conv_flow_kernel, half=half, filter_channels=F,
                               kernel_size=kernel_size, n_layers=n_layers,
                               num_bins=nb, tail_bound=tail_bound)

    def _const_spec(a):
        zeros = (0,) * a.ndim
        return pl.BlockSpec(a.shape, lambda b, _z=zeros: _z)

    weights = (params["pre_w"], params["pre_b"], params["dw_w"], params["dw_b"],
               params["g1"], params["b1"], params["pw_w"], params["pw_b"],
               params["g2"], params["b2"], params["proj_w"], params["proj_b"], tri)

    flops = int(2 * B * T * (half * F + n_layers * (kernel_size * F + F * F) + F * P)
                + B * T * half * 40 * nb)
    transcendentals = int(B * T * (2 * n_layers * F + half * (3 * nb + 2)))
    bytes_accessed = int(4 * (x.size + x_mask.size + B * C * T + B * half * T
                              + sum(int(w.size) for w in weights)))

    out_x, lad = pl.pallas_call(
        kernel,
        out_shape=(jax.ShapeDtypeStruct((B, C, T), jnp.float32),
                   jax.ShapeDtypeStruct((B, half, T), jnp.float32)),
        grid_spec=pltpu.PrefetchScalarGridSpec(
            num_scalar_prefetch=0,
            grid=(B,),
            in_specs=[pl.BlockSpec((1, C, T), lambda b: (b, 0, 0)),
                      pl.BlockSpec((1, 1, T), lambda b: (b, 0, 0))]
                     + [_const_spec(w) for w in weights],
            out_specs=[pl.BlockSpec((1, C, T), lambda b: (b, 0, 0)),
                       pl.BlockSpec((1, half, T), lambda b: (b, 0, 0))]),
        compiler_params=pltpu.CompilerParams(
            dimension_semantics=("parallel",),
            vmem_limit_bytes=32 * 1024 * 1024),
        cost_estimate=pl.CostEstimate(flops=flops, transcendentals=transcendentals,
                                      bytes_accessed=bytes_accessed),
    )(x, x_mask, *weights)

    logdet = jnp.sum(lad, axis=(1, 2))
    return out_x, logdet


# ------------------------- pure-JAX reference -------------------------------

def _reference_spline(inputs, uw, uh, ud, tail_bound):
    nb = uw.shape[-1]
    tb = tail_bound
    inside = (inputs >= -tb) & (inputs <= tb)

    constant = math.log(math.exp(1.0 - _MIN_DERIVATIVE) - 1.0)
    ud = jnp.pad(ud, [(0, 0)] * (ud.ndim - 1) + [(1, 1)], constant_values=constant)

    def cum(v, min_size):
        v = jax.nn.softmax(v, axis=-1)
        v = min_size + (1.0 - min_size * nb) * v
        cv = jnp.cumsum(v, axis=-1)
        cv = jnp.pad(cv, [(0, 0)] * (cv.ndim - 1) + [(1, 0)])
        cv = (2.0 * tb) * cv - tb
        cv = cv.at[..., 0].set(-tb).at[..., -1].set(tb)
        return cv[..., 1:] - cv[..., :-1], cv

    widths, cumwidths = cum(uw, _MIN_BIN_WIDTH)
    heights, cumheights = cum(uh, _MIN_BIN_HEIGHT)
    derivatives = _MIN_DERIVATIVE + jax.nn.softplus(ud)

    x = jnp.clip(inputs, -tb, tb)
    bin_loc = cumwidths.at[..., -1].add(1e-6)
    bidx = jnp.sum((x[..., None] >= bin_loc).astype(jnp.int32), axis=-1) - 1
    bidx = jnp.clip(bidx, 0, nb - 1)

    def take(a):
        return jnp.take_along_axis(a, bidx[..., None], axis=-1)[..., 0]

    icw, ibw = take(cumwidths), take(widths)
    ich, ihei = take(cumheights), take(heights)
    idel = take(heights / widths)
    ider = take(derivatives)
    ider1 = take(derivatives[..., 1:])

    theta = (x - icw) / ibw
    tomt = theta * (1.0 - theta)
    num = ihei * (idel * theta ** 2 + ider * tomt)
    den = idel + (ider + ider1 - 2.0 * idel) * tomt
    y = ich + num / den
    dnum = idel ** 2 * (ider1 * theta ** 2 + 2.0 * idel * tomt + ider * (1.0 - theta) ** 2)
    lad = jnp.log(dnum) - 2.0 * jnp.log(den)

    y = jnp.where(inside, y, inputs)
    lad = jnp.where(inside, lad, 0.0)
    return y, lad


def _reference_conv_flow(x, x_mask, params, *, kernel_size, n_layers, num_bins, tail_bound):
    B, C, T = x.shape
    half = C // 2
    F = params["pre_w"].shape[0]
    x0, x1 = x[:, :half, :], x[:, half:, :]

    def conv1x1(h, w, b):
        return jnp.einsum("oi,bit->bot", w, h, precision=_PREC) + b[None]

    def layer_norm(h, g, b):
        mu = jnp.mean(h, axis=1, keepdims=True)
        var = jnp.mean((h - mu) ** 2, axis=1, keepdims=True)
        return (h - mu) / jnp.sqrt(var + _LN_EPS) * g[None] + b[None]

    h = conv1x1(x0, params["pre_w"], params["pre_b"])
    for i in range(n_layers):
        dilation = kernel_size ** i
        pad = (kernel_size * dilation - dilation) // 2
        y = jax.lax.conv_general_dilated(
            h * x_mask, params["dw_w"][i][:, None, :],
            window_strides=(1,), padding=[(pad, pad)], rhs_dilation=(dilation,),
            dimension_numbers=("NCH", "OIH", "NCH"),
            feature_group_count=F, precision=_PREC) + params["dw_b"][i][None]
        y = layer_norm(y, params["g1"][i], params["b1"][i])
        y = jax.nn.gelu(y, approximate=False)
        y = conv1x1(y, params["pw_w"][i], params["pw_b"][i])
        y = layer_norm(y, params["g2"][i], params["b2"][i])
        y = jax.nn.gelu(y, approximate=False)
        h = h + y
    h = h * x_mask
    hp = conv1x1(h, params["proj_w"], params["proj_b"]) * x_mask

    nb = num_bins
    hr = hp.reshape(B, half, 3 * nb - 1, T).transpose(0, 1, 3, 2)   # (B, half, T, 3nb-1)
    uw = hr[..., :nb] / math.sqrt(F)
    uh = hr[..., nb:2 * nb] / math.sqrt(F)
    ud = hr[..., 2 * nb:]

    x1n, lad = _reference_spline(x1, uw, uh, ud, tail_bound)
    out = jnp.concatenate([x0, x1n], axis=1) * x_mask
    logdet = jnp.sum(lad * x_mask, axis=(1, 2))
    return out, logdet


if __name__ == "__main__":
    B, T = 2, 128
    in_channels, filter_channels = 4, 32
    kernel_size, n_layers = 3, 3
    num_bins, tail_bound = 10, 5.0
    half = in_channels // 2
    P = half * (3 * num_bins - 1)

    key = jax.random.PRNGKey(0)
    ks = jax.random.split(key, 16)

    def rnd(k, shape, scale=0.1):
        return scale * jax.random.normal(k, shape, jnp.float32)

    params = dict(
        pre_w=rnd(ks[0], (filter_channels, half), 0.3),
        pre_b=rnd(ks[1], (filter_channels, 1)),
        dw_w=rnd(ks[2], (n_layers, filter_channels, kernel_size), 0.3),
        dw_b=rnd(ks[3], (n_layers, filter_channels, 1)),
        g1=1.0 + rnd(ks[4], (n_layers, filter_channels, 1), 0.05),
        b1=rnd(ks[5], (n_layers, filter_channels, 1), 0.05),
        pw_w=rnd(ks[6], (n_layers, filter_channels, filter_channels), 0.2),
        pw_b=rnd(ks[7], (n_layers, filter_channels, 1)),
        g2=1.0 + rnd(ks[8], (n_layers, filter_channels, 1), 0.05),
        b2=rnd(ks[9], (n_layers, filter_channels, 1), 0.05),
        # PyTorch zero-inits `proj`; small random values exercise the spline path.
        proj_w=rnd(ks[10], (P, filter_channels), 0.2),
        proj_b=rnd(ks[11], (P, 1), 0.1),
    )

    x = jax.random.normal(ks[12], (B, in_channels, T), jnp.float32)
    lengths = jnp.array([T, T - 37], jnp.int32)
    x_mask = (jnp.arange(T)[None, None, :] < lengths[:, None, None]).astype(jnp.float32)

    out, logdet = conv_flow(x, x_mask, params, kernel_size=kernel_size,
                            n_layers=n_layers, num_bins=num_bins, tail_bound=tail_bound)
    out, logdet = jax.block_until_ready((out, logdet))

    ref_out, ref_logdet = _reference_conv_flow(
        x, x_mask, params, kernel_size=kernel_size, n_layers=n_layers,
        num_bins=num_bins, tail_bound=tail_bound)

    assert out.shape == (B, in_channels, T) and logdet.shape == (B,)
    assert jnp.allclose(out, ref_out, atol=1e-2, rtol=1e-2), \
        float(jnp.max(jnp.abs(out - ref_out)))
    assert jnp.allclose(logdet, ref_logdet, atol=1e-1, rtol=1e-2), \
        float(jnp.max(jnp.abs(logdet - ref_logdet)))

    print("KERNEL_OK")
</pallas_src>

<mosaic_0001>
module attributes {stable_mosaic.version = 11 : i64} {
  func.func @_conv_flow_kernel(%arg0: i32, %arg1: memref<1x4x128xf32, #tpu.memory_space<vmem>>, %arg2: memref<1x1x128xf32, #tpu.memory_space<vmem>>, %arg3: memref<32x2xf32, #tpu.memory_space<vmem>>, %arg4: memref<32x1xf32, #tpu.memory_space<vmem>>, %arg5: memref<3x32x3xf32, #tpu.memory_space<vmem>>, %arg6: memref<3x32x1xf32, #tpu.memory_space<vmem>>, %arg7: memref<3x32x1xf32, #tpu.memory_space<vmem>>, %arg8: memref<3x32x1xf32, #tpu.memory_space<vmem>>, %arg9: memref<3x32x32xf32, #tpu.memory_space<vmem>>, %arg10: memref<3x32x1xf32, #tpu.memory_space<vmem>>, %arg11: memref<3x32x1xf32, #tpu.memory_space<vmem>>, %arg12: memref<3x32x1xf32, #tpu.memory_space<vmem>>, %arg13: memref<58x32xf32, #tpu.memory_space<vmem>>, %arg14: memref<58x1xf32, #tpu.memory_space<vmem>>, %arg15: memref<11x10xf32, #tpu.memory_space<vmem>>, %arg16: memref<1x4x128xf32, #tpu.memory_space<vmem>>, %arg17: memref<1x2x128xf32, #tpu.memory_space<vmem>>) attributes {dimension_semantics = [#tpu.dimension_semantics<parallel>], iteration_bounds = array<i64: 2>, scalar_prefetch = 0 : i64, scratch_operands = 0 : i64, tpu.core_type = #tpu.core_type<tc>, window_params = [{transform_indices = @transform_0, window_bounds = array<i64: 1, 4, 128>}, {transform_indices = @transform_1, window_bounds = array<i64: 1, 1, 128>}, {pipeline_mode = #tpu.pipeline_mode<synchronous>, transform_indices = @transform_2, window_bounds = array<i64: 32, 2>}, {pipeline_mode = #tpu.pipeline_mode<synchronous>, transform_indices = @transform_3, window_bounds = array<i64: 32, 1>}, {pipeline_mode = #tpu.pipeline_mode<synchronous>, transform_indices = @transform_4, window_bounds = array<i64: 3, 32, 3>}, {pipeline_mode = #tpu.pipeline_mode<synchronous>, transform_indices = @transform_5, window_bounds = array<i64: 3, 32, 1>}, {pipeline_mode = #tpu.pipeline_mode<synchronous>, transform_indices = @transform_6, window_bounds = array<i64: 3, 32, 1>}, {pipeline_mode = #tpu.pipeline_mode<synchronous>, transform_indices = @transform_7, window_bounds = array<i64: 3, 32, 1>}, {pipeline_mode = #tpu.pipeline_mode<synchronous>, transform_indices = @transform_8, window_bounds = array<i64: 3, 32, 32>}, {pipeline_mode = #tpu.pipeline_mode<synchronous>, transform_indices = @transform_9, window_bounds = array<i64: 3, 32, 1>}, {pipeline_mode = #tpu.pipeline_mode<synchronous>, transform_indices = @transform_10, window_bounds = array<i64: 3, 32, 1>}, {pipeline_mode = #tpu.pipeline_mode<synchronous>, transform_indices = @transform_11, window_bounds = array<i64: 3, 32, 1>}, {pipeline_mode = #tpu.pipeline_mode<synchronous>, transform_indices = @transform_12, window_bounds = array<i64: 58, 32>}, {pipeline_mode = #tpu.pipeline_mode<synchronous>, transform_indices = @transform_13, window_bounds = array<i64: 58, 1>}, {pipeline_mode = #tpu.pipeline_mode<synchronous>, transform_indices = @transform_14, window_bounds = array<i64: 11, 10>}, {transform_indices = @transform_15, window_bounds = array<i64: 1, 4, 128>}, {transform_indices = @transform_16, window_bounds = array<i64: 1, 2, 128>}]} {
    %c0 = arith.constant 0 : index
    %c0_0 = arith.constant 0 : index
    %c0_1 = arith.constant 0 : index
    %0 = vector.load %arg1[%c0, %c0_0, %c0_1] : memref<1x4x128xf32, #tpu.memory_space<vmem>>, vector<1x4x128xf32>
    %1 = vector.shape_cast %0 : vector<1x4x128xf32> to vector<4x128xf32>
    %c0_2 = arith.constant 0 : index
    %c0_3 = arith.constant 0 : index
    %c0_4 = arith.constant 0 : index
    %2 = vector.load %arg2[%c0_2, %c0_3, %c0_4] : memref<1x1x128xf32, #tpu.memory_space<vmem>>, vector<1x1x128xf32>
    %3 = vector.shape_cast %2 : vector<1x1x128xf32> to vector<1x128xf32>
    %4 = vector.extract_strided_slice %1 {offsets = [0, 0], sizes = [2, 128], strides = [1, 1]} : vector<4x128xf32> to vector<2x128xf32>
    %5 = vector.extract_strided_slice %1 {offsets = [2, 0], sizes = [2, 128], strides = [1, 1]} : vector<4x128xf32> to vector<2x128xf32>
    %6 = tpu.iota {dimensions = array<i32: 1>} : vector<1x128xi32>
    %7 = vector.shape_cast %3 : vector<1x128xf32> to vector<1x128xf32>
    %8 = vector.broadcast %7 : vector<1x128xf32> to vector<32x128xf32>
    %c0_5 = arith.constant 0 : index
    %c0_6 = arith.constant 0 : index
    %9 = vector.load %arg3[%c0_5, %c0_6] : memref<32x2xf32, #tpu.memory_space<vmem>>, vector<32x2xf32>
    %c0_7 = arith.constant 0 : index
    %c0_8 = arith.constant 0 : index
    %10 = vector.load %arg4[%c0_7, %c0_8] : memref<32x1xf32, #tpu.memory_space<vmem>>, vector<32x1xf32>
    %11 = vector.shape_cast %10 : vector<32x1xf32> to vector<32x1xf32>
    %12 = vector.broadcast %11 : vector<32x1xf32> to vector<32x128xf32>
    %13 = vector.extract_strided_slice %9 {offsets = [0, 0], sizes = [32, 1], strides = [1, 1]} : vector<32x2xf32> to vector<32x1xf32>
    %14 = vector.extract_strided_slice %4 {offsets = [0, 0], sizes = [1, 128], strides = [1, 1]} : vector<2x128xf32> to vector<1x128xf32>
    %15 = vector.broadcast %13 : vector<32x1xf32> to vector<32x128xf32>
    %16 = vector.broadcast %14 : vector<1x128xf32> to vector<32x128xf32>
    %17 = arith.mulf %15, %16 : vector<32x128xf32>
    %18 = arith.addf %12, %17 : vector<32x128xf32>
    %19 = vector.extract_strided_slice %9 {offsets = [0, 1], sizes = [32, 1], strides = [1, 1]} : vector<32x2xf32> to vector<32x1xf32>
    %20 = vector.extract_strided_slice %4 {offsets = [1, 0], sizes = [1, 128], strides = [1, 1]} : vector<2x128xf32> to vector<1x128xf32>
    %21 = vector.broadcast %19 : vector<32x1xf32> to vector<32x128xf32>
    %22 = vector.broadcast %20 : vector<1x128xf32> to vector<32x128xf32>
    %23 = arith.mulf %21, %22 : vector<32x128xf32>
    %24 = arith.addf %18, %23 : vector<32x128xf32>
    %25 = arith.mulf %24, %8 : vector<32x128xf32>
    %c0_9 = arith.constant 0 : index
    %c0_10 = arith.constant 0 : index
    %c0_11 = arith.constant 0 : index
    %26 = vector.load %arg5[%c0_9, %c0_10, %c0_11] : memref<3x32x3xf32, #tpu.memory_space<vmem>>, vector<1x32x3xf32>
    %27 = vector.shape_cast %26 : vector<1x32x3xf32> to vector<32x3xf32>
    %c0_12 = arith.constant 0 : index
    %c0_13 = arith.constant 0 : index
    %c0_14 = arith.constant 0 : index
    %28 = vector.load %arg6[%c0_12, %c0_13, %c0_14] : memref<3x32x1xf32, #tpu.memory_space<vmem>>, vector<1x32x1xf32>
    %29 = vector.shape_cast %28 : vector<1x32x1xf32> to vector<32x1xf32>
    %30 = vector.shape_cast %29 : vector<32x1xf32> to vector<32x1xf32>
    %31 = vector.broadcast %30 : vector<32x1xf32> to vector<32x128xf32>
    %32 = vector.extract_strided_slice %27 {offsets = [0, 0], sizes = [32, 1], strides = [1, 1]} : vector<32x3xf32> to vector<32x1xf32>
    %c1_i32 = arith.constant 1 : i32
    %33 = tpu.dynamic_rotate %25 by %c1_i32 dim 1 : vector<32x128xf32>, i32 -> vector<32x128xf32>
    %c1_i32_15 = arith.constant 1 : i32
    %34 = vector.broadcast %c1_i32_15 : i32 to vector<1x128xi32>
    %35 = arith.cmpi sge, %6, %34 : vector<1x128xi32>
    %cst = arith.constant 0.000000e+00 : f32
    %36 = vector.shape_cast %35 : vector<1x128xi1> to vector<1x128xi1>
    %37 = vector.broadcast %36 : vector<1x128xi1> to vector<32x128xi1>
    %38 = vector.broadcast %cst : f32 to vector<32x128xf32>
    %39 = arith.select %37, %33, %38 : vector<32x128xi1>, vector<32x128xf32>
    %40 = vector.broadcast %32 : vector<32x1xf32> to vector<32x128xf32>
    %41 = arith.mulf %40, %39 : vector<32x128xf32>
    %42 = arith.addf %31, %41 : vector<32x128xf32>
    %43 = vector.extract_strided_slice %27 {offsets = [0, 1], sizes = [32, 1], strides = [1, 1]} : vector<32x3xf32> to vector<32x1xf32>
    %44 = vector.broadcast %43 : vector<32x1xf32> to vector<32x128xf32>
    %45 = arith.mulf %44, %25 : vector<32x128xf32>
    %46 = arith.addf %42, %45 : vector<32x128xf32>
    %47 = vector.extract_strided_slice %27 {offsets = [0, 2], sizes = [32, 1], strides = [1, 1]} : vector<32x3xf32> to vector<32x1xf32>
    %c127_i32 = arith.constant 127 : i32
    %48 = tpu.dynamic_rotate %25 by %c127_i32 dim 1 : vector<32x128xf32>, i32 -> vector<32x128xf32>
    %c127_i32_16 = arith.constant 127 : i32
    %49 = vector.broadcast %c127_i32_16 : i32 to vector<1x128xi32>
    %50 = arith.cmpi slt, %6, %49 : vector<1x128xi32>
    %cst_17 = arith.constant 0.000000e+00 : f32
    %51 = vector.shape_cast %50 : vector<1x128xi1> to vector<1x128xi1>
    %52 = vector.broadcast %51 : vector<1x128xi1> to vector<32x128xi1>
    %53 = vector.broadcast %cst_17 : f32 to vector<32x128xf32>
    %54 = arith.select %52, %48, %53 : vector<32x128xi1>, vector<32x128xf32>
    %55 = vector.broadcast %47 : vector<32x1xf32> to vector<32x128xf32>
    %56 = arith.mulf %55, %54 : vector<32x128xf32>
    %57 = arith.addf %46, %56 : vector<32x128xf32>
    %c0_18 = arith.constant 0 : index
    %c0_19 = arith.constant 0 : index
    %c0_20 = arith.constant 0 : index
    %58 = vector.load %arg7[%c0_18, %c0_19, %c0_20] : memref<3x32x1xf32, #tpu.memory_space<vmem>>, vector<1x32x1xf32>
    %59 = vector.shape_cast %58 : vector<1x32x1xf32> to vector<32x1xf32>
    %c0_21 = arith.constant 0 : index
    %c0_22 = arith.constant 0 : index
    %c0_23 = arith.constant 0 : index
    %60 = vector.load %arg8[%c0_21, %c0_22, %c0_23] : memref<3x32x1xf32, #tpu.memory_space<vmem>>, vector<1x32x1xf32>
    %61 = vector.shape_cast %60 : vector<1x32x1xf32> to vector<32x1xf32>
    %cst_24 = arith.constant dense<0.000000e+00> : vector<128xf32>
    %62 = vector.multi_reduction <add>, %57, %cst_24 [0] : vector<32x128xf32> to vector<128xf32>
    %63 = vector.shape_cast %62 : vector<128xf32> to vector<1x128xf32>
    %64 = arith.mulf %57, %57 : vector<32x128xf32>
    %cst_25 = arith.constant dense<0.000000e+00> : vector<128xf32>
    %65 = vector.multi_reduction <add>, %64, %cst_25 [0] : vector<32x128xf32> to vector<128xf32>
    %66 = vector.shape_cast %65 : vector<128xf32> to vector<1x128xf32>
    %cst_26 = arith.constant 3.125000e-02 : f32
    %67 = vector.broadcast %cst_26 : f32 to vector<1x128xf32>
    %68 = arith.mulf %63, %67 : vector<1x128xf32>
    %cst_27 = arith.constant 3.125000e-02 : f32
    %69 = vector.broadcast %cst_27 : f32 to vector<1x128xf32>
    %70 = arith.mulf %66, %69 : vector<1x128xf32>
    %71 = arith.mulf %68, %68 : vector<1x128xf32>
    %72 = arith.subf %70, %71 : vector<1x128xf32>
    %73 = vector.broadcast %68 : vector<1x128xf32> to vector<32x128xf32>
    %74 = arith.subf %57, %73 : vector<32x128xf32>
    %cst_28 = arith.constant 9.99999974E-6 : f32
    %75 = vector.broadcast %cst_28 : f32 to vector<1x128xf32>
    %76 = arith.addf %72, %75 : vector<1x128xf32>
    %77 = math.rsqrt %76 : vector<1x128xf32>
    %78 = vector.broadcast %77 : vector<1x128xf32> to vector<32x128xf32>
    %79 = arith.mulf %74, %78 : vector<32x128xf32>
    %80 = vector.broadcast %59 : vector<32x1xf32> to vector<32x128xf32>
    %81 = arith.mulf %79, %80 : vector<32x128xf32>
    %82 = vector.broadcast %61 : vector<32x1xf32> to vector<32x128xf32>
    %83 = arith.addf %81, %82 : vector<32x128xf32>
    %cst_29 = arith.constant 5.000000e-01 : f32
    %84 = vector.broadcast %cst_29 : f32 to vector<32x128xf32>
    %85 = arith.mulf %84, %83 : vector<32x128xf32>
    %cst_30 = arith.constant 0.707106769 : f32
    %86 = vector.broadcast %cst_30 : f32 to vector<32x128xf32>
    %87 = arith.mulf %83, %86 : vector<32x128xf32>
    %88 = math.absf %87 : vector<32x128xf32>
    %cst_31 = arith.constant 0.327591091 : f32
    %89 = vector.broadcast %cst_31 : f32 to vector<32x128xf32>
    %90 = arith.mulf %89, %88 : vector<32x128xf32>
    %cst_32 = arith.constant 1.000000e+00 : f32
    %91 = vector.broadcast %cst_32 : f32 to vector<32x128xf32>
    %92 = arith.addf %91, %90 : vector<32x128xf32>
    %cst_33 = arith.constant 1.000000e+00 : f32
    %93 = vector.broadcast %cst_33 : f32 to vector<32x128xf32>
    %94 = arith.divf %93, %92 : vector<32x128xf32>
    %cst_34 = arith.constant 1.06140542 : f32
    %95 = vector.broadcast %cst_34 : f32 to vector<32x128xf32>
    %96 = arith.mulf %95, %94 : vector<32x128xf32>
    %cst_35 = arith.constant -1.45315206 : f32
    %97 = vector.broadcast %cst_35 : f32 to vector<32x128xf32>
    %98 = arith.addf %96, %97 : vector<32x128xf32>
    %99 = arith.mulf %98, %94 : vector<32x128xf32>
    %cst_36 = arith.constant 1.42141378 : f32
    %100 = vector.broadcast %cst_36 : f32 to vector<32x128xf32>
    %101 = arith.addf %99, %100 : vector<32x128xf32>
    %102 = arith.mulf %101, %94 : vector<32x128xf32>
    %cst_37 = arith.constant -0.284496725 : f32
    %103 = vector.broadcast %cst_37 : f32 to vector<32x128xf32>
    %104 = arith.addf %102, %103 : vector<32x128xf32>
    %105 = arith.mulf %104, %94 : vector<32x128xf32>
    %cst_38 = arith.constant 0.254829586 : f32
    %106 = vector.broadcast %cst_38 : f32 to vector<32x128xf32>
    %107 = arith.addf %105, %106 : vector<32x128xf32>
    %108 = arith.mulf %107, %94 : vector<32x128xf32>
    %cst_39 = arith.constant 0.000000e+00 : f32
    %109 = vector.broadcast %cst_39 : f32 to vector<32x128xf32>
    %110 = arith.subf %109, %88 : vector<32x128xf32>
    %111 = arith.mulf %110, %88 : vector<32x128xf32>
    %112 = math.exp %111 : vector<32x128xf32>
    %113 = arith.mulf %108, %112 : vector<32x128xf32>
    %cst_40 = arith.constant 1.000000e+00 : f32
    %114 = vector.broadcast %cst_40 : f32 to vector<32x128xf32>
    %115 = arith.subf %114, %113 : vector<32x128xf32>
    %cst_41 = arith.constant 0.000000e+00 : f32
    %116 = vector.broadcast %cst_41 : f32 to vector<32x128xf32>
    %117 = arith.cmpf oge, %87, %116 : vector<32x128xf32>
    %cst_42 = arith.constant 0.000000e+00 : f32
    %118 = vector.broadcast %cst_42 : f32 to vector<32x128xf32>
    %119 = arith.subf %118, %115 : vector<32x128xf32>
    %120 = arith.select %117, %115, %119 : vector<32x128xi1>, vector<32x128xf32>
    %cst_43 = arith.constant 1.000000e+00 : f32
    %121 = vector.broadcast %cst_43 : f32 to vector<32x128xf32>
    %122 = arith.addf %121, %120 : vector<32x128xf32>
    %123 = arith.mulf %85, %122 : vector<32x128xf32>
    %c0_44 = arith.constant 0 : index
    %c0_45 = arith.constant 0 : index
    %c0_46 = arith.constant 0 : index
    %124 = vector.load %arg9[%c0_44, %c0_45, %c0_46] : memref<3x32x32xf32, #tpu.memory_space<vmem>>, vector<1x32x32xf32>
    %125 = vector.shape_cast %124 : vector<1x32x32xf32> to vector<32x32xf32>
    %cst_47 = arith.constant dense<0.000000e+00> : vector<32x128xf32>
    %126 = tpu.matmul %125, %123, %cst_47 {dimension_numbers = #tpu.dot_dimension_numbers<[1], [0], [0], [1], [0, 0, 1, 1], [], []>} : vector<32x32xf32>, vector<32x128xf32>, vector<32x128xf32> -> vector<32x128xf32>
    %c0_48 = arith.constant 0 : index
    %c0_49 = arith.constant 0 : index
    %c0_50 = arith.constant 0 : index
    %127 = vector.load %arg10[%c0_48, %c0_49, %c0_50] : memref<3x32x1xf32, #tpu.memory_space<vmem>>, vector<1x32x1xf32>
    %128 = vector.shape_cast %127 : vector<1x32x1xf32> to vector<32x1xf32>
    %129 = vector.broadcast %128 : vector<32x1xf32> to vector<32x128xf32>
    %130 = arith.addf %126, %129 : vector<32x128xf32>
    %c0_51 = arith.constant 0 : index
    %c0_52 = arith.constant 0 : index
    %c0_53 = arith.constant 0 : index
    %131 = vector.load %arg11[%c0_51, %c0_52, %c0_53] : memref<3x32x1xf32, #tpu.memory_space<vmem>>, vector<1x32x1xf32>
    %132 = vector.shape_cast %131 : vector<1x32x1xf32> to vector<32x1xf32>
    %c0_54 = arith.constant 0 : index
    %c0_55 = arith.constant 0 : index
    %c0_56 = arith.constant 0 : index
    %133 = vector.load %arg12[%c0_54, %c0_55, %c0_56] : memref<3x32x1xf32, #tpu.memory_space<vmem>>, vector<1x32x1xf32>
    %134 = vector.shape_cast %133 : vector<1x32x1xf32> to vector<32x1xf32>
    %cst_57 = arith.constant dense<0.000000e+00> : vector<128xf32>
    %135 = vector.multi_reduction <add>, %130, %cst_57 [0] : vector<32x128xf32> to vector<128xf32>
    %136 = vector.shape_cast %135 : vector<128xf32> to vector<1x128xf32>
    %137 = arith.mulf %130, %130 : vector<32x128xf32>
    %cst_58 = arith.constant dense<0.000000e+00> : vector<128xf32>
    %138 = vector.multi_reduction <add>, %137, %cst_58 [0] : vector<32x128xf32> to vector<128xf32>
    %139 = vector.shape_cast %138 : vector<128xf32> to vector<1x128xf32>
    %cst_59 = arith.constant 3.125000e-02 : f32
    %140 = vector.broadcast %cst_59 : f32 to vector<1x128xf32>
    %141 = arith.mulf %136, %140 : vector<1x128xf32>
    %cst_60 = arith.constant 3.125000e-02 : f32
    %142 = vector.broadcast %cst_60 : f32 to vector<1x128xf32>
    %143 = arith.mulf %139, %142 : vector<1x128xf32>
    %144 = arith.mulf %141, %141 : vector<1x128xf32>
    %145 = arith.subf %143, %144 : vector<1x128xf32>
    %146 = vector.broadcast %141 : vector<1x128xf32> to vector<32x128xf32>
    %147 = arith.subf %130, %146 : vector<32x128xf32>
    %cst_61 = arith.constant 9.99999974E-6 : f32
    %148 = vector.broadcast %cst_61 : f32 to vector<1x128xf32>
    %149 = arith.addf %145, %148 : vector<1x128xf32>
    %150 = math.rsqrt %149 : vector<1x128xf32>
    %151 = vector.broadcast %150 : vector<1x128xf32> to vector<32x128xf32>
    %152 = arith.mulf %147, %151 : vector<32x128xf32>
    %153 = vector.broadcast %132 : vector<32x1xf32> to vector<32x128xf32>
    %154 = arith.mulf %152, %153 : vector<32x128xf32>
    %155 = vector.broadcast %134 : vector<32x1xf32> to vector<32x128xf32>
    %156 = arith.addf %154, %155 : vector<32x128xf32>
    %cst_62 = arith.constant 5.000000e-01 : f32
    %157 = vector.broadcast %cst_62 : f32 to vector<32x128xf32>
    %158 = arith.mulf %157, %156 : vector<32x128xf32>
    %cst_63 = arith.constant 0.707106769 : f32
    %159 = vector.broadcast %cst_63 : f32 to vector<32x128xf32>
    %160 = arith.mulf %156, %159 : vector<32x128xf32>
    %161 = math.absf %160 : vector<32x128xf32>
    %cst_64 = arith.constant 0.327591091 : f32
    %162 = vector.broadcast %cst_64 : f32 to vector<32x128xf32>
    %163 = arith.mulf %162, %161 : vector<32x128xf32>
    %cst_65 = arith.constant 1.000000e+00 : f32
    %164 = vector.broadcast %cst_65 : f32 to vector<32x128xf32>
    %165 = arith.addf %164, %163 : vector<32x128xf32>
    %cst_66 = arith.constant 1.000000e+00 : f32
    %166 = vector.broadcast %cst_66 : f32 to vector<32x128xf32>
    %167 = arith.divf %166, %165 : vector<32x128xf32>
    %cst_67 = arith.constant 1.06140542 : f32
    %168 = vector.broadcast %cst_67 : f32 to vector<32x128xf32>
    %169 = arith.mulf %168, %167 : vector<32x128xf32>
    %cst_68 = arith.constant -1.45315206 : f32
    %170 = vector.broadcast %cst_68 : f32 to vector<32x128xf32>
    %171 = arith.addf %169, %170 : vector<32x128xf32>
    %172 = arith.mulf %171, %167 : vector<32x128xf32>
    %cst_69 = arith.constant 1.42141378 : f32
    %173 = vector.broadcast %cst_69 : f32 to vector<32x128xf32>
    %174 = arith.addf %172, %173 : vector<32x128xf32>
    %175 = arith.mulf %174, %167 : vector<32x128xf32>
    %cst_70 = arith.constant -0.284496725 : f32
    %176 = vector.broadcast %cst_70 : f32 to vector<32x128xf32>
    %177 = arith.addf %175, %176 : vector<32x128xf32>
    %178 = arith.mulf %177, %167 : vector<32x128xf32>
    %cst_71 = arith.constant 0.254829586 : f32
    %179 = vector.broadcast %cst_71 : f32 to vector<32x128xf32>
    %180 = arith.addf %178, %179 : vector<32x128xf32>
    %181 = arith.mulf %180, %167 : vector<32x128xf32>
    %cst_72 = arith.constant 0.000000e+00 : f32
    %182 = vector.broadcast %cst_72 : f32 to vector<32x128xf32>
    %183 = arith.subf %182, %161 : vector<32x128xf32>
    %184 = arith.mulf %183, %161 : vector<32x128xf32>
    %185 = math.exp %184 : vector<32x128xf32>
    %186 = arith.mulf %181, %185 : vector<32x128xf32>
    %cst_73 = arith.constant 1.000000e+00 : f32
    %187 = vector.broadcast %cst_73 : f32 to vector<32x128xf32>
    %188 = arith.subf %187, %186 : vector<32x128xf32>
    %cst_74 = arith.constant 0.000000e+00 : f32
    %189 = vector.broadcast %cst_74 : f32 to vector<32x128xf32>
    %190 = arith.cmpf oge, %160, %189 : vector<32x128xf32>
    %cst_75 = arith.constant 0.000000e+00 : f32
    %191 = vector.broadcast %cst_75 : f32 to vector<32x128xf32>
    %192 = arith.subf %191, %188 : vector<32x128xf32>
    %193 = arith.select %190, %188, %192 : vector<32x128xi1>, vector<32x128xf32>
    %cst_76 = arith.constant 1.000000e+00 : f32
    %194 = vector.broadcast %cst_76 : f32 to vector<32x128xf32>
    %195 = arith.addf %194, %193 : vector<32x128xf32>
    %196 = arith.mulf %158, %195 : vector<32x128xf32>
    %197 = arith.addf %24, %196 : vector<32x128xf32>
    %198 = arith.mulf %197, %8 : vector<32x128xf32>
    %c1 = arith.constant 1 : index
    %c0_77 = arith.constant 0 : index
    %c0_78 = arith.constant 0 : index
    %199 = vector.load %arg5[%c1, %c0_77, %c0_78] : memref<3x32x3xf32, #tpu.memory_space<vmem>>, vector<1x32x3xf32>
    %200 = vector.shape_cast %199 : vector<1x32x3xf32> to vector<32x3xf32>
    %c1_79 = arith.constant 1 : index
    %c0_80 = arith.constant 0 : index
    %c0_81 = arith.constant 0 : index
    %201 = vector.load %arg6[%c1_79, %c0_80, %c0_81] : memref<3x32x1xf32, #tpu.memory_space<vmem>>, vector<1x32x1xf32>
    %202 = vector.shape_cast %201 : vector<1x32x1xf32> to vector<32x1xf32>
    %203 = vector.shape_cast %202 : vector<32x1xf32> to vector<32x1xf32>
    %204 = vector.broadcast %203 : vector<32x1xf32> to vector<32x128xf32>
    %205 = vector.extract_strided_slice %200 {offsets = [0, 0], sizes = [32, 1], strides = [1, 1]} : vector<32x3xf32> to vector<32x1xf32>
    %c3_i32 = arith.constant 3 : i32
    %206 = tpu.dynamic_rotate %198 by %c3_i32 dim 1 : vector<32x128xf32>, i32 -> vector<32x128xf32>
    %c3_i32_82 = arith.constant 3 : i32
    %207 = vector.broadcast %c3_i32_82 : i32 to vector<1x128xi32>
    %208 = arith.cmpi sge, %6, %207 : vector<1x128xi32>
    %cst_83 = arith.constant 0.000000e+00 : f32
    %209 = vector.shape_cast %208 : vector<1x128xi1> to vector<1x128xi1>
    %210 = vector.broadcast %209 : vector<1x128xi1> to vector<32x128xi1>
    %211 = vector.broadcast %cst_83 : f32 to vector<32x128xf32>
    %212 = arith.select %210, %206, %211 : vector<32x128xi1>, vector<32x128xf32>
    %213 = vector.broadcast %205 : vector<32x1xf32> to vector<32x128xf32>
    %214 = arith.mulf %213, %212 : vector<32x128xf32>
    %215 = arith.addf %204, %214 : vector<32x128xf32>
    %216 = vector.extract_strided_slice %200 {offsets = [0, 1], sizes = [32, 1], strides = [1, 1]} : vector<32x3xf32> to vector<32x1xf32>
    %217 = vector.broadcast %216 : vector<32x1xf32> to vector<32x128xf32>
    %218 = arith.mulf %217, %198 : vector<32x128xf32>
    %219 = arith.addf %215, %218 : vector<32x128xf32>
    %220 = vector.extract_strided_slice %200 {offsets = [0, 2], sizes = [32, 1], strides = [1, 1]} : vector<32x3xf32> to vector<32x1xf32>
    %c125_i32 = arith.constant 125 : i32
    %221 = tpu.dynamic_rotate %198 by %c125_i32 dim 1 : vector<32x128xf32>, i32 -> vector<32x128xf32>
    %c125_i32_84 = arith.constant 125 : i32
    %222 = vector.broadcast %c125_i32_84 : i32 to vector<1x128xi32>
    %223 = arith.cmpi slt, %6, %222 : vector<1x128xi32>
    %cst_85 = arith.constant 0.000000e+00 : f32
    %224 = vector.shape_cast %223 : vector<1x128xi1> to vector<1x128xi1>
    %225 = vector.broadcast %224 : vector<1x128xi1> to vector<32x128xi1>
    %226 = vector.broadcast %cst_85 : f32 to vector<32x128xf32>
    %227 = arith.select %225, %221, %226 : vector<32x128xi1>, vector<32x128xf32>
    %228 = vector.broadcast %220 : vector<32x1xf32> to vector<32x128xf32>
    %229 = arith.mulf %228, %227 : vector<32x128xf32>
    %230 = arith.addf %219, %229 : vector<32x128xf32>
    %c1_86 = arith.constant 1 : index
    %c0_87 = arith.constant 0 : index
    %c0_88 = arith.constant 0 : index
    %231 = vector.load %arg7[%c1_86, %c0_87, %c0_88] : memref<3x32x1xf32, #tpu.memory_space<vmem>>, vector<1x32x1xf32>
    %232 = vector.shape_cast %231 : vector<1x32x1xf32> to vector<32x1xf32>
    %c1_89 = arith.constant 1 : index
    %c0_90 = arith.constant 0 : index
    %c0_91 = arith.constant 0 : index
    %233 = vector.load %arg8[%c1_89, %c0_90, %c0_91] : memref<3x32x1xf32, #tpu.memory_space<vmem>>, vector<1x32x1xf32>
    %234 = vector.shape_cast %233 : vector<1x32x1xf32> to vector<32x1xf32>
    %cst_92 = arith.constant dense<0.000000e+00> : vector<128xf32>
    %235 = vector.multi_reduction <add>, %230, %cst_92 [0] : vector<32x128xf32> to vector<128xf32>
    %236 = vector.shape_cast %235 : vector<128xf32> to vector<1x128xf32>
    %237 = arith.mulf %230, %230 : vector<32x128xf32>
    %cst_93 = arith.constant dense<0.000000e+00> : vector<128xf32>
    %238 = vector.multi_reduction <add>, %237, %cst_93 [0] : vector<32x128xf32> to vector<128xf32>
    %239 = vector.shape_cast %238 : vector<128xf32> to vector<1x128xf32>
    %cst_94 = arith.constant 3.125000e-02 : f32
    %240 = vector.broadcast %cst_94 : f32 to vector<1x128xf32>
    %241 = arith.mulf %236, %240 : vector<1x128xf32>
    %cst_95 = arith.constant 3.125000e-02 : f32
    %242 = vector.broadcast %cst_95 : f32 to vector<1x128xf32>
    %243 = arith.mulf %239, %242 : vector<1x128xf32>
    %244 = arith.mulf %241, %241 : vector<1x128xf32>
    %245 = arith.subf %243, %244 : vector<1x128xf32>
    %246 = vector.broadcast %241 : vector<1x128xf32> to vector<32x128xf32>
    %247 = arith.subf %230, %246 : vector<32x128xf32>
    %cst_96 = arith.constant 9.99999974E-6 : f32
    %248 = vector.broadcast %cst_96 : f32 to vector<1x128xf32>
    %249 = arith.addf %245, %248 : vector<1x128xf32>
    %250 = math.rsqrt %249 : vector<1x128xf32>
    %251 = vector.broadcast %250 : vector<1x128xf32> to vector<32x128xf32>
    %252 = arith.mulf %247, %251 : vector<32x128xf32>
    %253 = vector.broadcast %232 : vector<32x1xf32> to vector<32x128xf32>
    %254 = arith.mulf %252, %253 : vector<32x128xf32>
    %255 = vector.broadcast %234 : vector<32x1xf32> to vector<32x128xf32>
    %256 = arith.addf %254, %255 : vector<32x128xf32>
    %cst_97 = arith.constant 5.000000e-01 : f32
    %257 = vector.broadcast %cst_97 : f32 to vector<32x128xf32>
    %258 = arith.mulf %257, %256 : vector<32x128xf32>
    %cst_98 = arith.constant 0.707106769 : f32
    %259 = vector.broadcast %cst_98 : f32 to vector<32x128xf32>
    %260 = arith.mulf %256, %259 : vector<32x128xf32>
    %261 = math.absf %260 : vector<32x128xf32>
    %cst_99 = arith.constant 0.327591091 : f32
    %262 = vector.broadcast %cst_99 : f32 to vector<32x128xf32>
    %263 = arith.mulf %262, %261 : vector<32x128xf32>
    %cst_100 = arith.constant 1.000000e+00 : f32
    %264 = vector.broadcast %cst_100 : f32 to vector<32x128xf32>
    %265 = arith.addf %264, %263 : vector<32x128xf32>
    %cst_101 = arith.constant 1.000000e+00 : f32
    %266 = vector.broadcast %cst_101 : f32 to vector<32x128xf32>
    %267 = arith.divf %266, %265 : vector<32x128xf32>
    %cst_102 = arith.constant 1.06140542 : f32
    %268 = vector.broadcast %cst_102 : f32 to vector<32x128xf32>
    %269 = arith.mulf %268, %267 : vector<32x128xf32>
    %cst_103 = arith.constant -1.45315206 : f32
    %270 = vector.broadcast %cst_103 : f32 to vector<32x128xf32>
    %271 = arith.addf %269, %270 : vector<32x128xf32>
    %272 = arith.mulf %271, %267 : vector<32x128xf32>
    %cst_104 = arith.constant 1.42141378 : f32
    %273 = vector.broadcast %cst_104 : f32 to vector<32x128xf32>
    %274 = arith.addf %272, %273 : vector<32x128xf32>
    %275 = arith.mulf %274, %267 : vector<32x128xf32>
    %cst_105 = arith.constant -0.284496725 : f32
    %276 = vector.broadcast %cst_105 : f32 to vector<32x128xf32>
    %277 = arith.addf %275, %276 : vector<32x128xf32>
    %278 = arith.mulf %277, %267 : vector<32x128xf32>
    %cst_106 = arith.constant 0.254829586 : f32
    %279 = vector.broadcast %cst_106 : f32 to vector<32x128xf32>
    %280 = arith.addf %278, %279 : vector<32x128xf32>
    %281 = arith.mulf %280, %267 : vector<32x128xf32>
    %cst_107 = arith.constant 0.000000e+00 : f32
    %282 = vector.broadcast %cst_107 : f32 to vector<32x128xf32>
    %283 = arith.subf %282, %261 : vector<32x128xf32>
    %284 = arith.mulf %283, %261 : vector<32x128xf32>
    %285 = math.exp %284 : vector<32x128xf32>
    %286 = arith.mulf %281, %285 : vector<32x128xf32>
    %cst_108 = arith.constant 1.000000e+00 : f32
    %287 = vector.broadcast %cst_108 : f32 to vector<32x128xf32>
    %288 = arith.subf %287, %286 : vector<32x128xf32>
    %cst_109 = arith.constant 0.000000e+00 : f32
    %289 = vector.broadcast %cst_109 : f32 to vector<32x128xf32>
    %290 = arith.cmpf oge, %260, %289 : vector<32x128xf32>
    %cst_110 = arith.constant 0.000000e+00 : f32
    %291 = vector.broadcast %cst_110 : f32 to vector<32x128xf32>
    %292 = arith.subf %291, %288 : vector<32x128xf32>
    %293 = arith.select %290, %288, %292 : vector<32x128xi1>, vector<32x128xf32>
    %cst_111 = arith.constant 1.000000e+00 : f32
    %294 = vector.broadcast %cst_111 : f32 to vector<32x128xf32>
    %295 = arith.addf %294, %293 : vector<32x128xf32>
    %296 = arith.mulf %258, %295 : vector<32x128xf32>
    %c1_112 = arith.constant 1 : index
    %c0_113 = arith.constant 0 : index
    %c0_114 = arith.constant 0 : index
    %297 = vector.load %arg9[%c1_112, %c0_113, %c0_114] : memref<3x32x32xf32, #tpu.memory_space<vmem>>, vector<1x32x32xf32>
    %298 = vector.shape_cast %297 : vector<1x32x32xf32> to vector<32x32xf32>
    %cst_115 = arith.constant dense<0.000000e+00> : vector<32x128xf32>
    %299 = tpu.matmul %298, %296, %cst_115 {dimension_numbers = #tpu.dot_dimension_numbers<[1], [0], [0], [1], [0, 0, 1, 1], [], []>} : vector<32x32xf32>, vector<32x128xf32>, vector<32x128xf32> -> vector<32x128xf32>
    %c1_116 = arith.constant 1 : index
    %c0_117 = arith.constant 0 : index
    %c0_118 = arith.constant 0 : index
    %300 = vector.load %arg10[%c1_116, %c0_117, %c0_118] : memref<3x32x1xf32, #tpu.memory_space<vmem>>, vector<1x32x1xf32>
    %301 = vector.shape_cast %300 : vector<1x32x1xf32> to vector<32x1xf32>
    %302 = vector.broadcast %301 : vector<32x1xf32> to vector<32x128xf32>
    %303 = arith.addf %299, %302 : vector<32x128xf32>
    %c1_119 = arith.constant 1 : index
    %c0_120 = arith.constant 0 : index
    %c0_121 = arith.constant 0 : index
    %304 = vector.load %arg11[%c1_119, %c0_120, %c0_121] : memref<3x32x1xf32, #tpu.memory_space<vmem>>, vector<1x32x1xf32>
    %305 = vector.shape_cast %304 : vector<1x32x1xf32> to vector<32x1xf32>
    %c1_122 = arith.constant 1 : index
    %c0_123 = arith.constant 0 : index
    %c0_124 = arith.constant 0 : index
    %306 = vector.load %arg12[%c1_122, %c0_123, %c0_124] : memref<3x32x1xf32, #tpu.memory_space<vmem>>, vector<1x32x1xf32>
    %307 = vector.shape_cast %306 : vector<1x32x1xf32> to vector<32x1xf32>
    %cst_125 = arith.constant dense<0.000000e+00> : vector<128xf32>
    %308 = vector.multi_reduction <add>, %303, %cst_125 [0] : vector<32x128xf32> to vector<128xf32>
    %309 = vector.shape_cast %308 : vector<128xf32> to vector<1x128xf32>
    %310 = arith.mulf %303, %303 : vector<32x128xf32>
    %cst_126 = arith.constant dense<0.000000e+00> : vector<128xf32>
    %311 = vector.multi_reduction <add>, %310, %cst_126 [0] : vector<32x128xf32> to vector<128xf32>
    %312 = vector.shape_cast %311 : vector<128xf32> to vector<1x128xf32>
    %cst_127 = arith.constant 3.125000e-02 : f32
    %313 = vector.broadcast %cst_127 : f32 to vector<1x128xf32>
    %314 = arith.mulf %309, %313 : vector<1x128xf32>
    %cst_128 = arith.constant 3.125000e-02 : f32
    %315 = vector.broadcast %cst_128 : f32 to vector<1x128xf32>
    %316 = arith.mulf %312, %315 : vector<1x128xf32>
    %317 = arith.mulf %314, %314 : vector<1x128xf32>
    %318 = arith.subf %316, %317 : vector<1x128xf32>
    %319 = vector.broadcast %314 : vector<1x128xf32> to vector<32x128xf32>
    %320 = arith.subf %303, %319 : vector<32x128xf32>
    %cst_129 = arith.constant 9.99999974E-6 : f32
    %321 = vector.broadcast %cst_129 : f32 to vector<1x128xf32>
    %322 = arith.addf %318, %321 : vector<1x128xf32>
    %323 = math.rsqrt %322 : vector<1x128xf32>
    %324 = vector.broadcast %323 : vector<1x128xf32> to vector<32x128xf32>
    %325 = arith.mulf %320, %324 : vector<32x128xf32>
    %326 = vector.broadcast %305 : vector<32x1xf32> to vector<32x128xf32>
    %327 = arith.mulf %325, %326 : vector<32x128xf32>
    %328 = vector.broadcast %307 : vector<32x1xf32> to vector<32x128xf32>
    %329 = arith.addf %327, %328 : vector<32x128xf32>
    %cst_130 = arith.constant 5.000000e-01 : f32
    %330 = vector.broadcast %cst_130 : f32 to vector<32x128xf32>
    %331 = arith.mulf %330, %329 : vector<32x128xf32>
    %cst_131 = arith.constant 0.707106769 : f32
    %332 = vector.broadcast %cst_131 : f32 to vector<32x128xf32>
    %333 = arith.mulf %329, %332 : vector<32x128xf32>
    %334 = math.absf %333 : vector<32x128xf32>
    %cst_132 = arith.constant 0.327591091 : f32
    %335 = vector.broadcast %cst_132 : f32 to vector<32x128xf32>
    %336 = arith.mulf %335, %334 : vector<32x128xf32>
    %cst_133 = arith.constant 1.000000e+00 : f32
    %337 = vector.broadcast %cst_133 : f32 to vector<32x128xf32>
    %338 = arith.addf %337, %336 : vector<32x128xf32>
    %cst_134 = arith.constant 1.000000e+00 : f32
    %339 = vector.broadcast %cst_134 : f32 to vector<32x128xf32>
    %340 = arith.divf %339, %338 : vector<32x128xf32>
    %cst_135 = arith.constant 1.06140542 : f32
    %341 = vector.broadcast %cst_135 : f32 to vector<32x128xf32>
    %342 = arith.mulf %341, %340 : vector<32x128xf32>
    %cst_136 = arith.constant -1.45315206 : f32
    %343 = vector.broadcast %cst_136 : f32 to vector<32x128xf32>
    %344 = arith.addf %342, %343 : vector<32x128xf32>
    %345 = arith.mulf %344, %340 : vector<32x128xf32>
    %cst_137 = arith.constant 1.42141378 : f32
    %346 = vector.broadcast %cst_137 : f32 to vector<32x128xf32>
    %347 = arith.addf %345, %346 : vector<32x128xf32>
    %348 = arith.mulf %347, %340 : vector<32x128xf32>
    %cst_138 = arith.constant -0.284496725 : f32
    %349 = vector.broadcast %cst_138 : f32 to vector<32x128xf32>
    %350 = arith.addf %348, %349 : vector<32x128xf32>
    %351 = arith.mulf %350, %340 : vector<32x128xf32>
    %cst_139 = arith.constant 0.254829586 : f32
    %352 = vector.broadcast %cst_139 : f32 to vector<32x128xf32>
    %353 = arith.addf %351, %352 : vector<32x128xf32>
    %354 = arith.mulf %353, %340 : vector<32x128xf32>
    %cst_140 = arith.constant 0.000000e+00 : f32
    %355 = vector.broadcast %cst_140 : f32 to vector<32x128xf32>
    %356 = arith.subf %355, %334 : vector<32x128xf32>
    %357 = arith.mulf %356, %334 : vector<32x128xf32>
    %358 = math.exp %357 : vector<32x128xf32>
    %359 = arith.mulf %354, %358 : vector<32x128xf32>
    %cst_141 = arith.constant 1.000000e+00 : f32
    %360 = vector.broadcast %cst_141 : f32 to vector<32x128xf32>
    %361 = arith.subf %360, %359 : vector<32x128xf32>
    %cst_142 = arith.constant 0.000000e+00 : f32
    %362 = vector.broadcast %cst_142 : f32 to vector<32x128xf32>
    %363 = arith.cmpf oge, %333, %362 : vector<32x128xf32>
    %cst_143 = arith.constant 0.000000e+00 : f32
    %364 = vector.broadcast %cst_143 : f32 to vector<32x128xf32>
    %365 = arith.subf %364, %361 : vector<32x128xf32>
    %366 = arith.select %363, %361, %365 : vector<32x128xi1>, vector<32x128xf32>
    %cst_144 = arith.constant 1.000000e+00 : f32
    %367 = vector.broadcast %cst_144 : f32 to vector<32x128xf32>
    %368 = arith.addf %367, %366 : vector<32x128xf32>
    %369 = arith.mulf %331, %368 : vector<32x128xf32>
    %370 = arith.addf %197, %369 : vector<32x128xf32>
    %371 = arith.mulf %370, %8 : vector<32x128xf32>
    %c2 = arith.constant 2 : index
    %c0_145 = arith.constant 0 : index
    %c0_146 = arith.constant 0 : index
    %372 = vector.load %arg5[%c2, %c0_145, %c0_146] : memref<3x32x3xf32, #tpu.memory_space<vmem>>, vector<1x32x3xf32>
    %373 = vector.shape_cast %372 : vector<1x32x3xf32> to vector<32x3xf32>
    %c2_147 = arith.constant 2 : index
    %c0_148 = arith.constant 0 : index
    %c0_149 = arith.constant 0 : index
    %374 = vector.load %arg6[%c2_147, %c0_148, %c0_149] : memref<3x32x1xf32, #tpu.memory_space<vmem>>, vector<1x32x1xf32>
    %375 = vector.shape_cast %374 : vector<1x32x1xf32> to vector<32x1xf32>
    %376 = vector.shape_cast %375 : vector<32x1xf32> to vector<32x1xf32>
    %377 = vector.broadcast %376 : vector<32x1xf32> to vector<32x128xf32>
    %378 = vector.extract_strided_slice %373 {offsets = [0, 0], sizes = [32, 1], strides = [1, 1]} : vector<32x3xf32> to vector<32x1xf32>
    %c9_i32 = arith.constant 9 : i32
    %379 = tpu.dynamic_rotate %371 by %c9_i32 dim 1 : vector<32x128xf32>, i32 -> vector<32x128xf32>
    %c9_i32_150 = arith.constant 9 : i32
    %380 = vector.broadcast %c9_i32_150 : i32 to vector<1x128xi32>
    %381 = arith.cmpi sge, %6, %380 : vector<1x128xi32>
    %cst_151 = arith.constant 0.000000e+00 : f32
    %382 = vector.shape_cast %381 : vector<1x128xi1> to vector<1x128xi1>
    %383 = vector.broadcast %382 : vector<1x128xi1> to vector<32x128xi1>
    %384 = vector.broadcast %cst_151 : f32 to vector<32x128xf32>
    %385 = arith.select %383, %379, %384 : vector<32x128xi1>, vector<32x128xf32>
    %386 = vector.broadcast %378 : vector<32x1xf32> to vector<32x128xf32>
    %387 = arith.mulf %386, %385 : vector<32x128xf32>
    %388 = arith.addf %377, %387 : vector<32x128xf32>
    %389 = vector.extract_strided_slice %373 {offsets = [0, 1], sizes = [32, 1], strides = [1, 1]} : vector<32x3xf32> to vector<32x1xf32>
    %390 = vector.broadcast %389 : vector<32x1xf32> to vector<32x128xf32>
    %391 = arith.mulf %390, %371 : vector<32x128xf32>
    %392 = arith.addf %388, %391 : vector<32x128xf32>
    %393 = vector.extract_strided_slice %373 {offsets = [0, 2], sizes = [32, 1], strides = [1, 1]} : vector<32x3xf32> to vector<32x1xf32>
    %c119_i32 = arith.constant 119 : i32
    %394 = tpu.dynamic_rotate %371 by %c119_i32 dim 1 : vector<32x128xf32>, i32 -> vector<32x128xf32>
    %c119_i32_152 = arith.constant 119 : i32
    %395 = vector.broadcast %c119_i32_152 : i32 to vector<1x128xi32>
    %396 = arith.cmpi slt, %6, %395 : vector<1x128xi32>
    %cst_153 = arith.constant 0.000000e+00 : f32
    %397 = vector.shape_cast %396 : vector<1x128xi1> to vector<1x128xi1>
    %398 = vector.broadcast %397 : vector<1x128xi1> to vector<32x128xi1>
    %399 = vector.broadcast %cst_153 : f32 to vector<32x128xf32>
    %400 = arith.select %398, %394, %399 : vector<32x128xi1>, vector<32x128xf32>
    %401 = vector.broadcast %393 : vector<32x1xf32> to vector<32x128xf32>
    %402 = arith.mulf %401, %400 : vector<32x128xf32>
    %403 = arith.addf %392, %402 : vector<32x128xf32>
    %c2_154 = arith.constant 2 : index
    %c0_155 = arith.constant 0 : index
    %c0_156 = arith.constant 0 : index
    %404 = vector.load %arg7[%c2_154, %c0_155, %c0_156] : memref<3x32x1xf32, #tpu.memory_space<vmem>>, vector<1x32x1xf32>
    %405 = vector.shape_cast %404 : vector<1x32x1xf32> to vector<32x1xf32>
    %c2_157 = arith.constant 2 : index
    %c0_158 = arith.constant 0 : index
    %c0_159 = arith.constant 0 : index
    %406 = vector.load %arg8[%c2_157, %c0_158, %c0_159] : memref<3x32x1xf32, #tpu.memory_space<vmem>>, vector<1x32x1xf32>
    %407 = vector.shape_cast %406 : vector<1x32x1xf32> to vector<32x1xf32>
    %cst_160 = arith.constant dense<0.000000e+00> : vector<128xf32>
    %408 = vector.multi_reduction <add>, %403, %cst_160 [0] : vector<32x128xf32> to vector<128xf32>
    %409 = vector.shape_cast %408 : vector<128xf32> to vector<1x128xf32>
    %410 = arith.mulf %403, %403 : vector<32x128xf32>
    %cst_161 = arith.constant dense<0.000000e+00> : vector<128xf32>
    %411 = vector.multi_reduction <add>, %410, %cst_161 [0] : vector<32x128xf32> to vector<128xf32>
    %412 = vector.shape_cast %411 : vector<128xf32> to vector<1x128xf32>
    %cst_162 = arith.constant 3.125000e-02 : f32
    %413 = vector.broadcast %cst_162 : f32 to vector<1x128xf32>
    %414 = arith.mulf %409, %413 : vector<1x128xf32>
    %cst_163 = arith.constant 3.125000e-02 : f32
    %415 = vector.broadcast %cst_163 : f32 to vector<1x128xf32>
    %416 = arith.mulf %412, %415 : vector<1x128xf32>
    %417 = arith.mulf %414, %414 : vector<1x128xf32>
    %418 = arith.subf %416, %417 : vector<1x128xf32>
    %419 = vector.broadcast %414 : vector<1x128xf32> to vector<32x128xf32>
    %420 = arith.subf %403, %419 : vector<32x128xf32>
    %cst_164 = arith.constant 9.99999974E-6 : f32
    %421 = vector.broadcast %cst_164 : f32 to vector<1x128xf32>
    %422 = arith.addf %418, %421 : vector<1x128xf32>
    %423 = math.rsqrt %422 : vector<1x128xf32>
    %424 = vector.broadcast %423 : vector<1x128xf32> to vector<32x128xf32>
    %425 = arith.mulf %420, %424 : vector<32x128xf32>
    %426 = vector.broadcast %405 : vector<32x1xf32> to vector<32x128xf32>
    %427 = arith.mulf %425, %426 : vector<32x128xf32>
    %428 = vector.broadcast %407 : vector<32x1xf32> to vector<32x128xf32>
    %429 = arith.addf %427, %428 : vector<32x128xf32>
    %cst_165 = arith.constant 5.000000e-01 : f32
    %430 = vector.broadcast %cst_165 : f32 to vector<32x128xf32>
    %431 = arith.mulf %430, %429 : vector<32x128xf32>
    %cst_166 = arith.constant 0.707106769 : f32
    %432 = vector.broadcast %cst_166 : f32 to vector<32x128xf32>
    %433 = arith.mulf %429, %432 : vector<32x128xf32>
    %434 = math.absf %433 : vector<32x128xf32>
    %cst_167 = arith.constant 0.327591091 : f32
    %435 = vector.broadcast %cst_167 : f32 to vector<32x128xf32>
    %436 = arith.mulf %435, %434 : vector<32x128xf32>
    %cst_168 = arith.constant 1.000000e+00 : f32
    %437 = vector.broadcast %cst_168 : f32 to vector<32x128xf32>
    %438 = arith.addf %437, %436 : vector<32x128xf32>
    %cst_169 = arith.constant 1.000000e+00 : f32
    %439 = vector.broadcast %cst_169 : f32 to vector<32x128xf32>
    %440 = arith.divf %439, %438 : vector<32x128xf32>
    %cst_170 = arith.constant 1.06140542 : f32
    %441 = vector.broadcast %cst_170 : f32 to vector<32x128xf32>
    %442 = arith.mulf %441, %440 : vector<32x128xf32>
    %cst_171 = arith.constant -1.45315206 : f32
    %443 = vector.broadcast %cst_171 : f32 to vector<32x128xf32>
    %444 = arith.addf %442, %443 : vector<32x128xf32>
    %445 = arith.mulf %444, %440 : vector<32x128xf32>
    %cst_172 = arith.constant 1.42141378 : f32
    %446 = vector.broadcast %cst_172 : f32 to vector<32x128xf32>
    %447 = arith.addf %445, %446 : vector<32x128xf32>
    %448 = arith.mulf %447, %440 : vector<32x128xf32>
    %cst_173 = arith.constant -0.284496725 : f32
    %449 = vector.broadcast %cst_173 : f32 to vector<32x128xf32>
    %450 = arith.addf %448, %449 : vector<32x128xf32>
    %451 = arith.mulf %450, %440 : vector<32x128xf32>
    %cst_174 = arith.constant 0.254829586 : f32
    %452 = vector.broadcast %cst_174 : f32 to vector<32x128xf32>
    %453 = arith.addf %451, %452 : vector<32x128xf32>
    %454 = arith.mulf %453, %440 : vector<32x128xf32>
    %cst_175 = arith.constant 0.000000e+00 : f32
    %455 = vector.broadcast %cst_175 : f32 to vector<32x128xf32>
    %456 = arith.subf %455, %434 : vector<32x128xf32>
    %457 = arith.mulf %456, %434 : vector<32x128xf32>
    %458 = math.exp %457 : vector<32x128xf32>
    %459 = arith.mulf %454, %458 : vector<32x128xf32>
    %cst_176 = arith.constant 1.000000e+00 : f32
    %460 = vector.broadcast %cst_176 : f32 to vector<32x128xf32>
    %461 = arith.subf %460, %459 : vector<32x128xf32>
    %cst_177 = arith.constant 0.000000e+00 : f32
    %462 = vector.broadcast %cst_177 : f32 to vector<32x128xf32>
    %463 = arith.cmpf oge, %433, %462 : vector<32x128xf32>
    %cst_178 = arith.constant 0.000000e+00 : f32
    %464 = vector.broadcast %cst_178 : f32 to vector<32x128xf32>
    %465 = arith.subf %464, %461 : vector<32x128xf32>
    %466 = arith.select %463, %461, %465 : vector<32x128xi1>, vector<32x128xf32>
    %cst_179 = arith.constant 1.000000e+00 : f32
    %467 = vector.broadcast %cst_179 : f32 to vector<32x128xf32>
    %468 = arith.addf %467, %466 : vector<32x128xf32>
    %469 = arith.mulf %431, %468 : vector<32x128xf32>
    %c2_180 = arith.constant 2 : index
    %c0_181 = arith.constant 0 : index
    %c0_182 = arith.constant 0 : index
    %470 = vector.load %arg9[%c2_180, %c0_181, %c0_182] : memref<3x32x32xf32, #tpu.memory_space<vmem>>, vector<1x32x32xf32>
    %471 = vector.shape_cast %470 : vector<1x32x32xf32> to vector<32x32xf32>
    %cst_183 = arith.constant dense<0.000000e+00> : vector<32x128xf32>
    %472 = tpu.matmul %471, %469, %cst_183 {dimension_numbers = #tpu.dot_dimension_numbers<[1], [0], [0], [1], [0, 0, 1, 1], [], []>} : vector<32x32xf32>, vector<32x128xf32>, vector<32x128xf32> -> vector<32x128xf32>
    %c2_184 = arith.constant 2 : index
    %c0_185 = arith.constant 0 : index
    %c0_186 = arith.constant 0 : index
    %473 = vector.load %arg10[%c2_184, %c0_185, %c0_186] : memref<3x32x1xf32, #tpu.memory_space<vmem>>, vector<1x32x1xf32>
    %474 = vector.shape_cast %473 : vector<1x32x1xf32> to vector<32x1xf32>
    %475 = vector.broadcast %474 : vector<32x1xf32> to vector<32x128xf32>
    %476 = arith.addf %472, %475 : vector<32x128xf32>
    %c2_187 = arith.constant 2 : index
    %c0_188 = arith.constant 0 : index
    %c0_189 = arith.constant 0 : index
    %477 = vector.load %arg11[%c2_187, %c0_188, %c0_189] : memref<3x32x1xf32, #tpu.memory_space<vmem>>, vector<1x32x1xf32>
    %478 = vector.shape_cast %477 : vector<1x32x1xf32> to vector<32x1xf32>
    %c2_190 = arith.constant 2 : index
    %c0_191 = arith.constant 0 : index
    %c0_192 = arith.constant 0 : index
    %479 = vector.load %arg12[%c2_190, %c0_191, %c0_192] : memref<3x32x1xf32, #tpu.memory_space<vmem>>, vector<1x32x1xf32>
    %480 = vector.shape_cast %479 : vector<1x32x1xf32> to vector<32x1xf32>
    %cst_193 = arith.constant dense<0.000000e+00> : vector<128xf32>
    %481 = vector.multi_reduction <add>, %476, %cst_193 [0] : vector<32x128xf32> to vector<128xf32>
    %482 = vector.shape_cast %481 : vector<128xf32> to vector<1x128xf32>
    %483 = arith.mulf %476, %476 : vector<32x128xf32>
    %cst_194 = arith.constant dense<0.000000e+00> : vector<128xf32>
    %484 = vector.multi_reduction <add>, %483, %cst_194 [0] : vector<32x128xf32> to vector<128xf32>
    %485 = vector.shape_cast %484 : vector<128xf32> to vector<1x128xf32>
    %cst_195 = arith.constant 3.125000e-02 : f32
    %486 = vector.broadcast %cst_195 : f32 to vector<1x128xf32>
    %487 = arith.mulf %482, %486 : vector<1x128xf32>
    %cst_196 = arith.constant 3.125000e-02 : f32
    %488 = vector.broadcast %cst_196 : f32 to vector<1x128xf32>
    %489 = arith.mulf %485, %488 : vector<1x128xf32>
    %490 = arith.mulf %487, %487 : vector<1x128xf32>
    %491 = arith.subf %489, %490 : vector<1x128xf32>
    %492 = vector.broadcast %487 : vector<1x128xf32> to vector<32x128xf32>
    %493 = arith.subf %476, %492 : vector<32x128xf32>
    %cst_197 = arith.constant 9.99999974E-6 : f32
    %494 = vector.broadcast %cst_197 : f32 to vector<1x128xf32>
    %495 = arith.addf %491, %494 : vector<1x128xf32>
    %496 = math.rsqrt %495 : vector<1x128xf32>
    %497 = vector.broadcast %496 : vector<1x128xf32> to vector<32x128xf32>
    %498 = arith.mulf %493, %497 : vector<32x128xf32>
    %499 = vector.broadcast %478 : vector<32x1xf32> to vector<32x128xf32>
    %500 = arith.mulf %498, %499 : vector<32x128xf32>
    %501 = vector.broadcast %480 : vector<32x1xf32> to vector<32x128xf32>
    %502 = arith.addf %500, %501 : vector<32x128xf32>
    %cst_198 = arith.constant 5.000000e-01 : f32
    %503 = vector.broadcast %cst_198 : f32 to vector<32x128xf32>
    %504 = arith.mulf %503, %502 : vector<32x128xf32>
    %cst_199 = arith.constant 0.707106769 : f32
    %505 = vector.broadcast %cst_199 : f32 to vector<32x128xf32>
    %506 = arith.mulf %502, %505 : vector<32x128xf32>
    %507 = math.absf %506 : vector<32x128xf32>
    %cst_200 = arith.constant 0.327591091 : f32
    %508 = vector.broadcast %cst_200 : f32 to vector<32x128xf32>
    %509 = arith.mulf %508, %507 : vector<32x128xf32>
    %cst_201 = arith.constant 1.000000e+00 : f32
    %510 = vector.broadcast %cst_201 : f32 to vector<32x128xf32>
    %511 = arith.addf %510, %509 : vector<32x128xf32>
    %cst_202 = arith.constant 1.000000e+00 : f32
    %512 = vector.broadcast %cst_202 : f32 to vector<32x128xf32>
    %513 = arith.divf %512, %511 : vector<32x128xf32>
    %cst_203 = arith.constant 1.06140542 : f32
    %514 = vector.broadcast %cst_203 : f32 to vector<32x128xf32>
    %515 = arith.mulf %514, %513 : vector<32x128xf32>
    %cst_204 = arith.constant -1.45315206 : f32
    %516 = vector.broadcast %cst_204 : f32 to vector<32x128xf32>
    %517 = arith.addf %515, %516 : vector<32x128xf32>
    %518 = arith.mulf %517, %513 : vector<32x128xf32>
    %cst_205 = arith.constant 1.42141378 : f32
    %519 = vector.broadcast %cst_205 : f32 to vector<32x128xf32>
    %520 = arith.addf %518, %519 : vector<32x128xf32>
    %521 = arith.mulf %520, %513 : vector<32x128xf32>
    %cst_206 = arith.constant -0.284496725 : f32
    %522 = vector.broadcast %cst_206 : f32 to vector<32x128xf32>
    %523 = arith.addf %521, %522 : vector<32x128xf32>
    %524 = arith.mulf %523, %513 : vector<32x128xf32>
    %cst_207 = arith.constant 0.254829586 : f32
    %525 = vector.broadcast %cst_207 : f32 to vector<32x128xf32>
    %526 = arith.addf %524, %525 : vector<32x128xf32>
    %527 = arith.mulf %526, %513 : vector<32x128xf32>
    %cst_208 = arith.constant 0.000000e+00 : f32
    %528 = vector.broadcast %cst_208 : f32 to vector<32x128xf32>
    %529 = arith.subf %528, %507 : vector<32x128xf32>
    %530 = arith.mulf %529, %507 : vector<32x128xf32>
    %531 = math.exp %530 : vector<32x128xf32>
    %532 = arith.mulf %527, %531 : vector<32x128xf32>
    %cst_209 = arith.constant 1.000000e+00 : f32
    %533 = vector.broadcast %cst_209 : f32 to vector<32x128xf32>
    %534 = arith.subf %533, %532 : vector<32x128xf32>
    %cst_210 = arith.constant 0.000000e+00 : f32
    %535 = vector.broadcast %cst_210 : f32 to vector<32x128xf32>
    %536 = arith.cmpf oge, %506, %535 : vector<32x128xf32>
    %cst_211 = arith.constant 0.000000e+00 : f32
    %537 = vector.broadcast %cst_211 : f32 to vector<32x128xf32>
    %538 = arith.subf %537, %534 : vector<32x128xf32>
    %539 = arith.select %536, %534, %538 : vector<32x128xi1>, vector<32x128xf32>
    %cst_212 = arith.constant 1.000000e+00 : f32
    %540 = vector.broadcast %cst_212 : f32 to vector<32x128xf32>
    %541 = arith.addf %540, %539 : vector<32x128xf32>
    %542 = arith.mulf %504, %541 : vector<32x128xf32>
    %543 = arith.addf %370, %542 : vector<32x128xf32>
    %544 = arith.mulf %543, %8 : vector<32x128xf32>
    %c0_213 = arith.constant 0 : index
    %c0_214 = arith.constant 0 : index
    %545 = vector.load %arg13[%c0_213, %c0_214] : memref<58x32xf32, #tpu.memory_space<vmem>>, vector<58x32xf32>
    %cst_215 = arith.constant dense<0.000000e+00> : vector<58x128xf32>
    %546 = tpu.matmul %545, %544, %cst_215 {dimension_numbers = #tpu.dot_dimension_numbers<[1], [0], [0], [1], [0, 0, 1, 1], [], []>} : vector<58x32xf32>, vector<32x128xf32>, vector<58x128xf32> -> vector<58x128xf32>
    %c0_216 = arith.constant 0 : index
    %c0_217 = arith.constant 0 : index
    %547 = vector.load %arg14[%c0_216, %c0_217] : memref<58x1xf32, #tpu.memory_space<vmem>>, vector<58x1xf32>
    %548 = vector.broadcast %547 : vector<58x1xf32> to vector<58x128xf32>
    %549 = arith.addf %546, %548 : vector<58x128xf32>
    %550 = vector.broadcast %3 : vector<1x128xf32> to vector<58x128xf32>
    %551 = arith.mulf %549, %550 : vector<58x128xf32>
    %c0_218 = arith.constant 0 : index
    %c0_219 = arith.constant 0 : index
    %552 = vector.load %arg15[%c0_218, %c0_219] : memref<11x10xf32, #tpu.memory_space<vmem>>, vector<11x10xf32>
    %553 = tpu.iota {dimensions = array<i32: 0>} : vector<11x128xi32>
    %cst_220 = arith.constant 1.000000e+00 : f32
    %554 = vector.broadcast %cst_220 : f32 to vector<1x128xf32>
    %555 = vector.extract_strided_slice %551 {offsets = [0, 0], sizes = [10, 128], strides = [1, 1]} : vector<58x128xf32> to vector<10x128xf32>
    %cst_221 = arith.constant 0.176776692 : f32
    %556 = vector.broadcast %cst_221 : f32 to vector<10x128xf32>
    %557 = arith.mulf %555, %556 : vector<10x128xf32>
    %558 = vector.extract_strided_slice %551 {offsets = [10, 0], sizes = [10, 128], strides = [1, 1]} : vector<58x128xf32> to vector<10x128xf32>
    %cst_222 = arith.constant 0.176776692 : f32
    %559 = vector.broadcast %cst_222 : f32 to vector<10x128xf32>
    %560 = arith.mulf %558, %559 : vector<10x128xf32>
    %561 = vector.extract_strided_slice %551 {offsets = [20, 0], sizes = [9, 128], strides = [1, 1]} : vector<58x128xf32> to vector<9x128xf32>
    %562 = vector.extract_strided_slice %5 {offsets = [0, 0], sizes = [1, 128], strides = [1, 1]} : vector<2x128xf32> to vector<1x128xf32>
    %cst_223 = arith.constant -5.000000e+00 : f32
    %563 = vector.broadcast %cst_223 : f32 to vector<1x128xf32>
    %564 = arith.cmpf oge, %562, %563 : vector<1x128xf32>
    %cst_224 = arith.constant 5.000000e+00 : f32
    %565 = vector.broadcast %cst_224 : f32 to vector<1x128xf32>
    %566 = arith.cmpf ole, %562, %565 : vector<1x128xf32>
    %567 = arith.andi %564, %566 : vector<1x128xi1>
    %cst_225 = arith.constant -5.000000e+00 : f32
    %cst_226 = arith.constant 5.000000e+00 : f32
    %568 = vector.broadcast %cst_225 : f32 to vector<1x128xf32>
    %569 = arith.maximumf %568, %562 : vector<1x128xf32>
    %570 = vector.broadcast %cst_226 : f32 to vector<1x128xf32>
    %571 = arith.minimumf %570, %569 : vector<1x128xf32>
    %cst_227 = arith.constant dense<0xFF800000> : vector<128xf32>
    %572 = vector.multi_reduction <maximumf>, %557, %cst_227 [0] : vector<10x128xf32> to vector<128xf32>
    %573 = vector.shape_cast %572 : vector<128xf32> to vector<1x128xf32>
    %574 = vector.broadcast %573 : vector<1x128xf32> to vector<10x128xf32>
    %575 = arith.subf %557, %574 : vector<10x128xf32>
    %576 = math.exp %575 : vector<10x128xf32>
    %cst_228 = arith.constant dense<0.000000e+00> : vector<128xf32>
    %577 = vector.multi_reduction <add>, %576, %cst_228 [0] : vector<10x128xf32> to vector<128xf32>
    %578 = vector.shape_cast %577 : vector<128xf32> to vector<1x128xf32>
    %579 = vector.broadcast %578 : vector<1x128xf32> to vector<10x128xf32>
    %580 = arith.divf %576, %579 : vector<10x128xf32>
    %cst_229 = arith.constant 9.900000e-01 : f32
    %581 = vector.broadcast %cst_229 : f32 to vector<10x128xf32>
    %582 = arith.mulf %581, %580 : vector<10x128xf32>
    %cst_230 = arith.constant 1.000000e-03 : f32
    %583 = vector.broadcast %cst_230 : f32 to vector<10x128xf32>
    %584 = arith.addf %583, %582 : vector<10x128xf32>
    %cst_231 = arith.constant dense<0.000000e+00> : vector<11x128xf32>
    %585 = tpu.matmul %552, %584, %cst_231 {dimension_numbers = #tpu.dot_dimension_numbers<[1], [0], [0], [1], [0, 0, 1, 1], [], []>} : vector<11x10xf32>, vector<10x128xf32>, vector<11x128xf32> -> vector<11x128xf32>
    %cst_232 = arith.constant 1.000000e+01 : f32
    %586 = vector.broadcast %cst_232 : f32 to vector<11x128xf32>
    %587 = arith.mulf %586, %585 : vector<11x128xf32>
    %cst_233 = arith.constant 5.000000e+00 : f32
    %588 = vector.broadcast %cst_233 : f32 to vector<11x128xf32>
    %589 = arith.subf %587, %588 : vector<11x128xf32>
    %c0_i32 = arith.constant 0 : i32
    %590 = vector.broadcast %c0_i32 : i32 to vector<11x128xi32>
    %591 = arith.cmpi eq, %553, %590 : vector<11x128xi32>
    %c10_i32 = arith.constant 10 : i32
    %592 = vector.broadcast %c10_i32 : i32 to vector<11x128xi32>
    %593 = arith.cmpi eq, %553, %592 : vector<11x128xi32>
    %cst_234 = arith.constant 5.000000e+00 : f32
    %594 = vector.broadcast %cst_234 : f32 to vector<11x128xf32>
    %595 = arith.select %593, %594, %589 : vector<11x128xi1>, vector<11x128xf32>
    %cst_235 = arith.constant -5.000000e+00 : f32
    %596 = vector.broadcast %cst_235 : f32 to vector<11x128xf32>
    %597 = arith.select %591, %596, %595 : vector<11x128xi1>, vector<11x128xf32>
    %cst_236 = arith.constant dense<0xFF800000> : vector<128xf32>
    %598 = vector.multi_reduction <maximumf>, %560, %cst_236 [0] : vector<10x128xf32> to vector<128xf32>
    %599 = vector.shape_cast %598 : vector<128xf32> to vector<1x128xf32>
    %600 = vector.broadcast %599 : vector<1x128xf32> to vector<10x128xf32>
    %601 = arith.subf %560, %600 : vector<10x128xf32>
    %602 = math.exp %601 : vector<10x128xf32>
    %cst_237 = arith.constant dense<0.000000e+00> : vector<128xf32>
    %603 = vector.multi_reduction <add>, %602, %cst_237 [0] : vector<10x128xf32> to vector<128xf32>
    %604 = vector.shape_cast %603 : vector<128xf32> to vector<1x128xf32>
    %605 = vector.broadcast %604 : vector<1x128xf32> to vector<10x128xf32>
    %606 = arith.divf %602, %605 : vector<10x128xf32>
    %cst_238 = arith.constant 9.900000e-01 : f32
    %607 = vector.broadcast %cst_238 : f32 to vector<10x128xf32>
    %608 = arith.mulf %607, %606 : vector<10x128xf32>
    %cst_239 = arith.constant 1.000000e-03 : f32
    %609 = vector.broadcast %cst_239 : f32 to vector<10x128xf32>
    %610 = arith.addf %609, %608 : vector<10x128xf32>
    %cst_240 = arith.constant dense<0.000000e+00> : vector<11x128xf32>
    %611 = tpu.matmul %552, %610, %cst_240 {dimension_numbers = #tpu.dot_dimension_numbers<[1], [0], [0], [1], [0, 0, 1, 1], [], []>} : vector<11x10xf32>, vector<10x128xf32>, vector<11x128xf32> -> vector<11x128xf32>
    %cst_241 = arith.constant 1.000000e+01 : f32
    %612 = vector.broadcast %cst_241 : f32 to vector<11x128xf32>
    %613 = arith.mulf %612, %611 : vector<11x128xf32>
    %cst_242 = arith.constant 5.000000e+00 : f32
    %614 = vector.broadcast %cst_242 : f32 to vector<11x128xf32>
    %615 = arith.subf %613, %614 : vector<11x128xf32>
    %c0_i32_243 = arith.constant 0 : i32
    %616 = vector.broadcast %c0_i32_243 : i32 to vector<11x128xi32>
    %617 = arith.cmpi eq, %553, %616 : vector<11x128xi32>
    %c10_i32_244 = arith.constant 10 : i32
    %618 = vector.broadcast %c10_i32_244 : i32 to vector<11x128xi32>
    %619 = arith.cmpi eq, %553, %618 : vector<11x128xi32>
    %cst_245 = arith.constant 5.000000e+00 : f32
    %620 = vector.broadcast %cst_245 : f32 to vector<11x128xf32>
    %621 = arith.select %619, %620, %615 : vector<11x128xi1>, vector<11x128xf32>
    %cst_246 = arith.constant -5.000000e+00 : f32
    %622 = vector.broadcast %cst_246 : f32 to vector<11x128xf32>
    %623 = arith.select %617, %622, %621 : vector<11x128xi1>, vector<11x128xf32>
    %cst_247 = arith.constant 0.000000e+00 : f32
    %624 = vector.broadcast %cst_247 : f32 to vector<9x128xf32>
    %625 = arith.maximumf %561, %624 : vector<9x128xf32>
    %626 = math.absf %561 : vector<9x128xf32>
    %cst_248 = arith.constant 0.000000e+00 : f32
    %627 = vector.broadcast %cst_248 : f32 to vector<9x128xf32>
    %628 = arith.subf %627, %626 : vector<9x128xf32>
    %629 = math.exp %628 : vector<9x128xf32>
    %cst_249 = arith.constant 1.000000e+00 : f32
    %630 = vector.broadcast %cst_249 : f32 to vector<9x128xf32>
    %631 = arith.addf %630, %629 : vector<9x128xf32>
    %632 = math.log %631 : vector<9x128xf32>
    %633 = arith.addf %625, %632 : vector<9x128xf32>
    %cst_250 = arith.constant 1.000000e-03 : f32
    %634 = vector.broadcast %cst_250 : f32 to vector<9x128xf32>
    %635 = arith.addf %634, %633 : vector<9x128xf32>
    %636 = tpu.concatenate %554, %635, %554 in 0 : vector<1x128xf32>, vector<9x128xf32>, vector<1x128xf32> -> vector<11x128xf32>
    %c10_i32_251 = arith.constant 10 : i32
    %637 = vector.broadcast %c10_i32_251 : i32 to vector<11x128xi32>
    %638 = arith.cmpi eq, %553, %637 : vector<11x128xi32>
    %cst_252 = arith.constant 5.00000095 : f32
    %639 = vector.broadcast %cst_252 : f32 to vector<11x128xf32>
    %640 = arith.select %638, %639, %597 : vector<11x128xi1>, vector<11x128xf32>
    %641 = vector.broadcast %571 : vector<1x128xf32> to vector<11x128xf32>
    %642 = arith.cmpf oge, %641, %640 : vector<11x128xf32>
    %643 = arith.extui %642 : vector<11x128xi1> to vector<11x128xi32>
    %644 = arith.sitofp %643 : vector<11x128xi32> to vector<11x128xf32>
    %cst_253 = arith.constant dense<0.000000e+00> : vector<128xf32>
    %645 = vector.multi_reduction <add>, %644, %cst_253 [0] : vector<11x128xf32> to vector<128xf32>
    %646 = vector.shape_cast %645 : vector<128xf32> to vector<1x128xf32>
    %cst_254 = arith.constant 1.000000e+00 : f32
    %647 = vector.broadcast %cst_254 : f32 to vector<1x128xf32>
    %648 = arith.subf %646, %647 : vector<1x128xf32>
    %cst_255 = arith.constant 0.000000e+00 : f32
    %cst_256 = arith.constant 9.000000e+00 : f32
    %649 = vector.broadcast %cst_255 : f32 to vector<1x128xf32>
    %650 = arith.maximumf %649, %648 : vector<1x128xf32>
    %651 = vector.broadcast %cst_256 : f32 to vector<1x128xf32>
    %652 = arith.minimumf %651, %650 : vector<1x128xf32>
    %653 = arith.fptosi %652 : vector<1x128xf32> to vector<1x128xi32>
    %654 = vector.broadcast %653 : vector<1x128xi32> to vector<11x128xi32>
    %655 = arith.cmpi eq, %553, %654 : vector<11x128xi32>
    %656 = arith.extui %655 : vector<11x128xi1> to vector<11x128xi32>
    %657 = arith.sitofp %656 : vector<11x128xi32> to vector<11x128xf32>
    %c1_i32_257 = arith.constant 1 : i32
    %658 = vector.broadcast %c1_i32_257 : i32 to vector<1x128xi32>
    %659 = arith.addi %653, %658 : vector<1x128xi32>
    %660 = vector.broadcast %659 : vector<1x128xi32> to vector<11x128xi32>
    %661 = arith.cmpi eq, %553, %660 : vector<11x128xi32>
    %662 = arith.extui %661 : vector<11x128xi1> to vector<11x128xi32>
    %663 = arith.sitofp %662 : vector<11x128xi32> to vector<11x128xf32>
    %664 = arith.mulf %597, %657 : vector<11x128xf32>
    %cst_258 = arith.constant dense<0.000000e+00> : vector<128xf32>
    %665 = vector.multi_reduction <add>, %664, %cst_258 [0] : vector<11x128xf32> to vector<128xf32>
    %666 = vector.shape_cast %665 : vector<128xf32> to vector<1x128xf32>
    %667 = arith.mulf %597, %663 : vector<11x128xf32>
    %cst_259 = arith.constant dense<0.000000e+00> : vector<128xf32>
    %668 = vector.multi_reduction <add>, %667, %cst_259 [0] : vector<11x128xf32> to vector<128xf32>
    %669 = vector.shape_cast %668 : vector<128xf32> to vector<1x128xf32>
    %670 = arith.mulf %623, %657 : vector<11x128xf32>
    %cst_260 = arith.constant dense<0.000000e+00> : vector<128xf32>
    %671 = vector.multi_reduction <add>, %670, %cst_260 [0] : vector<11x128xf32> to vector<128xf32>
    %672 = vector.shape_cast %671 : vector<128xf32> to vector<1x128xf32>
    %673 = arith.mulf %623, %663 : vector<11x128xf32>
    %cst_261 = arith.constant dense<0.000000e+00> : vector<128xf32>
    %674 = vector.multi_reduction <add>, %673, %cst_261 [0] : vector<11x128xf32> to vector<128xf32>
    %675 = vector.shape_cast %674 : vector<128xf32> to vector<1x128xf32>
    %676 = arith.mulf %636, %657 : vector<11x128xf32>
    %cst_262 = arith.constant dense<0.000000e+00> : vector<128xf32>
    %677 = vector.multi_reduction <add>, %676, %cst_262 [0] : vector<11x128xf32> to vector<128xf32>
    %678 = vector.shape_cast %677 : vector<128xf32> to vector<1x128xf32>
    %679 = arith.mulf %636, %663 : vector<11x128xf32>
    %cst_263 = arith.constant dense<0.000000e+00> : vector<128xf32>
    %680 = vector.multi_reduction <add>, %679, %cst_263 [0] : vector<11x128xf32> to vector<128xf32>
    %681 = vector.shape_cast %680 : vector<128xf32> to vector<1x128xf32>
    %682 = arith.subf %669, %666 : vector<1x128xf32>
    %683 = arith.subf %675, %672 : vector<1x128xf32>
    %cst_264 = arith.constant 1.000000e+00 : f32
    %684 = vector.broadcast %cst_264 : f32 to vector<1x128xf32>
    %685 = arith.divf %684, %682 : vector<1x128xf32>
    %686 = arith.mulf %683, %685 : vector<1x128xf32>
    %687 = arith.subf %571, %666 : vector<1x128xf32>
    %688 = arith.mulf %687, %685 : vector<1x128xf32>
    %cst_265 = arith.constant 1.000000e+00 : f32
    %689 = vector.broadcast %cst_265 : f32 to vector<1x128xf32>
    %690 = arith.subf %689, %688 : vector<1x128xf32>
    %691 = arith.mulf %688, %690 : vector<1x128xf32>
    %692 = arith.mulf %686, %688 : vector<1x128xf32>
    %693 = arith.mulf %692, %688 : vector<1x128xf32>
    %694 = arith.mulf %678, %691 : vector<1x128xf32>
    %695 = arith.addf %693, %694 : vector<1x128xf32>
    %696 = arith.mulf %683, %695 : vector<1x128xf32>
    %697 = arith.addf %678, %681 : vector<1x128xf32>
    %cst_266 = arith.constant 2.000000e+00 : f32
    %698 = vector.broadcast %cst_266 : f32 to vector<1x128xf32>
    %699 = arith.mulf %698, %686 : vector<1x128xf32>
    %700 = arith.subf %697, %699 : vector<1x128xf32>
    %701 = arith.mulf %700, %691 : vector<1x128xf32>
    %702 = arith.addf %686, %701 : vector<1x128xf32>
    %703 = arith.divf %696, %702 : vector<1x128xf32>
    %704 = arith.addf %672, %703 : vector<1x128xf32>
    %705 = arith.mulf %686, %686 : vector<1x128xf32>
    %706 = arith.mulf %681, %688 : vector<1x128xf32>
    %707 = arith.mulf %706, %688 : vector<1x128xf32>
    %cst_267 = arith.constant 2.000000e+00 : f32
    %708 = vector.broadcast %cst_267 : f32 to vector<1x128xf32>
    %709 = arith.mulf %708, %686 : vector<1x128xf32>
    %710 = arith.mulf %709, %691 : vector<1x128xf32>
    %711 = arith.addf %707, %710 : vector<1x128xf32>
    %cst_268 = arith.constant 1.000000e+00 : f32
    %712 = vector.broadcast %cst_268 : f32 to vector<1x128xf32>
    %713 = arith.subf %712, %688 : vector<1x128xf32>
    %714 = arith.mulf %678, %713 : vector<1x128xf32>
    %cst_269 = arith.constant 1.000000e+00 : f32
    %715 = vector.broadcast %cst_269 : f32 to vector<1x128xf32>
    %716 = arith.subf %715, %688 : vector<1x128xf32>
    %717 = arith.mulf %714, %716 : vector<1x128xf32>
    %718 = arith.addf %711, %717 : vector<1x128xf32>
    %719 = arith.mulf %705, %718 : vector<1x128xf32>
    %720 = math.log %719 : vector<1x128xf32>
    %721 = math.log %702 : vector<1x128xf32>
    %cst_270 = arith.constant 2.000000e+00 : f32
    %722 = vector.broadcast %cst_270 : f32 to vector<1x128xf32>
    %723 = arith.mulf %722, %721 : vector<1x128xf32>
    %724 = arith.subf %720, %723 : vector<1x128xf32>
    %725 = arith.select %567, %704, %562 : vector<1x128xi1>, vector<1x128xf32>
    %cst_271 = arith.constant 0.000000e+00 : f32
    %726 = vector.broadcast %cst_271 : f32 to vector<1x128xf32>
    %727 = arith.select %567, %724, %726 : vector<1x128xi1>, vector<1x128xf32>
    %728 = vector.extract_strided_slice %551 {offsets = [29, 0], sizes = [10, 128], strides = [1, 1]} : vector<58x128xf32> to vector<10x128xf32>
    %cst_272 = arith.constant 0.176776692 : f32
    %729 = vector.broadcast %cst_272 : f32 to vector<10x128xf32>
    %730 = arith.mulf %728, %729 : vector<10x128xf32>
    %731 = vector.extract_strided_slice %551 {offsets = [39, 0], sizes = [10, 128], strides = [1, 1]} : vector<58x128xf32> to vector<10x128xf32>
    %cst_273 = arith.constant 0.176776692 : f32
    %732 = vector.broadcast %cst_273 : f32 to vector<10x128xf32>
    %733 = arith.mulf %731, %732 : vector<10x128xf32>
    %734 = vector.extract_strided_slice %551 {offsets = [49, 0], sizes = [9, 128], strides = [1, 1]} : vector<58x128xf32> to vector<9x128xf32>
    %735 = vector.extract_strided_slice %5 {offsets = [1, 0], sizes = [1, 128], strides = [1, 1]} : vector<2x128xf32> to vector<1x128xf32>
    %cst_274 = arith.constant -5.000000e+00 : f32
    %736 = vector.broadcast %cst_274 : f32 to vector<1x128xf32>
    %737 = arith.cmpf oge, %735, %736 : vector<1x128xf32>
    %cst_275 = arith.constant 5.000000e+00 : f32
    %738 = vector.broadcast %cst_275 : f32 to vector<1x128xf32>
    %739 = arith.cmpf ole, %735, %738 : vector<1x128xf32>
    %740 = arith.andi %737, %739 : vector<1x128xi1>
    %cst_276 = arith.constant -5.000000e+00 : f32
    %cst_277 = arith.constant 5.000000e+00 : f32
    %741 = vector.broadcast %cst_276 : f32 to vector<1x128xf32>
    %742 = arith.maximumf %741, %735 : vector<1x128xf32>
    %743 = vector.broadcast %cst_277 : f32 to vector<1x128xf32>
    %744 = arith.minimumf %743, %742 : vector<1x128xf32>
    %cst_278 = arith.constant dense<0xFF800000> : vector<128xf32>
    %745 = vector.multi_reduction <maximumf>, %730, %cst_278 [0] : vector<10x128xf32> to vector<128xf32>
    %746 = vector.shape_cast %745 : vector<128xf32> to vector<1x128xf32>
    %747 = vector.broadcast %746 : vector<1x128xf32> to vector<10x128xf32>
    %748 = arith.subf %730, %747 : vector<10x128xf32>
    %749 = math.exp %748 : vector<10x128xf32>
    %cst_279 = arith.constant dense<0.000000e+00> : vector<128xf32>
    %750 = vector.multi_reduction <add>, %749, %cst_279 [0] : vector<10x128xf32> to vector<128xf32>
    %751 = vector.shape_cast %750 : vector<128xf32> to vector<1x128xf32>
    %752 = vector.broadcast %751 : vector<1x128xf32> to vector<10x128xf32>
    %753 = arith.divf %749, %752 : vector<10x128xf32>
    %cst_280 = arith.constant 9.900000e-01 : f32
    %754 = vector.broadcast %cst_280 : f32 to vector<10x128xf32>
    %755 = arith.mulf %754, %753 : vector<10x128xf32>
    %cst_281 = arith.constant 1.000000e-03 : f32
    %756 = vector.broadcast %cst_281 : f32 to vector<10x128xf32>
    %757 = arith.addf %756, %755 : vector<10x128xf32>
    %cst_282 = arith.constant dense<0.000000e+00> : vector<11x128xf32>
    %758 = tpu.matmul %552, %757, %cst_282 {dimension_numbers = #tpu.dot_dimension_numbers<[1], [0], [0], [1], [0, 0, 1, 1], [], []>} : vector<11x10xf32>, vector<10x128xf32>, vector<11x128xf32> -> vector<11x128xf32>
    %cst_283 = arith.constant 1.000000e+01 : f32
    %759 = vector.broadcast %cst_283 : f32 to vector<11x128xf32>
    %760 = arith.mulf %759, %758 : vector<11x128xf32>
    %cst_284 = arith.constant 5.000000e+00 : f32
    %761 = vector.broadcast %cst_284 : f32 to vector<11x128xf32>
    %762 = arith.subf %760, %761 : vector<11x128xf32>
    %c0_i32_285 = arith.constant 0 : i32
    %763 = vector.broadcast %c0_i32_285 : i32 to vector<11x128xi32>
    %764 = arith.cmpi eq, %553, %763 : vector<11x128xi32>
    %c10_i32_286 = arith.constant 10 : i32
    %765 = vector.broadcast %c10_i32_286 : i32 to vector<11x128xi32>
    %766 = arith.cmpi eq, %553, %765 : vector<11x128xi32>
    %cst_287 = arith.constant 5.000000e+00 : f32
    %767 = vector.broadcast %cst_287 : f32 to vector<11x128xf32>
    %768 = arith.select %766, %767, %762 : vector<11x128xi1>, vector<11x128xf32>
    %cst_288 = arith.constant -5.000000e+00 : f32
    %769 = vector.broadcast %cst_288 : f32 to vector<11x128xf32>
    %770 = arith.select %764, %769, %768 : vector<11x128xi1>, vector<11x128xf32>
    %cst_289 = arith.constant dense<0xFF800000> : vector<128xf32>
    %771 = vector.multi_reduction <maximumf>, %733, %cst_289 [0] : vector<10x128xf32> to vector<128xf32>
    %772 = vector.shape_cast %771 : vector<128xf32> to vector<1x128xf32>
    %773 = vector.broadcast %772 : vector<1x128xf32> to vector<10x128xf32>
    %774 = arith.subf %733, %773 : vector<10x128xf32>
    %775 = math.exp %774 : vector<10x128xf32>
    %cst_290 = arith.constant dense<0.000000e+00> : vector<128xf32>
    %776 = vector.multi_reduction <add>, %775, %cst_290 [0] : vector<10x128xf32> to vector<128xf32>
    %777 = vector.shape_cast %776 : vector<128xf32> to vector<1x128xf32>
    %778 = vector.broadcast %777 : vector<1x128xf32> to vector<10x128xf32>
    %779 = arith.divf %775, %778 : vector<10x128xf32>
    %cst_291 = arith.constant 9.900000e-01 : f32
    %780 = vector.broadcast %cst_291 : f32 to vector<10x128xf32>
    %781 = arith.mulf %780, %779 : vector<10x128xf32>
    %cst_292 = arith.constant 1.000000e-03 : f32
    %782 = vector.broadcast %cst_292 : f32 to vector<10x128xf32>
    %783 = arith.addf %782, %781 : vector<10x128xf32>
    %cst_293 = arith.constant dense<0.000000e+00> : vector<11x128xf32>
    %784 = tpu.matmul %552, %783, %cst_293 {dimension_numbers = #tpu.dot_dimension_numbers<[1], [0], [0], [1], [0, 0, 1, 1], [], []>} : vector<11x10xf32>, vector<10x128xf32>, vector<11x128xf32> -> vector<11x128xf32>
    %cst_294 = arith.constant 1.000000e+01 : f32
    %785 = vector.broadcast %cst_294 : f32 to vector<11x128xf32>
    %786 = arith.mulf %785, %784 : vector<11x128xf32>
    %cst_295 = arith.constant 5.000000e+00 : f32
    %787 = vector.broadcast %cst_295 : f32 to vector<11x128xf32>
    %788 = arith.subf %786, %787 : vector<11x128xf32>
    %c0_i32_296 = arith.constant 0 : i32
    %789 = vector.broadcast %c0_i32_296 : i32 to vector<11x128xi32>
    %790 = arith.cmpi eq, %553, %789 : vector<11x128xi32>
    %c10_i32_297 = arith.constant 10 : i32
    %791 = vector.broadcast %c10_i32_297 : i32 to vector<11x128xi32>
    %792 = arith.cmpi eq, %553, %791 : vector<11x128xi32>
    %cst_298 = arith.constant 5.000000e+00 : f32
    %793 = vector.broadcast %cst_298 : f32 to vector<11x128xf32>
    %794 = arith.select %792, %793, %788 : vector<11x128xi1>, vector<11x128xf32>
    %cst_299 = arith.constant -5.000000e+00 : f32
    %795 = vector.broadcast %cst_299 : f32 to vector<11x128xf32>
    %796 = arith.select %790, %795, %794 : vector<11x128xi1>, vector<11x128xf32>
    %cst_300 = arith.constant 0.000000e+00 : f32
    %797 = vector.broadcast %cst_300 : f32 to vector<9x128xf32>
    %798 = arith.maximumf %734, %797 : vector<9x128xf32>
    %799 = math.absf %734 : vector<9x128xf32>
    %cst_301 = arith.constant 0.000000e+00 : f32
    %800 = vector.broadcast %cst_301 : f32 to vector<9x128xf32>
    %801 = arith.subf %800, %799 : vector<9x128xf32>
    %802 = math.exp %801 : vector<9x128xf32>
    %cst_302 = arith.constant 1.000000e+00 : f32
    %803 = vector.broadcast %cst_302 : f32 to vector<9x128xf32>
    %804 = arith.addf %803, %802 : vector<9x128xf32>
    %805 = math.log %804 : vector<9x128xf32>
    %806 = arith.addf %798, %805 : vector<9x128xf32>
    %cst_303 = arith.constant 1.000000e-03 : f32
    %807 = vector.broadcast %cst_303 : f32 to vector<9x128xf32>
    %808 = arith.addf %807, %806 : vector<9x128xf32>
    %809 = tpu.concatenate %554, %808, %554 in 0 : vector<1x128xf32>, vector<9x128xf32>, vector<1x128xf32> -> vector<11x128xf32>
    %c10_i32_304 = arith.constant 10 : i32
    %810 = vector.broadcast %c10_i32_304 : i32 to vector<11x128xi32>
    %811 = arith.cmpi eq, %553, %810 : vector<11x128xi32>
    %cst_305 = arith.constant 5.00000095 : f32
    %812 = vector.broadcast %cst_305 : f32 to vector<11x128xf32>
    %813 = arith.select %811, %812, %770 : vector<11x128xi1>, vector<11x128xf32>
    %814 = vector.broadcast %744 : vector<1x128xf32> to vector<11x128xf32>
    %815 = arith.cmpf oge, %814, %813 : vector<11x128xf32>
    %816 = arith.extui %815 : vector<11x128xi1> to vector<11x128xi32>
    %817 = arith.sitofp %816 : vector<11x128xi32> to vector<11x128xf32>
    %cst_306 = arith.constant dense<0.000000e+00> : vector<128xf32>
    %818 = vector.multi_reduction <add>, %817, %cst_306 [0] : vector<11x128xf32> to vector<128xf32>
    %819 = vector.shape_cast %818 : vector<128xf32> to vector<1x128xf32>
    %cst_307 = arith.constant 1.000000e+00 : f32
    %820 = vector.broadcast %cst_307 : f32 to vector<1x128xf32>
    %821 = arith.subf %819, %820 : vector<1x128xf32>
    %cst_308 = arith.constant 0.000000e+00 : f32
    %cst_309 = arith.constant 9.000000e+00 : f32
    %822 = vector.broadcast %cst_308 : f32 to vector<1x128xf32>
    %823 = arith.maximumf %822, %821 : vector<1x128xf32>
    %824 = vector.broadcast %cst_309 : f32 to vector<1x128xf32>
    %825 = arith.minimumf %824, %823 : vector<1x128xf32>
    %826 = arith.fptosi %825 : vector<1x128xf32> to vector<1x128xi32>
    %827 = vector.broadcast %826 : vector<1x128xi32> to vector<11x128xi32>
    %828 = arith.cmpi eq, %553, %827 : vector<11x128xi32>
    %829 = arith.extui %828 : vector<11x128xi1> to vector<11x128xi32>
    %830 = arith.sitofp %829 : vector<11x128xi32> to vector<11x128xf32>
    %c1_i32_310 = arith.constant 1 : i32
    %831 = vector.broadcast %c1_i32_310 : i32 to vector<1x128xi32>
    %832 = arith.addi %826, %831 : vector<1x128xi32>
    %833 = vector.broadcast %832 : vector<1x128xi32> to vector<11x128xi32>
    %834 = arith.cmpi eq, %553, %833 : vector<11x128xi32>
    %835 = arith.extui %834 : vector<11x128xi1> to vector<11x128xi32>
    %836 = arith.sitofp %835 : vector<11x128xi32> to vector<11x128xf32>
    %837 = arith.mulf %770, %830 : vector<11x128xf32>
    %cst_311 = arith.constant dense<0.000000e+00> : vector<128xf32>
    %838 = vector.multi_reduction <add>, %837, %cst_311 [0] : vector<11x128xf32> to vector<128xf32>
    %839 = vector.shape_cast %838 : vector<128xf32> to vector<1x128xf32>
    %840 = arith.mulf %770, %836 : vector<11x128xf32>
    %cst_312 = arith.constant dense<0.000000e+00> : vector<128xf32>
    %841 = vector.multi_reduction <add>, %840, %cst_312 [0] : vector<11x128xf32> to vector<128xf32>
    %842 = vector.shape_cast %841 : vector<128xf32> to vector<1x128xf32>
    %843 = arith.mulf %796, %830 : vector<11x128xf32>
    %cst_313 = arith.constant dense<0.000000e+00> : vector<128xf32>
    %844 = vector.multi_reduction <add>, %843, %cst_313 [0] : vector<11x128xf32> to vector<128xf32>
    %845 = vector.shape_cast %844 : vector<128xf32> to vector<1x128xf32>
    %846 = arith.mulf %796, %836 : vector<11x128xf32>
    %cst_314 = arith.constant dense<0.000000e+00> : vector<128xf32>
    %847 = vector.multi_reduction <add>, %846, %cst_314 [0] : vector<11x128xf32> to vector<128xf32>
    %848 = vector.shape_cast %847 : vector<128xf32> to vector<1x128xf32>
    %849 = arith.mulf %809, %830 : vector<11x128xf32>
    %cst_315 = arith.constant dense<0.000000e+00> : vector<128xf32>
    %850 = vector.multi_reduction <add>, %849, %cst_315 [0] : vector<11x128xf32> to vector<128xf32>
    %851 = vector.shape_cast %850 : vector<128xf32> to vector<1x128xf32>
    %852 = arith.mulf %809, %836 : vector<11x128xf32>
    %cst_316 = arith.constant dense<0.000000e+00> : vector<128xf32>
    %853 = vector.multi_reduction <add>, %852, %cst_316 [0] : vector<11x128xf32> to vector<128xf32>
    %854 = vector.shape_cast %853 : vector<128xf32> to vector<1x128xf32>
    %855 = arith.subf %842, %839 : vector<1x128xf32>
    %856 = arith.subf %848, %845 : vector<1x128xf32>
    %cst_317 = arith.constant 1.000000e+00 : f32
    %857 = vector.broadcast %cst_317 : f32 to vector<1x128xf32>
    %858 = arith.divf %857, %855 : vector<1x128xf32>
    %859 = arith.mulf %856, %858 : vector<1x128xf32>
    %860 = arith.subf %744, %839 : vector<1x128xf32>
    %861 = arith.mulf %860, %858 : vector<1x128xf32>
    %cst_318 = arith.constant 1.000000e+00 : f32
    %862 = vector.broadcast %cst_318 : f32 to vector<1x128xf32>
    %863 = arith.subf %862, %861 : vector<1x128xf32>
    %864 = arith.mulf %861, %863 : vector<1x128xf32>
    %865 = arith.mulf %859, %861 : vector<1x128xf32>
    %866 = arith.mulf %865, %861 : vector<1x128xf32>
    %867 = arith.mulf %851, %864 : vector<1x128xf32>
    %868 = arith.addf %866, %867 : vector<1x128xf32>
    %869 = arith.mulf %856, %868 : vector<1x128xf32>
    %870 = arith.addf %851, %854 : vector<1x128xf32>
    %cst_319 = arith.constant 2.000000e+00 : f32
    %871 = vector.broadcast %cst_319 : f32 to vector<1x128xf32>
    %872 = arith.mulf %871, %859 : vector<1x128xf32>
    %873 = arith.subf %870, %872 : vector<1x128xf32>
    %874 = arith.mulf %873, %864 : vector<1x128xf32>
    %875 = arith.addf %859, %874 : vector<1x128xf32>
    %876 = arith.divf %869, %875 : vector<1x128xf32>
    %877 = arith.addf %845, %876 : vector<1x128xf32>
    %878 = arith.mulf %859, %859 : vector<1x128xf32>
    %879 = arith.mulf %854, %861 : vector<1x128xf32>
    %880 = arith.mulf %879, %861 : vector<1x128xf32>
    %cst_320 = arith.constant 2.000000e+00 : f32
    %881 = vector.broadcast %cst_320 : f32 to vector<1x128xf32>
    %882 = arith.mulf %881, %859 : vector<1x128xf32>
    %883 = arith.mulf %882, %864 : vector<1x128xf32>
    %884 = arith.addf %880, %883 : vector<1x128xf32>
    %cst_321 = arith.constant 1.000000e+00 : f32
    %885 = vector.broadcast %cst_321 : f32 to vector<1x128xf32>
    %886 = arith.subf %885, %861 : vector<1x128xf32>
    %887 = arith.mulf %851, %886 : vector<1x128xf32>
    %cst_322 = arith.constant 1.000000e+00 : f32
    %888 = vector.broadcast %cst_322 : f32 to vector<1x128xf32>
    %889 = arith.subf %888, %861 : vector<1x128xf32>
    %890 = arith.mulf %887, %889 : vector<1x128xf32>
    %891 = arith.addf %884, %890 : vector<1x128xf32>
    %892 = arith.mulf %878, %891 : vector<1x128xf32>
    %893 = math.log %892 : vector<1x128xf32>
    %894 = math.log %875 : vector<1x128xf32>
    %cst_323 = arith.constant 2.000000e+00 : f32
    %895 = vector.broadcast %cst_323 : f32 to vector<1x128xf32>
    %896 = arith.mulf %895, %894 : vector<1x128xf32>
    %897 = arith.subf %893, %896 : vector<1x128xf32>
    %898 = arith.select %740, %877, %735 : vector<1x128xi1>, vector<1x128xf32>
    %cst_324 = arith.constant 0.000000e+00 : f32
    %899 = vector.broadcast %cst_324 : f32 to vector<1x128xf32>
    %900 = arith.select %740, %897, %899 : vector<1x128xi1>, vector<1x128xf32>
    %901 = tpu.concatenate %725, %898 in 0 : vector<1x128xf32>, vector<1x128xf32> -> vector<2x128xf32>
    %902 = tpu.concatenate %727, %900 in 0 : vector<1x128xf32>, vector<1x128xf32> -> vector<2x128xf32>
    %903 = tpu.concatenate %4, %901 in 0 : vector<2x128xf32>, vector<2x128xf32> -> vector<4x128xf32>
    %904 = vector.broadcast %3 : vector<1x128xf32> to vector<4x128xf32>
    %905 = arith.mulf %903, %904 : vector<4x128xf32>
    %c0_325 = arith.constant 0 : index
    %c0_326 = arith.constant 0 : index
    %c0_327 = arith.constant 0 : index
    %906 = vector.load %arg16[%c0_325, %c0_326, %c0_327] : memref<1x4x128xf32, #tpu.memory_space<vmem>>, vector<1x4x128xf32>
    %907 = vector.shape_cast %906 : vector<1x4x128xf32> to vector<4x128xf32>
    %908 = vector.shape_cast %905 : vector<4x128xf32> to vector<1x4x128xf32>
    tpu.vector_store %arg16[%c0_325, %c0_326, %c0_327], %908 {strides = array<i32>} : memref<1x4x128xf32, #tpu.memory_space<vmem>>, vector<1x4x128xf32>,
    %909 = vector.broadcast %3 : vector<1x128xf32> to vector<2x128xf32>
    %910 = arith.mulf %902, %909 : vector<2x128xf32>
    %c0_328 = arith.constant 0 : index
    %c0_329 = arith.constant 0 : index
    %c0_330 = arith.constant 0 : index
    %911 = vector.load %arg17[%c0_328, %c0_329, %c0_330] : memref<1x2x128xf32, #tpu.memory_space<vmem>>, vector<1x2x128xf32>
    %912 = vector.shape_cast %911 : vector<1x2x128xf32> to vector<2x128xf32>
    %913 = vector.shape_cast %910 : vector<2x128xf32> to vector<1x2x128xf32>
    tpu.vector_store %arg17[%c0_328, %c0_329, %c0_330], %913 {strides = array<i32>} : memref<1x2x128xf32, #tpu.memory_space<vmem>>, vector<1x2x128xf32>,
    return
  }
  func.func @transform_0(%arg0: i32) -> (i32, i32, i32) {
    %c0_i32 = arith.constant 0 : i32
    %c0_i32_0 = arith.constant 0 : i32
    %c0_i32_1 = arith.constant 0 : i32
    return %arg0, %c0_i32, %c0_i32_0 : i32, i32, i32
  }
  func.func @transform_1(%arg0: i32) -> (i32, i32, i32) {
    %c0_i32 = arith.constant 0 : i32
    %c0_i32_0 = arith.constant 0 : i32
    %c0_i32_1 = arith.constant 0 : i32
    return %arg0, %c0_i32, %c0_i32_0 : i32, i32, i32
  }
  func.func @transform_2(%arg0: i32) -> (i32, i32) {
    %c0_i32 = arith.constant 0 : i32
    %c0_i32_0 = arith.constant 0 : i32
    %c0_i32_1 = arith.constant 0 : i32
    return %c0_i32, %c0_i32_0 : i32, i32
  }
  func.func @transform_3(%arg0: i32) -> (i32, i32) {
    %c0_i32 = arith.constant 0 : i32
    %c0_i32_0 = arith.constant 0 : i32
    %c0_i32_1 = arith.constant 0 : i32
    return %c0_i32, %c0_i32_0 : i32, i32
  }
  func.func @transform_4(%arg0: i32) -> (i32, i32, i32) {
    %c0_i32 = arith.constant 0 : i32
    %c0_i32_0 = arith.constant 0 : i32
    %c0_i32_1 = arith.constant 0 : i32
    %c0_i32_2 = arith.constant 0 : i32
    return %c0_i32, %c0_i32_0, %c0_i32_1 : i32, i32, i32
  }
  func.func @transform_5(%arg0: i32) -> (i32, i32, i32) {
    %c0_i32 = arith.constant 0 : i32
    %c0_i32_0 = arith.constant 0 : i32
    %c0_i32_1 = arith.constant 0 : i32
    %c0_i32_2 = arith.constant 0 : i32
    return %c0_i32, %c0_i32_0, %c0_i32_1 : i32, i32, i32
  }
  func.func @transform_6(%arg0: i32) -> (i32, i32, i32) {
    %c0_i32 = arith.constant 0 : i32
    %c0_i32_0 = arith.constant 0 : i32
    %c0_i32_1 = arith.constant 0 : i32
    %c0_i32_2 = arith.constant 0 : i32
    return %c0_i32, %c0_i32_0, %c0_i32_1 : i32, i32, i32
  }
  func.func @transform_7(%arg0: i32) -> (i32, i32, i32) {
    %c0_i32 = arith.constant 0 : i32
    %c0_i32_0 = arith.constant 0 : i32
    %c0_i32_1 = arith.constant 0 : i32
    %c0_i32_2 = arith.constant 0 : i32
    return %c0_i32, %c0_i32_0, %c0_i32_1 : i32, i32, i32
  }
  func.func @transform_8(%arg0: i32) -> (i32, i32, i32) {
    %c0_i32 = arith.constant 0 : i32
    %c0_i32_0 = arith.constant 0 : i32
    %c0_i32_1 = arith.constant 0 : i32
    %c0_i32_2 = arith.constant 0 : i32
    return %c0_i32, %c0_i32_0, %c0_i32_1 : i32, i32, i32
  }
  func.func @transform_9(%arg0: i32) -> (i32, i32, i32) {
    %c0_i32 = arith.constant 0 : i32
    %c0_i32_0 = arith.constant 0 : i32
    %c0_i32_1 = arith.constant 0 : i32
    %c0_i32_2 = arith.constant 0 : i32
    return %c0_i32, %c0_i32_0, %c0_i32_1 : i32, i32, i32
  }
  func.func @transform_10(%arg0: i32) -> (i32, i32, i32) {
    %c0_i32 = arith.constant 0 : i32
    %c0_i32_0 = arith.constant 0 : i32
    %c0_i32_1 = arith.constant 0 : i32
    %c0_i32_2 = arith.constant 0 : i32
    return %c0_i32, %c0_i32_0, %c0_i32_1 : i32, i32, i32
  }
  func.func @transform_11(%arg0: i32) -> (i32, i32, i32) {
    %c0_i32 = arith.constant 0 : i32
    %c0_i32_0 = arith.constant 0 : i32
    %c0_i32_1 = arith.constant 0 : i32
    %c0_i32_2 = arith.constant 0 : i32
    return %c0_i32, %c0_i32_0, %c0_i32_1 : i32, i32, i32
  }
  func.func @transform_12(%arg0: i32) -> (i32, i32) {
    %c0_i32 = arith.constant 0 : i32
    %c0_i32_0 = arith.constant 0 : i32
    %c0_i32_1 = arith.constant 0 : i32
    return %c0_i32, %c0_i32_0 : i32, i32
  }
  func.func @transform_13(%arg0: i32) -> (i32, i32) {
    %c0_i32 = arith.constant 0 : i32
    %c0_i32_0 = arith.constant 0 : i32
    %c0_i32_1 = arith.constant 0 : i32
    return %c0_i32, %c0_i32_0 : i32, i32
  }
  func.func @transform_14(%arg0: i32) -> (i32, i32) {
    %c0_i32 = arith.constant 0 : i32
    %c0_i32_0 = arith.constant 0 : i32
    %c0_i32_1 = arith.constant 0 : i32
    return %c0_i32, %c0_i32_0 : i32, i32
  }
  func.func @transform_15(%arg0: i32) -> (i32, i32, i32) {
    %c0_i32 = arith.constant 0 : i32
    %c0_i32_0 = arith.constant 0 : i32
    %c0_i32_1 = arith.constant 0 : i32
    return %arg0, %c0_i32, %c0_i32_0 : i32, i32, i32
  }
  func.func @transform_16(%arg0: i32) -> (i32, i32, i32) {
    %c0_i32 = arith.constant 0 : i32
    %c0_i32_0 = arith.constant 0 : i32
    %c0_i32_1 = arith.constant 0 : i32
    return %arg0, %c0_i32, %c0_i32_0 : i32, i32, i32
  }
}

</mosaic_0001>

<bundles_post_ra>
// kernel: tpu_custom_call.1
= control target key start
LH: loop header
LB: loop body
LE: loop exit
PB: predicated region body
PF: predicated region fallthrough
CT: control target
= control target key end

     0   :  { %s5935_s0 = inlined_call_operand.vmem [shape: f32[2,4,128], index: 0, kind: input, shape index: {}]   ;;  %s5936_s1 = inlined_call_operand.vmem [shape: f32[2,1,128], index: 1, kind: input, shape index: {}]   ;;  %s5937_s2 = inlined_call_operand.vmem [shape: f32[32,2], index: 2, kind: input, shape index: {}]   ;;  %s5938_s3 = inlined_call_operand.vmem [shape: f32[32,1], index: 3, kind: input, shape index: {}]   ;;  %s5939_s4 = inlined_call_operand.vmem [shape: f32[3,32,3], index: 4, kind: input, shape index: {}]   ;;  %s5940_s5 = inlined_call_operand.vmem [shape: f32[3,32,1], index: 5, kind: input, shape index: {}]   ;;  %s5941_s6 = inlined_call_operand.vmem [shape: f32[3,32,1], index: 6, kind: input, shape index: {}]   ;;  %s5942_s7 = inlined_call_operand.vmem [shape: f32[3,32,1], index: 7, kind: input, shape index: {}]   ;;  %s5943_s8 = inlined_call_operand.vmem [shape: f32[3,32,32], index: 8, kind: input, shape index: {}]   ;;  %s5944_s9 = inlined_call_operand.vmem [shape: f32[3,32,1], index: 9, kind: input, shape index: {}]   ;;  %s5945_s10 = inlined_call_operand.vmem [shape: f32[3,32,1], index: 10, kind: input, shape index: {}]   ;;  %s5946_s11 = inlined_call_operand.vmem [shape: f32[3,32,1], index: 11, kind: input, shape index: {}]   ;;  %s5947_s12 = inlined_call_operand.vmem [shape: f32[58,32], index: 12, kind: input, shape index: {}]   ;;  %s5948_s13 = inlined_call_operand.vmem [shape: f32[58,1], index: 13, kind: input, shape index: {}]   ;;  %s5949_s14 = inlined_call_operand.vmem [shape: f32[11,10], index: 14, kind: input, shape index: {}]   ;;  %s5950_s15 = inlined_call_operand.hbm [shape: f32[2,4,128], index: 15, kind: output, shape index: {0}]   ;;  %s5951_s16 = inlined_call_operand.hbm [shape: f32[2,2,128], index: 16, kind: output, shape index: {1}]  }
   0x1   :  { %5955 = sst [smem:[#allocation11_spill]] %s5935_s0 }
   0x2   :  { %5956 = sst [smem:[#allocation12_spill]] %s5936_s1 }
   0x3   :  { %5957 = sst [smem:[#allocation13_spill]] %s5937_s2 }
   0x4   :  { %5958 = sst [smem:[#allocation14_spill]] %s5938_s3 }
   0x5   :  { %5959 = sst [smem:[#allocation15_spill]] %s5939_s4 }
   0x6   :  { %5960 = sst [smem:[#allocation16_spill]] %s5940_s5 }
   0x7   :  { %22 = vsyncpa [#allocation3], 0 }
   0x8   :  { %24 = vsyncpa [#allocation3 + $0x1], 0 }
   0x9   :  { %25 = vsyncpa [#allocation5], 0 }
   0xa   :  { %27 = vsyncpa [#allocation5 + $0x1], 0  ;;  %s4670_s21 = smov 0   ;;  %s4672_s22 = smov 0  }
   0xb   :  { %s4674_s23 = smov 0   ;;  %s4676_s24 = smov 0  }
   0xc LB: > { %5961 = sst [smem:[#allocation8_spill]] %s4566_s23  ;;  %s4691_s25 = sadd.s32 4294967295, %s4570_s24   ;;  %s4570_s24 = sphi %s4676_s24, %s5976_s24   ;;  %s4566_s23 = sphi %s4674_s23, %s5978_s23   ;;  %s4562_s22 = sphi %s4672_s22, %s5980_s22   ;;  %s4558_s21 = sphi %s4670_s21, %s5979_s21  }
   0xd   : > { %s3882_s26 = sadd.s32 4294967294, %s4570_s24   ;;  %s4695_s27 = sadd.s32 1, %s4570_s24  }
   0xe   : > { %5962 = sst [smem:[#allocation9_spill]] %s4695_s27  ;;  %s365_s28 = sadd.s32 1, %s4566_s23 }
   0xf   : > { %s362_s29 = ssub.s32 %s4570_s24, %s4695_s27  ;;  %p375_p0 = scmp.ne.s32.totalorder %s4566_s23, %s4562_s22 }
  0x10   : > { %p363_p1 = scmp.eq.s32.totalorder %s362_s29, 0  ;;  %p376_p2 = scmp.eq.s32.totalorder %s4691_s25, 1 }
  0x11   : > { %p381_p3 = scmp.ne.s32.totalorder %s4562_s22, %s4558_s21  ;;  %p382_p4 = scmp.eq.s32.totalorder %s3882_s26, 1 }
  0x12   : > { %s4706_s30 = scalar_select %p363_p1, %s4566_s23, %s365_s28  }
  0x13   : > { %p4708_p5 = por %p376_p2, %p375_p0  ;;  %p4712_p6 = por %p382_p4, %p381_p3 }
  0x14   : > { %5963 = sst [smem:[#allocation10_spill]] %s4706_s30  ;;  %p3885_p7 = scmp.ge.s32.totalorder %s4570_s24, 1 }
  0x15   : > { %p478_p8 = scmp.lt.s32.totalorder %s4570_s24, 3 }
  0x17   : > { %p479_p9 = pnand %p3885_p7, %p478_p8 }
  0x18   : > { %s5966_s3 = sld [smem:[#allocation14_spill]] (!%p479_p9)  ;;  %s5967_s2 = sld [smem:[#allocation13_spill]] (!%p479_p9)  ;;  %v4572_v2 = vmov (!%p479_p9), 0   ;;  %v4573_v6 = vmov (!%p479_p9), 1   ;;  %v4574_v15 = vmov (!%p479_p9), 2   ;;  %v544_v19 = vlaneseq (!%p479_p9)  ;;  %v778_v59 = vld [vmem:[%s5941_s6] sm:$0xff] (!%p479_p9) }
  0x19   : > { %482 = sbr.rel (%p479_p9) target bundleno = 2498 (0x9c2), region = 80  ;;  %4273 = vset.pattern.permute.xlu1 (!%p479_p9), %v4572_v2  ;;  %4272 = vset.pattern.permute.xlu0 (!%p479_p9), %v4572_v2  ;;  %s5968_s4 = sld [smem:[#allocation15_spill]] (!%p479_p9)  ;;  %v783_v60 = vld [vmem:[%s5942_s7 + $0x8] sm:$0xff] (!%p479_p9)  ;;  %v781_v61 = vld [vmem:[%s5941_s6 + $0x18] sm:$0xff] (!%p479_p9)  ;;  %vm1006_vm0 = vcmask (!%p479_p9), 261120  }
  0x1a   : > { %s5969_s5 = sld [smem:[#allocation16_spill]] (!%p479_p9)  ;;  %p535_p10 = scmp.lt.s32.totalorder (!%p479_p9), %s4691_s25, 1  ;;  %v4782_v20 = vshrl.u32 (!%p479_p9), %v544_v19, 7  ;;  %v779_v62 = vld [vmem:[%s5941_s6 + $0x8] sm:$0xff] (!%p479_p9)  ;;  %v785_v63 = vld [vmem:[%s5942_s7 + $0x18] sm:$0xff] (!%p479_p9) }
  0x1b   : > { %s5970_s18 = sld [smem:[#allocation11_spill]] (!%p479_p9)  ;;  %s5971_s1 = sld [smem:[#allocation12_spill]] (!%p479_p9) }
  0x1c   : > { %v602_v21 = vsub.s32 (!%p479_p9), 0, %v4782_v20  ;;  %v630_v26 = vsub.s32 (!%p479_p9), 1, %v4782_v20  ;;  %s4575_s26 = smov (!%p479_p9), 1   ;;  %s4578_s27 = smov (!%p479_p9), 125  }
  0x1d   : > { %s4580_s29 = smov (!%p479_p9), 119   ;;  %s4011_s28 = sshll.u32 (!%p479_p9), %s4691_s25, 6 }
  0x1e   : > { %v556_v0 = vld [vmem:[%s5966_s3] sm:$0xff] (!%p479_p9)  ;;  %v557_v3 = vld [vmem:[%s5966_s3 + $0x8] sm:$0xff] (!%p479_p9)  ;;  %v554_v5 = vld [vmem:[%s5967_s2 + $0x10] sm:$0xff] (!%p479_p9) }
  0x1f   : > { %v552_v1 = vld [vmem:[%s5967_s2] sm:$0xff] (!%p479_p9)  ;;  %562 = vperm.xlu1 (!%p479_p9), %4273, %v556_v0   ;;  %v553_v4 = vld [vmem:[%s5967_s2 + $0x8] sm:$0xff] (!%p479_p9)  ;;  %v558_v7 = vld [vmem:[%s5966_s3 + $0x10] sm:$0xff] (!%p479_p9) }
  0x20   : > { %582 = vperm.xlu0 %4272, %v552_v1   ;;  %v555_v8 = vld [vmem:[%s5967_s2 + $0x18] sm:$0xff]  ;;  %v645_v10 = vld [vmem:[%s5968_s4 + $0x8] sm:$0xff]  ;;  %v644_v11 = vld [vmem:[%s5968_s4] sm:$0xff]  ;;  %s536_s23 = scalar_select %p535_p10, %s4691_s25, 1 }
  0x21   : > { %v559_v9 = vld [vmem:[%s5966_s3 + $0x18] sm:$0xff]  ;;  %v646_v12 = vld [vmem:[%s5968_s4 + $0x10] sm:$0xff]  ;;  %v648_v13 = vld [vmem:[%s5969_s5] sm:$0xff]  ;;  %s4577_s2 = smov 3  }
  0x22   : > { %v649_v14 = vld [vmem:[%s5969_s5 + $0x8] sm:$0xff]  ;;  %v650_v16 = vld [vmem:[%s5969_s5 + $0x10] sm:$0xff]  ;;  %v647_v17 = vld [vmem:[%s5968_s4 + $0x18] sm:$0xff]  ;;  %s3888_s30 = sshll.u32 %s536_s23, 2  ;;  %s4795_s20 = scalar_lea.vmem %s5971_s1, %s536_s23 }
  0x23   : > { %567 = vperm.xlu1 %4273, %v557_v3   ;;  %v651_v18 = vld [vmem:[%s5969_s5 + $0x18] sm:$0xff]  ;;  %s4787_s19 = scalar_lea.vmem %s5970_s18, %s3888_s30  ;;  %v3889_v36 = vld [vmem:[%s4795_s20] ss:$0 sm:$0xff]  ;;  %s4576_s23 = smov 127   ;;  %v780_v3 = vld [vmem:[%s5941_s6 + $0x10] sm:$0xff] }
  0x24   : > { %587 = vperm.xlu0 %4272, %v553_v4   ;;  %v542_v22 = vld [vmem:[%s4787_s19] sm:$0xf] }
  0x25   : > { %v603_v25 = vrot.slane %v542_v22, %v602_v21  ;;  %v631_v30 = vrot.slane %v542_v22, %v630_v26  ;;  %v782_v0 = vld [vmem:[%s5942_s7] sm:$0xff] }
  0x26   : > { %v3898_v22 = vld [vmem:[%s5969_s5 + $0x20] sm:$0xff] }
  0x27   : > { %4274 = vset.pattern.permute.xlu1 %v4573_v6 }
  0x28   : > { %592 = vperm.xlu0 %4272, %v554_v5   ;;  %613 = vperm.xlu1 %4274, %v552_v1   ;;  %v983_v1 = vld [vmem:[%s5944_s9 + $0x8] sm:$0xff] }
  0x2c   : > { %4275 = vset.pattern.permute.xlu0 %v4573_v6  ;;  %4276 = vset.pattern.permute.xlu1 %v4572_v2 }
  0x2d   : > { %617 = vperm.xlu0 %4275, %v553_v4   ;;  %572 = vperm.xlu1 %4276, %v558_v7   ;;  %v985_v4 = vld [vmem:[%s5944_s9 + $0x18] sm:$0xff]  ;;  %v1105_v7 = vld [vmem:[%s5945_s10 + $0x8] sm:$0xff] }
  0x31   : > { %621 = vperm.xlu0 %4275, %v554_v5   ;;  %597 = vperm.xlu1 %4276, %v555_v8   ;;  %v784_v5 = vld [vmem:[%s5942_s7 + $0x10] sm:$0xff] }
  0x35   : > { %625 = vperm.xlu0 %4275, %v555_v8   ;;  %577 = vperm.xlu1 %4276, %v559_v9   ;;  %v982_v8 = vld [vmem:[%s5944_s9] sm:$0xff] }
  0x36   : > { %v1108_v9 = vld [vmem:[%s5946_s11] sm:$0xff] }
  0x39   : > { %720 = vperm.xlu0 %4275, %v645_v10   ;;  %689 = vperm.xlu1 %4276, %v644_v11  }
  0x3d   : > { %724 = vperm.xlu0 %4275, %v646_v12   ;;  %654 = vperm.xlu1 %4276, %v648_v13   ;;  %v1111_v13 = vld [vmem:[%s5946_s11 + $0x18] sm:$0xff] }
  0x41   : > { %4280 = vset.pattern.permute.xlu0 %v4574_v15  ;;  %659 = vperm.xlu1 %4276, %v649_v14   ;;  %v1106_v14 = vld [vmem:[%s5945_s10 + $0x10] sm:$0xff] }
  0x42   : > { %759 = vperm.xlu0 %4280, %v645_v10  }
  0x45   : > { %4277 = vset.pattern.permute.xlu1 %v4573_v6 }
  0x46   : > { %763 = vperm.xlu0 %4280, %v646_v12   ;;  %716 = vperm.xlu1 %4277, %v644_v11  }
  0x4a   : > { %767 = vperm.xlu0 %4280, %v647_v17   ;;  %4278 = vset.pattern.permute.xlu1 %v4572_v2 }
  0x4b   : > { %664 = vperm.xlu1 %4278, %v650_v16   ;;  %v1109_v16 = vld [vmem:[%s5946_s11 + $0x8] sm:$0xff] }
  0x4e   : > { %4283 = vset.pattern.permute.xlu0 %v4572_v2 }
  0x4f   : > { %694 = vperm.xlu0 %4283, %v645_v10   ;;  %704 = vperm.xlu1 %4278, %v647_v17   ;;  %v984_v10 = vld [vmem:[%s5944_s9 + $0x10] sm:$0xff] }
  0x53   : > { %699 = vperm.xlu0 %4283, %v646_v12   ;;  %4279 = vset.pattern.permute.xlu1 %v4574_v15  ;;  %v1104_v12 = vld [vmem:[%s5945_s10] sm:$0xff] }
  0x54   : > { %755 = vperm.xlu1 %4279, %v644_v11   ;;  %v1107_v11 = vld [vmem:[%s5945_s10 + $0x18] sm:$0xff] }
  0x58   : > { %4281 = vset.pattern.permute.xlu1 %v4572_v2 }
  0x59   : > { %669 = vperm.xlu1 %4281, %v651_v18   ;;  %v1110_v18 = vld [vmem:[%s5946_s11 + $0x10] sm:$0xff] }
  0x5d   : > { %4282 = vset.pattern.permute.xlu1 %v4573_v6 }
  0x5e   : > { %728 = vperm.xlu1 %4282, %v647_v17   ;;  %v4886_v17 = vld [vmem:[%s5968_s4 + $0x20] sm:$0xff] }
  0x62   : > { %4284 = vset.pattern.permute.xlu1 %v4572_v2 }
  0x9e   : > { %v563_v23 = vpop.permute.xlu1 %562 }
  0x9f   : > { %v583_v24 = vpop.permute.xlu0 %582 }
  0xa0   : > { %v604_v29 = vmul.f32 %v603_v25, %v583_v24 }
  0xa2   : > { %v568_v27 = vpop.permute.xlu1 %567  ;;  %v608_v33 = vadd.f32 %v604_v29, %v563_v23  ;;  %v3896_v23 = vld [vmem:[%s5968_s4 + $0x30] sm:$0xff] }
  0xa3   : > { %v588_v28 = vpop.permute.xlu0 %587 }
  0xa4   : > { %v605_v34 = vmul.f32 %v603_v25, %v588_v28 }
  0xa6   : > { %v609_v39 = vadd.f32 %v605_v34, %v568_v27 }
  0xa7   : > { %v593_v31 = vpop.permute.xlu0 %592  ;;  %v614_v32 = vpop.permute.xlu1 %613 }
  0xa8   : > { %v632_v35 = vmul.f32 %v631_v30, %v614_v32  ;;  %v606_v43 = vmul.f32 %v603_v25, %v593_v31 }
  0xaa   : > { %v4798_v37 = vadd.f32 %v632_v35, %v608_v33 }
  0xac   : > { %v618_v38 = vpop.permute.xlu0 %617  ;;  %v573_v41 = vpop.permute.xlu1 %572  ;;  %v4801_v42 = vmul.f32 %v3889_v36, %v4798_v37 }
  0xad   : > { %v633_v40 = vmul.f32 %v631_v30, %v618_v38  ;;  %v610_v46 = vadd.f32 %v606_v43, %v573_v41  ;;  %v978_v38 = vld [vmem:[%s5943_s8] sm:$0xff]  ;;  %v4908_v41 = vand.u32 127, %v544_v19  ;;  %v3900_v19 = vld [vmem:[%s5969_s5 + $0x30] sm:$0xff] }
  0xae   : > { %672 = vrot.lane.b32.xlu1 %v4801_v42, %s4575_s26  ;;  %4075 = vmatprep.mubr.msk.f32.mxu0 %vm1006_vm0, %v978_v38 }
  0xaf   : > { %v4803_v44 = vadd.f32 %v633_v40, %v609_v39  ;;  %vm680_vm1 = vcmp.ge.s32.totalorder %v4908_v41, 1  ;;  %vm747_vm2 = vcmp.lt.s32.totalorder %v4908_v41, 127  ;;  %vm1350_vm11 = vcmp.ge.s32.totalorder %v4908_v41, 3 }
  0xb0   : > { %v622_v45 = vpop.permute.xlu0 %621  ;;  %v598_v48 = vpop.permute.xlu1 %597  ;;  %vm1417_vm12 = vcmp.lt.s32.totalorder %v4908_v41, 125 }
  0xb1   : > { %v634_v47 = vmul.f32 %v631_v30, %v622_v45  ;;  %v4807_v49 = vmul.f32 %v3889_v36, %v4803_v44  ;;  %v607_v51 = vmul.f32 %v603_v25, %v598_v48 }
  0xb3   : > { %v4809_v50 = vadd.f32 %v634_v47, %v610_v46  ;;  %674 = vrot.lane.b32.xlu0 %v4807_v49, %s4575_s26  ;;  %v3895_v46 = vld [vmem:[%s5968_s4 + $0x28] sm:$0xff] }
  0xb4   : > { %v626_v52 = vpop.permute.xlu0 %625  ;;  %v578_v54 = vpop.permute.xlu1 %577 }
  0xb5   : > { %v635_v53 = vmul.f32 %v631_v30, %v626_v52  ;;  %v4813_v55 = vmul.f32 %v3889_v36, %v4809_v50  ;;  %v611_v56 = vadd.f32 %v607_v51, %v578_v54 }
  0xb7   : > { %739 = vrot.lane.b32.xlu0 %v4801_v42, %s4576_s23  ;;  %676 = vrot.lane.b32.xlu1 %v4813_v55, %s4575_s26  ;;  %v4817_v57 = vadd.f32 %v635_v53, %v611_v56 }
  0xb8   : > { %v690_v21 = vpop.permute.xlu1 %689  ;;  %v721_v26 = vpop.permute.xlu0 %720 }
  0xb9   : > { %v4820_v58 = vmul.f32 %v3889_v36, %v4817_v57 }
  0xbb   : > { %743 = vrot.lane.b32.xlu0 %v4813_v55, %s4576_s23  ;;  %678 = vrot.lane.b32.xlu1 %v4820_v58, %s4575_s26 }
  0xbc   : > { %v655_v24 = vpop.permute.xlu1 %654  ;;  %v725_v28 = vpop.permute.xlu0 %724 }
  0xbf   : > { %824 = vperm.xlu0 %4283, %v778_v59   ;;  %741 = vrot.lane.b32.xlu1 %v4807_v49, %s4576_s23 }
  0xc0   : > { %v660_v25 = vpop.permute.xlu1 %659 }
  0xc1   : > { %v760_v30 = vpop.permute.xlu0 %759 }
  0xc3   : > { %853 = vperm.xlu0 %4283, %v783_v60   ;;  %745 = vrot.lane.b32.xlu1 %v4820_v58, %s4576_s23  ;;  %s4012_s23 = sshll.u32 %s4691_s25, 5 }
  0xc5   : > { %v717_v27 = vpop.permute.xlu1 %716  ;;  %v764_v32 = vpop.permute.xlu0 %763 }
  0xc7   : > { %839 = vperm.xlu0 %4283, %v781_v61   ;;  %829 = vperm.xlu1 %4284, %v779_v62  }
  0xc9   : > { %v4902_v34 = vpop.permute.xlu0 %767 }
  0xca   : > { %v665_v29 = vpop.permute.xlu1 %664 }
  0xcb   : > { %863 = vperm.xlu0 %4283, %v785_v63   ;;  %848 = vperm.xlu1 %4284, %v782_v0   ;;  %v4931_v63 = vld [vmem:[%s5968_s4 + $0x38] sm:$0xff] }
  0xce   : > { %v705_v31 = vpop.permute.xlu1 %704  ;;  %v695_v36 = vpop.permute.xlu0 %694 }
  0xcf   : > { %993 = vperm.xlu0 %4283, %v983_v1   ;;  %834 = vperm.xlu1 %4284, %v780_v3   ;;  %v731_v3 = vmul.f32 %v717_v27, %v4801_v42 }
  0xd2   : > { %v700_v40 = vpop.permute.xlu0 %699 }
  0xd3   : > { %1003 = vperm.xlu0 %4283, %v985_v4   ;;  %858 = vperm.xlu1 %4284, %v784_v5   ;;  %v756_v33 = vpop.permute.xlu1 %755 }
  0xd7   : > { %1155 = vperm.xlu0 %4283, %v1105_v7   ;;  %988 = vperm.xlu1 %4284, %v982_v8   ;;  %v733_v8 = vmul.f32 %v725_v28, %v4813_v55  ;;  %v3901_v28 = vld [vmem:[%s5969_s5 + $0x38] sm:$0xff] }
  0xd8   : > { %v670_v35 = vpop.permute.xlu1 %669 }
  0xdb   : > { %1174 = vperm.xlu0 %4283, %v1108_v9   ;;  %998 = vperm.xlu1 %4284, %v984_v10  }
  0xdd   : > { %v729_v39 = vpop.permute.xlu1 %728 }
  0xde   : > { %v734_v55 = vmul.f32 %v729_v39, %v4820_v58 }
  0xdf   : > { %1165 = vperm.xlu0 %4283, %v1107_v11   ;;  %1150 = vperm.xlu1 %4284, %v1104_v12   ;;  %v732_v12 = vmul.f32 %v721_v26, %v4807_v49 }
  0xe3   : > { %1189 = vperm.xlu0 %4283, %v1111_v13   ;;  %1160 = vperm.xlu1 %4284, %v1106_v14  }
  0xe7   : > { %4285 = vset.pattern.permute.xlu0 %v4573_v6  ;;  %1179 = vperm.xlu1 %4284, %v1109_v16  }
  0xe8   : > { %1386 = vperm.xlu0 %4285, %v4886_v17  }
  0xeb   : > { %1184 = vperm.xlu1 %4284, %v1110_v18  }
  0xec   : > { %4290 = vset.pattern.permute.xlu0 %v4574_v15 }
  0xed   : > { %1429 = vperm.xlu0 %4290, %v3895_v46  }
  0xef   : > { %1359 = vperm.xlu1 %4284, %v4886_v17  }
  0xf1   : > { %1433 = vperm.xlu0 %4290, %v3896_v23  }
  0xf3   : > { %1324 = vperm.xlu1 %4284, %v3898_v22  }
  0xf5   : > { %1437 = vperm.xlu0 %4290, %v4931_v63  }
  0xf7   : > { %1369 = vperm.xlu1 %4284, %v3896_v23  }
  0xf9   : > { %4293 = vset.pattern.permute.xlu0 %v4572_v2 }
  0xfa   : > { %1364 = vperm.xlu0 %4293, %v3895_v46  }
  0xfb   : > { %4286 = vset.pattern.permute.xlu1 %v4573_v6 }
  0xfc   : > { %1390 = vperm.xlu1 %4286, %v3895_v46  }
 0x100   : > { %4287 = vset.pattern.permute.xlu1 %v4572_v2 }
 0x101   : > { %1334 = vperm.xlu1 %4287, %v3900_v19  }
 0x105   : > { %4288 = vset.pattern.permute.xlu1 %v4573_v6 }
 0x106   : > { %1394 = vperm.xlu1 %4288, %v3896_v23  }
 0x10a   : > { %4289 = vset.pattern.permute.xlu1 %v4574_v15 }
 0x10b   : > { %1425 = vperm.xlu1 %4289, %v4886_v17  }
 0x10f   : > { %4291 = vset.pattern.permute.xlu1 %v4572_v2 }
 0x110   : > { %1339 = vperm.xlu1 %4291, %v3901_v28  }
 0x114   : > { %4292 = vset.pattern.permute.xlu1 %v4573_v6 }
 0x115   : > { %1398 = vperm.xlu1 %4292, %v4931_v63  }
 0x119   : > { %4294 = vset.pattern.permute.xlu1 %v4572_v2 }
 0x120   : > { %v673_v43 = vpop.permute.xlu1 %672 }
 0x121   : > { %v683_v47 = vsel %vm680_vm1, %v673_v43, 0.0 }
 0x122   : > { %v707_v48 = vmul.f32 %v690_v21, %v683_v47 }
 0x124   : > { %v711_v61 = vadd.f32 %v707_v48, %v655_v24 }
 0x125   : > { %v675_v45 = vpop.permute.xlu0 %674 }
 0x126   : > { %v684_v51 = vsel %vm680_vm1, %v675_v45, 0.0  ;;  %v735_v11 = vadd.f32 %v731_v3, %v711_v61 }
 0x127   : > { %v708_v59 = vmul.f32 %v695_v36, %v684_v51 }
 0x129   : > { %v740_v52 = vpop.permute.xlu0 %739  ;;  %v677_v53 = vpop.permute.xlu1 %676  ;;  %v712_v9 = vadd.f32 %v708_v59, %v660_v25 }
 0x12a   : > { %v685_v54 = vsel %vm680_vm1, %v677_v53, 0.0  ;;  %v750_v60 = vsel %vm747_vm2, %v740_v52, 0.0 }
 0x12b   : > { %v709_v56 = vmul.f32 %v700_v40, %v685_v54  ;;  %v770_v4 = vmul.f32 %v756_v33, %v750_v60  ;;  %v736_v22 = vadd.f32 %v732_v12, %v712_v9 }
 0x12d   : > { %v744_v62 = vpop.permute.xlu0 %743  ;;  %v713_v0 = vadd.f32 %v709_v56, %v665_v29  ;;  %v679_v1 = vpop.permute.xlu1 %678  ;;  %v774_v16 = vadd.f32 %v770_v4, %v735_v11 }
 0x12e   : > { %v752_v5 = vsel %vm747_vm2, %v744_v62, 0.0  ;;  %v686_v7 = vsel %vm680_vm1, %v679_v1, 0.0 }
 0x12f   : > { %v710_v10 = vmul.f32 %v705_v31, %v686_v7  ;;  %v737_v13 = vadd.f32 %v733_v8, %v713_v0  ;;  %v772_v14 = vmul.f32 %v764_v32, %v752_v5  ;;  %v795_v26 = vmul.f32 %v774_v16, %v774_v16 }
 0x131   : > { %v742_v42 = vpop.permute.xlu1 %741  ;;  %v714_v21 = vadd.f32 %v710_v10, %v670_v35  ;;  %v776_v49 = vadd.f32 %v772_v14, %v737_v13 }
 0x132   : > { %v751_v18 = vsel %vm747_vm2, %v742_v42, 0.0 }
 0x133   : > { %v771_v24 = vmul.f32 %v760_v30, %v751_v18  ;;  %v738_v30 = vadd.f32 %v734_v55, %v714_v21  ;;  %v797_v17 = vmul.f32 %v776_v49, %v776_v49 }
 0x135   : > { %v775_v23 = vadd.f32 %v771_v24, %v736_v22  ;;  %v746_v25 = vpop.permute.xlu1 %745 }
 0x136   : > { %v753_v27 = vsel %vm747_vm2, %v746_v25, 0.0 }
 0x137   : > { %v786_v29 = vadd.f32 %v775_v23, %v774_v16  ;;  %v796_v31 = vmul.f32 %v775_v23, %v775_v23  ;;  %v773_v32 = vmul.f32 %v4902_v34, %v753_v27 }
 0x139   : > { %v799_v58 = vadd.f32 %v796_v31, %v795_v26  ;;  %v777_v33 = vadd.f32 %v773_v32, %v738_v30  ;;  %v787_v35 = vadd.f32 %v786_v29, %v776_v49 }
 0x13b   : > { %v788_v36 = vadd.f32 %v787_v35, %v777_v33  ;;  %v798_v38 = vmul.f32 %v777_v33, %v777_v33  ;;  %v800_v39 = vadd.f32 %v799_v58, %v797_v17 }
 0x13d   : > { %v789_v40 = vrot.slane %v788_v36, 4  ;;  %v801_v43 = vadd.f32 %v800_v39, %v798_v38 }
 0x13e   : > { %v825_v5 = vpop.permute.xlu0 %824 }
 0x13f   : > { %v790_v45 = vadd.f32 %v789_v40, %v788_v36  ;;  %v802_v46 = vrot.slane %v801_v43, 4 }
 0x141   : > { %v791_v47 = vrot.slane %v790_v45, 2  ;;  %v803_v34 = vadd.f32 %v802_v46, %v801_v43 }
 0x142   : > { %v854_v9 = vpop.permute.xlu0 %853 }
 0x143   : > { %v792_v19 = vadd.f32 %v791_v47, %v790_v45  ;;  %v804_v48 = vrot.slane %v803_v34, 2 }
 0x145   : > { %v793_v51 = vrot.slane %v792_v19, 1  ;;  %v805_v52 = vadd.f32 %v804_v48, %v803_v34 }
 0x146   : > { %v830_v7 = vpop.permute.xlu1 %829  ;;  %v840_v11 = vpop.permute.xlu0 %839 }
 0x147   : > { %v794_v53 = vadd.f32 %v793_v51, %v792_v19  ;;  %v806_v54 = vrot.slane %v805_v52, 1 }
 0x149   : > { %v807_v56 = vadd.f32 %v806_v54, %v805_v52  ;;  %v808_v59 = vmul.f32 0.03125, %v794_v53 }
 0x14a   : > { %v849_v10 = vpop.permute.xlu1 %848 }
 0x14b   : > { %v809_v60 = vmul.f32 0.03125, %v807_v56  ;;  %v810_v61 = vmul.f32 %v808_v59, %v808_v59  ;;  %v812_v62 = vsub.f32 %v774_v16, %v808_v59  ;;  %v815_v0 = vsub.f32 %v777_v33, %v808_v59 }
 0x14c   : > { %v813_v1 = vsub.f32 %v775_v23, %v808_v59  ;;  %v814_v3 = vsub.f32 %v776_v49, %v808_v59  ;;  %v864_v23 = vpop.permute.xlu0 %863 }
 0x14d   : > { %v811_v4 = vsub.f32 %v809_v60, %v810_v61 }
 0x14e   : > { %v835_v12 = vpop.permute.xlu1 %834 }
 0x14f   : > { %v816_v8 = vadd.f32 1e-05, %v811_v4 }
 0x151   : > { %4305 = vrsqrt.f32 %v816_v8 }
 0x152   : > { %v859_v49 = vpop.permute.xlu1 %858 }
 0x15b   : > { %v4306_v13 = vpop.eup %4305 }
 0x15c   : > { %v818_v14 = vmul.f32 %v4306_v13, %v812_v62  ;;  %v821_v42 = vmul.f32 %v4306_v13, %v815_v0  ;;  %v819_v18 = vmul.f32 %v4306_v13, %v813_v1  ;;  %v820_v21 = vmul.f32 %v4306_v13, %v814_v3 }
 0x15e   : > { %v842_v22 = vmul.f32 %v825_v5, %v818_v14  ;;  %v845_v24 = vmul.f32 %v840_v11, %v821_v42  ;;  %v843_v16 = vmul.f32 %v830_v7, %v819_v18  ;;  %v844_v55 = vmul.f32 %v835_v12, %v820_v21 }
 0x160   : > { %v4958_v25 = vadd.f32 %v854_v9, %v843_v16  ;;  %v4960_v26 = vadd.f32 %v864_v23, %v845_v24  ;;  %v4962_v27 = vadd.f32 %v849_v10, %v842_v22  ;;  %v4964_v28 = vadd.f32 %v859_v49, %v844_v55 }
 0x162   : > { %v4967_v29 = vmul.f32 0.70710677, %v4958_v25  ;;  %v4970_v31 = vmul.f32 0.70710677, %v4960_v26  ;;  %v4973_v30 = vmul.f32 0.70710677, %v4962_v27 }
 0x163   : > { %v4976_v32 = vmul.f32 0.70710677, %v4964_v28 }
 0x164   : > { %v879_v17 = vand.u32 2147483647, %v4967_v29  ;;  %v881_v58 = vand.u32 2147483647, %v4970_v31  ;;  %v878_v33 = vand.u32 2147483647, %v4973_v30 }
 0x165   : > { %v880_v35 = vand.u32 2147483647, %v4976_v32  ;;  %vm959_vm3 = vcmp.ge.f32.partialorder %v4967_v29, 0.0  ;;  %vm961_vm4 = vcmp.ge.f32.partialorder %v4970_v31, 0.0  ;;  %vm958_vm5 = vcmp.ge.f32.partialorder %v4973_v30, 0.0 }
 0x166   : > { %v883_v36 = vmul.f32 0.3275911, %v879_v17  ;;  %v885_v38 = vmul.f32 0.3275911, %v881_v58  ;;  %v882_v39 = vmul.f32 0.3275911, %v878_v33 }
 0x167   : > { %v884_v45 = vmul.f32 0.3275911, %v880_v35  ;;  %v935_v34 = vsub.f32 0.0, %v879_v17  ;;  %v937_v19 = vsub.f32 0.0, %v881_v58  ;;  %v934_v52 = vsub.f32 0.0, %v878_v33 }
 0x168   : > { %v887_v40 = vadd.f32 1.0, %v883_v36  ;;  %v889_v43 = vadd.f32 1.0, %v885_v38  ;;  %v886_v46 = vadd.f32 1.0, %v882_v39  ;;  %v936_v60 = vsub.f32 0.0, %v880_v35 }
 0x169   : > { %v888_v47 = vadd.f32 1.0, %v884_v45  ;;  %v939_v51 = vmul.f32 %v935_v34, %v879_v17  ;;  %v941_v54 = vmul.f32 %v937_v19, %v881_v58  ;;  %v938_v3 = vmul.f32 %v934_v52, %v878_v33 }
 0x16a   : > { %4307 = vrcp.f32 %v887_v40  ;;  %v940_v10 = vmul.f32 %v936_v60, %v880_v35  ;;  %v870_v29 = vmul.f32 0.5, %v4962_v27  ;;  %vm960_vm6 = vcmp.ge.f32.partialorder %v4976_v32, 0.0  ;;  %v980_v27 = vld [vmem:[%s5943_s8 + $0x10] sm:$0xff]  ;;  %v3899_v32 = vld [vmem:[%s5969_s5 + $0x28] sm:$0xff] }
 0x16b   : > { %4309 = vrcp.f32 %v889_v43  ;;  %v944_v0 = vmul.f32 1.442695, %v939_v51  ;;  %v948_v4 = vmul.f32 1.442695, %v941_v54  ;;  %v942_v42 = vmul.f32 1.442695, %v938_v3  ;;  %1329 = vperm.xlu0 %4293, %v3899_v32  }
 0x16c   : > { %4311 = vrcp.f32 %v886_v46  ;;  %v946_v16 = vmul.f32 1.442695, %v940_v10 }
 0x16d   : > { %4313 = vrcp.f32 %v888_v47 }
 0x16e   : > { %4315 = vpow2.f32 %v944_v0 }
 0x16f   : > { %4317 = vpow2.f32 %v948_v4  ;;  %1374 = vperm.xlu0 %4293, %v4931_v63  }
 0x170   : > { %4319 = vpow2.f32 %v942_v42 }
 0x171   : > { %4321 = vpow2.f32 %v946_v16 }
 0x174   : > { %v4308_v48 = vpop.eup %4307 }
 0x175   : > { %v4310_v53 = vpop.eup %4309  ;;  %v899_v56 = vmul.f32 1.0614054, %v4308_v48 }
 0x176   : > { %v901_v59 = vmul.f32 1.0614054, %v4310_v53  ;;  %v4312_v62 = vpop.eup %4311 }
 0x177   : > { %v903_v61 = vadd.f32 -1.4531521, %v899_v56  ;;  %v898_v5 = vmul.f32 1.0614054, %v4312_v62  ;;  %v4314_v8 = vpop.eup %4313 }
 0x178   : > { %v905_v1 = vadd.f32 -1.4531521, %v901_v59  ;;  %v900_v11 = vmul.f32 1.0614054, %v4314_v8  ;;  %v4316_v34 = vpop.eup %4315 }
 0x179   : > { %v907_v7 = vmul.f32 %v4308_v48, %v903_v61  ;;  %v902_v12 = vadd.f32 -1.4531521, %v898_v5  ;;  %v4318_v51 = vpop.eup %4317 }
 0x17a   : > { %v909_v9 = vmul.f32 %v4310_v53, %v905_v1  ;;  %v904_v18 = vadd.f32 -1.4531521, %v900_v11  ;;  %v4320_v1 = vpop.eup %4319 }
 0x17b   : > { %v911_v13 = vadd.f32 1.4214138, %v907_v7  ;;  %v906_v21 = vmul.f32 %v4312_v62, %v902_v12 }
 0x17c   : > { %v913_v14 = vadd.f32 1.4214138, %v909_v9  ;;  %v908_v55 = vmul.f32 %v4314_v8, %v904_v18  ;;  %v4322_v9 = vpop.eup %4321  ;;  %v873_v18 = vmul.f32 0.5, %v4960_v26  ;;  %v979_v26 = vld [vmem:[%s5943_s8 + $0x8] sm:$0xff] }
 0x17d   : > { %v915_v22 = vmul.f32 %v4308_v48, %v911_v13  ;;  %v910_v23 = vadd.f32 1.4214138, %v906_v21 }
 0x17e   : > { %v917_v24 = vmul.f32 %v4310_v53, %v913_v14  ;;  %v912_v58 = vadd.f32 1.4214138, %v908_v55 }
 0x17f   : > { %v919_v49 = vadd.f32 -0.28449672, %v915_v22  ;;  %v914_v33 = vmul.f32 %v4312_v62, %v910_v23  ;;  %v872_v23 = vmul.f32 0.5, %v4964_v28  ;;  %v981_v28 = vld [vmem:[%s5943_s8 + $0x18] sm:$0xff] }
 0x180   : > { %v921_v17 = vadd.f32 -0.28449672, %v917_v24  ;;  %v916_v38 = vmul.f32 %v4314_v8, %v912_v58 }
 0x181   : > { %v923_v35 = vmul.f32 %v4308_v48, %v919_v49  ;;  %v918_v39 = vadd.f32 -0.28449672, %v914_v33  ;;  %v994_v33 = vpop.permute.xlu0 %993 }
 0x182   : > { %v925_v36 = vmul.f32 %v4310_v53, %v921_v17  ;;  %v920_v45 = vadd.f32 -0.28449672, %v916_v38 }
 0x183   : > { %v927_v40 = vadd.f32 0.2548296, %v923_v35  ;;  %v922_v46 = vmul.f32 %v4312_v62, %v918_v39  ;;  %v989_v35 = vpop.permute.xlu1 %988 }
 0x184   : > { %v929_v43 = vadd.f32 0.2548296, %v925_v36  ;;  %v924_v52 = vmul.f32 %v4314_v8, %v920_v45 }
 0x185   : > { %v931_v47 = vmul.f32 %v4308_v48, %v927_v40  ;;  %v926_v54 = vadd.f32 0.2548296, %v922_v46  ;;  %v1004_v45 = vpop.permute.xlu0 %1003 }
 0x186   : > { %v933_v19 = vmul.f32 %v4310_v53, %v929_v43  ;;  %v928_v60 = vadd.f32 0.2548296, %v924_v52 }
 0x187   : > { %v951_v56 = vmul.f32 %v4316_v34, %v931_v47  ;;  %v930_v61 = vmul.f32 %v4312_v62, %v926_v54 }
 0x188   : > { %v953_v59 = vmul.f32 %v4318_v51, %v933_v19  ;;  %v932_v4 = vmul.f32 %v4314_v8, %v928_v60  ;;  %v871_v8 = vmul.f32 0.5, %v4958_v25  ;;  %v999_v19 = vpop.permute.xlu1 %998 }
 0x189   : > { %v955_v0 = vsub.f32 1.0, %v951_v56  ;;  %v950_v5 = vmul.f32 %v4320_v1, %v930_v61 }
 0x18a   : > { %v957_v3 = vsub.f32 1.0, %v953_v59  ;;  %v952_v48 = vmul.f32 %v4322_v9, %v932_v4 }
 0x18b   : > { %v963_v7 = vsub.f32 0.0, %v955_v0  ;;  %v954_v53 = vsub.f32 1.0, %v950_v5 }
 0x18c   : > { %v965_v10 = vsub.f32 0.0, %v957_v3  ;;  %v956_v14 = vsub.f32 1.0, %v952_v48 }
 0x18d   : > { %v967_v11 = vsel %vm959_vm3, %v955_v0, %v963_v7  ;;  %v962_v42 = vsub.f32 0.0, %v954_v53 }
 0x18e   : > { %v969_v12 = vsel %vm961_vm4, %v957_v3, %v965_v10  ;;  %v971_v13 = vadd.f32 1.0, %v967_v11  ;;  %v964_v21 = vsub.f32 0.0, %v956_v14 }
 0x18f   : > { %v973_v62 = vadd.f32 1.0, %v969_v12  ;;  %v966_v22 = vsel %vm958_vm5, %v954_v53, %v962_v42 }
 0x190   : > { %v970_v31 = vadd.f32 1.0, %v966_v22  ;;  %v975_v24 = vmul.f32 %v971_v13, %v871_v8  ;;  %v968_v16 = vsel %vm960_vm6, %v956_v14, %v964_v21  ;;  %vm2025_vm6 = vcmp.ge.s32.totalorder %v4908_v41, 9 }
 0x191   : > { %v977_v55 = vmul.f32 %v973_v62, %v873_v18  ;;  %v972_v49 = vadd.f32 1.0, %v968_v16 }
 0x192   : > { %v974_v17 = vmul.f32 %v970_v31, %v870_v29  ;;  %v1156_v31 = vpop.permute.xlu0 %1155 }
 0x193   : > { %v976_v58 = vmul.f32 %v972_v49, %v872_v23 }
 0x194   : > { %v4157_v30 = vpack.c.bf16 %v975_v24, %v974_v17  ;;  %v1151_v24 = vpop.permute.xlu1 %1150 }
 0x195   : > { %v4161_v25 = vpack.c.bf16 %v977_v55, %v976_v58 }
 0x196   : > { %4158 = vmatprep.subr.bf16.mxu0 %v4157_v30  ;;  %v1175_v23 = vpop.permute.xlu0 %1174 }
 0x197   : > { %4160 = vmatpush3.bf16.msra.mxu0 %v4157_v30 }
 0x198   : > { %4162 = vmatprep.subr.bf16.mxu0 %v4161_v25  ;;  %v1161_v49 = vpop.permute.xlu1 %1160 }
 0x19a   : > { %v1166_v17 = vpop.permute.xlu0 %1165 }
 0x19b   : > { %4164 = vmatpush3.bf16.msra.mxu0 %v4161_v25 }
 0x19c   : > { %v1180_v58 = vpop.permute.xlu1 %1179 }
 0x19e   : > { %4076 = vmatmul.mubr.msk.f32.vlgmr.msra.gmra.mrb[0].mxu0 %vm1006_vm0, %v979_v26 }
 0x19f   : > { %4078 = vmatprep.mubr.msk.f32.mxu0 %vm1006_vm0, %v980_v27 }
 0x1a2   : > { %4079 = vmatmul.mubr.msk.f32.gmra.mrb[2].mxu0 %vm1006_vm0, %v981_v28 }
 0x271   : > { %v4077_v36 = vpop.f32.mrb[0].mxu0 }
 0x272   : > { %v1091_v38 = vadd.f32 %v4077_v36, %v994_v33  ;;  %v1085_v39 = vpop.f32.mrb[1].mxu0 }
 0x273   : > { %v1086_v40 = vadd.f32 %v1085_v39, %v989_v35  ;;  %v1185_v39 = vpop.permute.xlu1 %1184 }
 0x274   : > { %v1122_v43 = vmul.f32 %v1091_v38, %v1091_v38 }
 0x275   : > { %v1112_v46 = vadd.f32 %v1091_v38, %v1086_v40  ;;  %v1121_v47 = vmul.f32 %v1086_v40, %v1086_v40  ;;  %v4080_v34 = vpop.f32.mrb[2].mxu0 }
 0x276   : > { %v1095_v51 = vpop.f32.mrb[3].mxu0  ;;  %v1101_v54 = vadd.f32 %v4080_v34, %v1004_v45 }
 0x277   : > { %v1125_v52 = vadd.f32 %v1122_v43, %v1121_v47  ;;  %v1096_v56 = vadd.f32 %v1095_v51, %v999_v19 }
 0x278   : > { %v1124_v61 = vmul.f32 %v1101_v54, %v1101_v54 }
 0x279   : > { %v1113_v59 = vadd.f32 %v1112_v46, %v1096_v56  ;;  %v1123_v60 = vmul.f32 %v1096_v56, %v1096_v56 }
 0x27b   : > { %v1114_v63 = vadd.f32 %v1113_v59, %v1101_v54  ;;  %v1126_v0 = vadd.f32 %v1125_v52, %v1123_v60 }
 0x27d   : > { %v1115_v1 = vrot.slane %v1114_v63, 4  ;;  %v1127_v3 = vadd.f32 %v1126_v0, %v1124_v61 }
 0x27f   : > { %v1116_v4 = vadd.f32 %v1115_v1, %v1114_v63  ;;  %v1128_v5 = vrot.slane %v1127_v3, 4 }
 0x281   : > { %v1117_v7 = vrot.slane %v1116_v4, 2  ;;  %v1129_v9 = vadd.f32 %v1128_v5, %v1127_v3 }
 0x283   : > { %v1118_v10 = vadd.f32 %v1117_v7, %v1116_v4  ;;  %v1130_v48 = vrot.slane %v1129_v9, 2 }
 0x285   : > { %v1119_v53 = vrot.slane %v1118_v10, 1  ;;  %v1131_v11 = vadd.f32 %v1130_v48, %v1129_v9 }
 0x287   : > { %v1120_v12 = vadd.f32 %v1119_v53, %v1118_v10  ;;  %v1132_v13 = vrot.slane %v1131_v11, 1 }
 0x289   : > { %v1133_v14 = vadd.f32 %v1132_v13, %v1131_v11  ;;  %v1134_v42 = vmul.f32 0.03125, %v1120_v12 }
 0x28b   : > { %v1135_v62 = vmul.f32 0.03125, %v1133_v14  ;;  %v1136_v8 = vmul.f32 %v1134_v42, %v1134_v42  ;;  %v1140_v18 = vsub.f32 %v1096_v56, %v1134_v42  ;;  %v1139_v21 = vsub.f32 %v1091_v38, %v1134_v42  ;;  %v1190_v38 = vpop.permute.xlu0 %1189 }
 0x28c   : > { %v1138_v22 = vsub.f32 %v1086_v40, %v1134_v42  ;;  %v1141_v29 = vsub.f32 %v1101_v54, %v1134_v42 }
 0x28d   : > { %v1137_v16 = vsub.f32 %v1135_v62, %v1136_v8 }
 0x28f   : > { %v1142_v55 = vadd.f32 1e-05, %v1137_v16 }
 0x291   : > { %4323 = vrsqrt.f32 %v1142_v55 }
 0x29b   : > { %v4324_v30 = vpop.eup %4323 }
 0x29c   : > { %v1146_v25 = vmul.f32 %v4324_v30, %v1140_v18  ;;  %v1145_v26 = vmul.f32 %v4324_v30, %v1139_v21  ;;  %v1144_v27 = vmul.f32 %v4324_v30, %v1138_v22  ;;  %v1147_v28 = vmul.f32 %v4324_v30, %v1141_v29 }
 0x29e   : > { %v1170_v32 = vmul.f32 %v1161_v49, %v1146_v25  ;;  %v1169_v33 = vmul.f32 %v1156_v31, %v1145_v26  ;;  %v1168_v35 = vmul.f32 %v1151_v24, %v1144_v27  ;;  %v1171_v36 = vmul.f32 %v1166_v17, %v1147_v28 }
 0x2a0   : > { %v5006_v40 = vadd.f32 %v1185_v39, %v1170_v32  ;;  %v5008_v43 = vadd.f32 %v1180_v58, %v1169_v33  ;;  %v5010_v45 = vadd.f32 %v1175_v23, %v1168_v35  ;;  %v5012_v46 = vadd.f32 %v1190_v38, %v1171_v36 }
 0x2a2   : > { %v5015_v47 = vmul.f32 0.70710677, %v5006_v40  ;;  %v5018_v34 = vmul.f32 0.70710677, %v5008_v43  ;;  %v5021_v19 = vmul.f32 0.70710677, %v5010_v45 }
 0x2a3   : > { %v5024_v51 = vmul.f32 0.70710677, %v5012_v46 }
 0x2a4   : > { %v1206_v52 = vand.u32 2147483647, %v5015_v47  ;;  %v1205_v54 = vand.u32 2147483647, %v5018_v34  ;;  %v1204_v56 = vand.u32 2147483647, %v5021_v19 }
 0x2a5   : > { %v1207_v59 = vand.u32 2147483647, %v5024_v51  ;;  %vm1286_vm7 = vcmp.ge.f32.partialorder %v5015_v47, 0.0  ;;  %vm1285_vm8 = vcmp.ge.f32.partialorder %v5018_v34, 0.0  ;;  %vm1284_vm9 = vcmp.ge.f32.partialorder %v5021_v19, 0.0 }
 0x2a6   : > { %v1210_v60 = vmul.f32 0.3275911, %v1206_v52  ;;  %v1209_v61 = vmul.f32 0.3275911, %v1205_v54  ;;  %v1208_v63 = vmul.f32 0.3275911, %v1204_v56 }
 0x2a7   : > { %v1211_v3 = vmul.f32 0.3275911, %v1207_v59  ;;  %v1262_v7 = vsub.f32 0.0, %v1206_v52  ;;  %v1261_v9 = vsub.f32 0.0, %v1205_v54  ;;  %v1260_v53 = vsub.f32 0.0, %v1204_v56 }
 0x2a8   : > { %v1214_v0 = vadd.f32 1.0, %v1210_v60  ;;  %v1213_v1 = vadd.f32 1.0, %v1209_v61  ;;  %v1212_v4 = vadd.f32 1.0, %v1208_v63  ;;  %v1263_v42 = vsub.f32 0.0, %v1207_v59 }
 0x2a9   : > { %v1215_v5 = vadd.f32 1.0, %v1211_v3  ;;  %v1266_v48 = vmul.f32 %v1262_v7, %v1206_v52  ;;  %v1265_v12 = vmul.f32 %v1261_v9, %v1205_v54  ;;  %v1264_v22 = vmul.f32 %v1260_v53, %v1204_v56 }
 0x2aa   : > { %4325 = vrcp.f32 %v1214_v0  ;;  %v1267_v23 = vmul.f32 %v1263_v42, %v1207_v59  ;;  %v1198_v47 = vmul.f32 0.5, %v5006_v40  ;;  %v1196_v34 = vmul.f32 0.5, %v5010_v45 }
 0x2ab   : > { %4327 = vrcp.f32 %v1213_v1  ;;  %v1272_v18 = vmul.f32 1.442695, %v1266_v48  ;;  %v1270_v29 = vmul.f32 1.442695, %v1265_v12  ;;  %v1268_v25 = vmul.f32 1.442695, %v1264_v22 }
 0x2ac   : > { %4329 = vrcp.f32 %v1212_v4  ;;  %v1274_v33 = vmul.f32 1.442695, %v1267_v23  ;;  %vm1287_vm10 = vcmp.ge.f32.partialorder %v5024_v51, 0.0  ;;  %v1199_v45 = vmul.f32 0.5, %v5012_v46 }
 0x2ad   : > { %4331 = vrcp.f32 %v1215_v5 }
 0x2ae   : > { %4333 = vpow2.f32 %v1272_v18 }
 0x2af   : > { %4335 = vpow2.f32 %v1270_v29 }
 0x2b0   : > { %4337 = vpow2.f32 %v1268_v25 }
 0x2b1   : > { %4339 = vpow2.f32 %v1274_v33 }
 0x2b4   : > { %v4326_v10 = vpop.eup %4325 }
 0x2b5   : > { %v4328_v11 = vpop.eup %4327  ;;  %v1226_v13 = vmul.f32 1.0614054, %v4326_v10 }
 0x2b6   : > { %v1225_v14 = vmul.f32 1.0614054, %v4328_v11  ;;  %v4330_v8 = vpop.eup %4329 }
 0x2b7   : > { %v1230_v62 = vadd.f32 -1.4531521, %v1226_v13  ;;  %v1224_v24 = vmul.f32 1.0614054, %v4330_v8  ;;  %v4332_v16 = vpop.eup %4331 }
 0x2b8   : > { %v1229_v21 = vadd.f32 -1.4531521, %v1225_v14  ;;  %v1227_v58 = vmul.f32 1.0614054, %v4332_v16  ;;  %v4334_v5 = vpop.eup %4333 }
 0x2b9   : > { %v1234_v31 = vmul.f32 %v4326_v10, %v1230_v62  ;;  %v1228_v17 = vadd.f32 -1.4531521, %v1224_v24  ;;  %v4336_v9 = vpop.eup %4335 }
 0x2ba   : > { %v1233_v55 = vmul.f32 %v4328_v11, %v1229_v21  ;;  %v1231_v28 = vadd.f32 -1.4531521, %v1227_v58  ;;  %v4338_v18 = vpop.eup %4337 }
 0x2bb   : > { %v1238_v49 = vadd.f32 1.4214138, %v1234_v31  ;;  %v1232_v27 = vmul.f32 %v4330_v8, %v1228_v17  ;;  %v4340_v24 = vpop.eup %4339  ;;  %v1197_v17 = vmul.f32 0.5, %v5008_v43 }
 0x2bc   : > { %v1237_v30 = vadd.f32 1.4214138, %v1233_v55  ;;  %v1235_v38 = vmul.f32 %v4332_v16, %v1231_v28 }
 0x2bd   : > { %v1242_v26 = vmul.f32 %v4326_v10, %v1238_v49  ;;  %v1236_v36 = vadd.f32 1.4214138, %v1232_v27 }
 0x2be   : > { %v1241_v32 = vmul.f32 %v4328_v11, %v1237_v30  ;;  %v1239_v56 = vadd.f32 1.4214138, %v1235_v38  ;;  %v5041_v38 = vld [vmem:[%s4795_s20] ss:$0 sm:$0xff] }
 0x2bf   : > { %v1246_v35 = vadd.f32 -0.28449672, %v1242_v26  ;;  %v1240_v54 = vmul.f32 %v4330_v8, %v1236_v36 }
 0x2c0   : > { %v1245_v39 = vadd.f32 -0.28449672, %v1241_v32  ;;  %v1243_v63 = vmul.f32 %v4332_v16, %v1239_v56  ;;  %v3903_v56 = vld [vmem:[%s5941_s6 + $0x28] sm:$0xff] }
 0x2c1   : > { %v1250_v52 = vmul.f32 %v4326_v10, %v1246_v35  ;;  %v1244_v61 = vadd.f32 -0.28449672, %v1240_v54  ;;  %v3905_v54 = vld [vmem:[%s5941_s6 + $0x38] sm:$0xff] }
 0x2c2   : > { %v1249_v59 = vmul.f32 %v4328_v11, %v1245_v39  ;;  %v1247_v4 = vadd.f32 -0.28449672, %v1243_v63  ;;  %v3904_v63 = vld [vmem:[%s5941_s6 + $0x30] sm:$0xff] }
 0x2c3   : > { %v1254_v60 = vadd.f32 0.2548296, %v1250_v52  ;;  %v1248_v3 = vmul.f32 %v4330_v8, %v1244_v61  ;;  %v3902_v52 = vld [vmem:[%s5941_s6 + $0x20] sm:$0xff]  ;;  %v3915_v61 = vld [vmem:[%s5944_s9 + $0x28] sm:$0xff] }
 0x2c4   : > { %v1253_v0 = vadd.f32 0.2548296, %v1249_v59  ;;  %v1251_v12 = vmul.f32 %v4332_v16, %v1247_v4  ;;  %v3909_v59 = vld [vmem:[%s5942_s7 + $0x38] sm:$0xff]  ;;  %v3914_v4 = vld [vmem:[%s5944_s9 + $0x20] sm:$0xff] }
 0x2c5   : > { %v1258_v1 = vmul.f32 %v4326_v10, %v1254_v60  ;;  %v1252_v53 = vadd.f32 0.2548296, %v1248_v3  ;;  %v3906_v60 = vld [vmem:[%s5942_s7 + $0x20] sm:$0xff]  ;;  %v3923_v3 = vld [vmem:[%s5945_s10 + $0x28] sm:$0xff] }
 0x2c6   : > { %v1257_v7 = vmul.f32 %v4328_v11, %v1253_v0  ;;  %v1255_v62 = vadd.f32 0.2548296, %v1251_v12  ;;  %v3917_v0 = vld [vmem:[%s5944_s9 + $0x38] sm:$0xff]  ;;  %v3924_v12 = vld [vmem:[%s5945_s10 + $0x30] sm:$0xff] }
 0x2c7   : > { %v1278_v48 = vmul.f32 %v4334_v5, %v1258_v1  ;;  %v1256_v42 = vmul.f32 %v4330_v8, %v1252_v53  ;;  %v3908_v1 = vld [vmem:[%s5942_s7 + $0x30] sm:$0xff]  ;;  %v3926_v5 = vld [vmem:[%s5946_s11 + $0x20] sm:$0xff]  ;;  %v3929_v53 = vld [vmem:[%s5946_s11 + $0x38] sm:$0xff] }
 0x2c8   : > { %v1277_v13 = vmul.f32 %v4336_v9, %v1257_v7  ;;  %v1259_v31 = vmul.f32 %v4332_v16, %v1255_v62  ;;  %v3916_v7 = vld [vmem:[%s5944_s9 + $0x30] sm:$0xff]  ;;  %v3925_v9 = vld [vmem:[%s5945_s10 + $0x38] sm:$0xff]  ;;  %v3934_v62 = vld [vmem:[%s5969_s5 + $0x40] sm:$0xff] }
 0x2c9   : > { %v1282_v14 = vsub.f32 1.0, %v1278_v48  ;;  %v1276_v29 = vmul.f32 %v4338_v18, %v1256_v42  ;;  %v3922_v48 = vld [vmem:[%s5945_s10 + $0x20] sm:$0xff]  ;;  %v3928_v42 = vld [vmem:[%s5946_s11 + $0x30] sm:$0xff]  ;;  %v1360_v18 = vpop.permute.xlu1 %1359 }
 0x2ca   : > { %v1281_v21 = vsub.f32 1.0, %v1277_v13  ;;  %v1279_v23 = vmul.f32 %v4340_v24, %v1259_v31  ;;  %v3927_v13 = vld [vmem:[%s5946_s11 + $0x28] sm:$0xff] }
 0x2cb   : > { %v1290_v22 = vsub.f32 0.0, %v1282_v14  ;;  %v1280_v11 = vsub.f32 1.0, %v1276_v29  ;;  %v1387_v29 = vpop.permute.xlu0 %1386 }
 0x2cc   : > { %v1289_v55 = vsub.f32 0.0, %v1281_v21  ;;  %v1283_v30 = vsub.f32 1.0, %v1279_v23 }
 0x2cd   : > { %v1294_v10 = vsel %vm1286_vm7, %v1282_v14, %v1290_v22  ;;  %v1288_v8 = vsub.f32 0.0, %v1280_v11  ;;  %v5137_v14 = vld [vmem:[%s5968_s4 + $0x40] sm:$0xff]  ;;  %v1325_v22 = vpop.permute.xlu1 %1324  ;;  %vm2092_vm7 = vcmp.lt.s32.totalorder %v4908_v41, 119 }
 0x2ce   : > { %v1293_v49 = vsel %vm1285_vm8, %v1281_v21, %v1289_v55  ;;  %v1298_v25 = vadd.f32 1.0, %v1294_v10  ;;  %v1291_v27 = vsub.f32 0.0, %v1283_v30  ;;  %v3932_v21 = vld [vmem:[%s5968_s4 + $0x50] sm:$0xff] }
 0x2cf   : > { %v1297_v58 = vadd.f32 1.0, %v1293_v49  ;;  %v1292_v26 = vsel %vm1284_vm9, %v1280_v11, %v1288_v8  ;;  %v1430_v24 = vpop.permute.xlu0 %1429 }
 0x2d0   : > { %v1296_v28 = vadd.f32 1.0, %v1292_v26  ;;  %v1295_v43 = vsel %vm1287_vm10, %v1283_v30, %v1291_v27  ;;  %v1302_v33 = vmul.f32 %v1298_v25, %v1198_v47  ;;  %v3910_v25 = vld [vmem:[%s5943_s8 + $0x20] sm:$0xff]  ;;  %v3931_v47 = vld [vmem:[%s5968_s4 + $0x48] sm:$0xff] }
 0x2d1   : > { %v1301_v16 = vmul.f32 %v1297_v58, %v1197_v17  ;;  %v1299_v36 = vadd.f32 1.0, %v1295_v43  ;;  %v1370_v31 = vpop.permute.xlu1 %1369  ;;  %4089 = vmatprep.mubr.msk.f32.mxu1 %vm1006_vm0, %v3910_v25 }
 0x2d2   : > { %v1300_v35 = vmul.f32 %v1296_v28, %v1196_v34 }
 0x2d3   : > { %v5038_v32 = vadd.f32 %v1301_v16, %v4803_v44  ;;  %v5053_v44 = vadd.f32 %v1302_v33, %v4809_v50  ;;  %v1303_v39 = vmul.f32 %v1299_v36, %v1199_v45  ;;  %v1434_v10 = vpop.permute.xlu0 %1433 }
 0x2d4   : > { %v5048_v40 = vadd.f32 %v1300_v35, %v4798_v37  ;;  %v3936_v35 = vld [vmem:[%s5969_s5 + $0x50] sm:$0xff] }
 0x2d5   : > { %v5045_v19 = vmul.f32 %v5041_v38, %v5038_v32  ;;  %v5063_v37 = vmul.f32 %v5041_v38, %v5053_v44  ;;  %v5066_v46 = vadd.f32 %v1303_v39, %v4817_v57  ;;  %v3907_v57 = vld [vmem:[%s5942_s7 + $0x28] sm:$0xff]  ;;  %v1391_v55 = vpop.permute.xlu1 %1390 }
 0x2d6   : > { %v5057_v51 = vmul.f32 %v5041_v38, %v5048_v40 }
 0x2d7   : > { %1344 = vrot.lane.b32.xlu0 %v5045_v19, %s4577_s2  ;;  %v5072_v50 = vmul.f32 %v5041_v38, %v5066_v46  ;;  %v5153_v23 = vpop.permute.xlu0 %1437 }
 0x2d8   : > { %1342 = vrot.lane.b32.xlu1 %v5057_v51, %s4577_s2 }
 0x2d9   : > { %v1335_v11 = vpop.permute.xlu1 %1334 }
 0x2db   : > { %1409 = vrot.lane.b32.xlu0 %v5057_v51, %s4578_s27  ;;  %v1365_v17 = vpop.permute.xlu0 %1364 }
 0x2dc   : > { %1346 = vrot.lane.b32.xlu1 %v5063_v37, %s4577_s2 }
 0x2dd   : > { %v1395_v49 = vpop.permute.xlu1 %1394 }
 0x2df   : > { %1413 = vrot.lane.b32.xlu0 %v5063_v37, %s4578_s27  ;;  %v1330_v8 = vpop.permute.xlu0 %1329 }
 0x2e0   : > { %1348 = vrot.lane.b32.xlu1 %v5072_v50, %s4577_s2 }
 0x2e1   : > { %v1426_v58 = vpop.permute.xlu1 %1425 }
 0x2e3   : > { %1496 = vperm.xlu0 %4293, %v3902_v52   ;;  %v1375_v16 = vpop.permute.xlu0 %1374 }
 0x2e4   : > { %1411 = vrot.lane.b32.xlu1 %v5045_v19, %s4578_s27 }
 0x2e5   : > { %v1340_v30 = vpop.permute.xlu1 %1339 }
 0x2e7   : > { %1525 = vperm.xlu0 %4293, %v3907_v57  }
 0x2e8   : > { %1415 = vrot.lane.b32.xlu1 %v5072_v50, %s4578_s27  ;;  %s4579_s27 = smov 9  }
 0x2e9   : > { %v1399_v26 = vpop.permute.xlu1 %1398 }
 0x2eb   : > { %1511 = vperm.xlu0 %4293, %v3905_v54  }
 0x2ec   : > { %1501 = vperm.xlu1 %4294, %v3903_v56  }
 0x2ef   : > { %1535 = vperm.xlu0 %4293, %v3909_v59  }
 0x2f0   : > { %1520 = vperm.xlu1 %4294, %v3906_v60   ;;  %v1401_v60 = vmul.f32 %v1387_v29, %v5057_v51  ;;  %v1403_v51 = vmul.f32 %v1395_v49, %v5063_v37  ;;  %v1404_v37 = vmul.f32 %v1399_v26, %v5072_v50 }
 0x2f3   : > { %1667 = vperm.xlu0 %4293, %v3915_v61   ;;  %v5180_v61 = vld [vmem:[%s5968_s4 + $0x58] sm:$0xff]  ;;  %s5861_s4 = scalar_lea.hbm %s5950_s15, %s4011_s28 }
 0x2f4   : > { %1506 = vperm.xlu1 %4294, %v3904_v63  }
 0x2f7   : > { %1677 = vperm.xlu0 %4293, %v3917_v0  }
 0x2f8   : > { %1530 = vperm.xlu1 %4294, %v3908_v1  }
 0x2fb   : > { %1830 = vperm.xlu0 %4293, %v3923_v3  }
 0x2fc   : > { %1662 = vperm.xlu1 %4294, %v3914_v4  }
 0x2ff   : > { %1849 = vperm.xlu0 %4293, %v3926_v5  }
 0x300   : > { %1672 = vperm.xlu1 %4294, %v3916_v7  }
 0x303   : > { %1840 = vperm.xlu0 %4293, %v3925_v9  }
 0x304   : > { %1825 = vperm.xlu1 %4294, %v3922_v48   ;;  %v1402_v48 = vmul.f32 %v1391_v55, %v5045_v19 }
 0x307   : > { %1864 = vperm.xlu0 %4293, %v3929_v53  }
 0x308   : > { %1835 = vperm.xlu1 %4294, %v3924_v12  }
 0x30b   : > { %4295 = vset.pattern.permute.xlu0 %v4573_v6 }
 0x30c   : > { %2061 = vperm.xlu0 %4295, %v5137_v14   ;;  %1854 = vperm.xlu1 %4294, %v3927_v13  }
 0x310   : > { %4300 = vset.pattern.permute.xlu0 %v4574_v15  ;;  %1859 = vperm.xlu1 %4294, %v3928_v42  }
 0x311   : > { %2104 = vperm.xlu0 %4300, %v3931_v47  }
 0x314   : > { %2034 = vperm.xlu1 %4294, %v5137_v14  }
 0x315   : > { %2108 = vperm.xlu0 %4300, %v3932_v21  }
 0x318   : > { %1999 = vperm.xlu1 %4294, %v3934_v62  }
 0x319   : > { %2112 = vperm.xlu0 %4300, %v5180_v61  }
 0x31c   : > { %2044 = vperm.xlu1 %4294, %v3932_v21  }
 0x31d   : > { %4303 = vset.pattern.permute.xlu0 %v4572_v2 }
 0x31e   : > { %2039 = vperm.xlu0 %4303, %v3931_v47  }
 0x320   : > { %4296 = vset.pattern.permute.xlu1 %v4573_v6 }
 0x321   : > { %2065 = vperm.xlu1 %4296, %v3931_v47  }
 0x325   : > { %4297 = vset.pattern.permute.xlu1 %v4572_v2 }
 0x326   : > { %2009 = vperm.xlu1 %4297, %v3936_v35  }
 0x32a   : > { %4298 = vset.pattern.permute.xlu1 %v4573_v6 }
 0x32b   : > { %2069 = vperm.xlu1 %4298, %v3932_v21  }
 0x32f   : > { %4299 = vset.pattern.permute.xlu1 %v4574_v15 }
 0x330   : > { %2100 = vperm.xlu1 %4299, %v5137_v14  }
 0x334   : > { %4301 = vset.pattern.permute.xlu1 %v4572_v2 }
 0x349   : > { %v1345_v27 = vpop.permute.xlu0 %1344 }
 0x34a   : > { %v1343_v34 = vpop.permute.xlu1 %1342  ;;  %v1354_v36 = vsel %vm1350_vm11, %v1345_v27, 0.0 }
 0x34b   : > { %v1353_v28 = vsel %vm1350_vm11, %v1343_v34, 0.0  ;;  %v1378_v57 = vmul.f32 %v1365_v17, %v1354_v36 }
 0x34c   : > { %v1377_v33 = vmul.f32 %v1360_v18, %v1353_v28 }
 0x34d   : > { %v1410_v43 = vpop.permute.xlu0 %1409  ;;  %v1382_v7 = vadd.f32 %v1378_v57, %v1330_v8 }
 0x34e   : > { %v1347_v45 = vpop.permute.xlu1 %1346  ;;  %v1381_v39 = vadd.f32 %v1377_v33, %v1325_v22  ;;  %v1420_v54 = vsel %vm1417_vm12, %v1410_v43, 0.0 }
 0x34f   : > { %v1355_v52 = vsel %vm1350_vm11, %v1347_v45, 0.0  ;;  %v1440_v3 = vmul.f32 %v1426_v58, %v1420_v54  ;;  %v1406_v22 = vadd.f32 %v1402_v48, %v1382_v7 }
 0x350   : > { %v1379_v56 = vmul.f32 %v1370_v31, %v1355_v52  ;;  %v1405_v1 = vadd.f32 %v1401_v60, %v1381_v39 }
 0x351   : > { %v1414_v59 = vpop.permute.xlu0 %1413 }
 0x352   : > { %v1383_v63 = vadd.f32 %v1379_v56, %v1335_v11  ;;  %v1349_v0 = vpop.permute.xlu1 %1348  ;;  %v1422_v4 = vsel %vm1417_vm12, %v1414_v59, 0.0  ;;  %v1444_v42 = vadd.f32 %v1440_v3, %v1405_v1  ;;  %v3937_v11 = vld [vmem:[%s5969_s5 + $0x58] sm:$0xff] }
 0x353   : > { %v1356_v5 = vsel %vm1350_vm11, %v1349_v0, 0.0  ;;  %v1442_v12 = vmul.f32 %v1434_v10, %v1422_v4  ;;  %2014 = vperm.xlu1 %4301, %v3937_v11  }
 0x354   : > { %v1380_v9 = vmul.f32 %v1375_v16, %v1356_v5  ;;  %v1407_v53 = vadd.f32 %v1403_v51, %v1383_v63  ;;  %v1467_v55 = vmul.f32 %v1444_v42, %v1444_v42 }
 0x356   : > { %v1412_v13 = vpop.permute.xlu1 %1411  ;;  %v1384_v18 = vadd.f32 %v1380_v9, %v1340_v30  ;;  %v1446_v19 = vadd.f32 %v1442_v12, %v1407_v53 }
 0x357   : > { %v1421_v62 = vsel %vm1417_vm12, %v1412_v13, 0.0  ;;  %4302 = vset.pattern.permute.xlu1 %v4573_v6 }
 0x358   : > { %v1441_v29 = vmul.f32 %v1430_v24, %v1421_v62  ;;  %v1408_v24 = vadd.f32 %v1404_v37, %v1384_v18  ;;  %v1469_v14 = vmul.f32 %v1446_v19, %v1446_v19  ;;  %2073 = vperm.xlu1 %4302, %v5180_v61  }
 0x35a   : > { %v1445_v21 = vadd.f32 %v1441_v29, %v1406_v22  ;;  %v1416_v31 = vpop.permute.xlu1 %1415 }
 0x35b   : > { %v1423_v10 = vsel %vm1417_vm12, %v1416_v31, 0.0 }
 0x35c   : > { %v1458_v49 = vadd.f32 %v1445_v21, %v1444_v42  ;;  %v1468_v17 = vmul.f32 %v1445_v21, %v1445_v21  ;;  %v1443_v15 = vmul.f32 %v5153_v23, %v1423_v10  ;;  %4304 = vset.pattern.permute.xlu1 %v4572_v2 }
 0x35e   : > { %v1471_v50 = vadd.f32 %v1468_v17, %v1467_v55  ;;  %v1447_v58 = vadd.f32 %v1443_v15, %v1408_v24  ;;  %v1459_v8 = vadd.f32 %v1458_v49, %v1446_v19 }
 0x360   : > { %v1460_v30 = vadd.f32 %v1459_v8, %v1447_v58  ;;  %v1470_v25 = vmul.f32 %v1447_v58, %v1447_v58  ;;  %v1472_v16 = vadd.f32 %v1471_v50, %v1469_v14 }
 0x362   : > { %v1461_v26 = vrot.slane %v1460_v30, 4  ;;  %v1473_v27 = vadd.f32 %v1472_v16, %v1470_v25  ;;  %v1497_v1 = vpop.permute.xlu0 %1496 }
 0x364   : > { %v1462_v47 = vadd.f32 %v1461_v26, %v1460_v30  ;;  %v1474_v34 = vrot.slane %v1473_v27, 4 }
 0x366   : > { %v1463_v28 = vrot.slane %v1462_v47, 2  ;;  %v1475_v23 = vadd.f32 %v1474_v34, %v1473_v27  ;;  %v1526_v2 = vpop.permute.xlu0 %1525 }
 0x368   : > { %v1464_v43 = vadd.f32 %v1463_v28, %v1462_v47  ;;  %v1476_v33 = vrot.slane %v1475_v23, 2 }
 0x36a   : > { %v1465_v35 = vrot.slane %v1464_v43, 1  ;;  %v1477_v36 = vadd.f32 %v1476_v33, %v1475_v23  ;;  %v1512_v51 = vpop.permute.xlu0 %1511 }
 0x36b   : > { %v1502_v3 = vpop.permute.xlu1 %1501 }
 0x36c   : > { %v1466_v45 = vadd.f32 %v1465_v35, %v1464_v43  ;;  %v1478_v39 = vrot.slane %v1477_v36, 1 }
 0x36e   : > { %v1479_v52 = vadd.f32 %v1478_v39, %v1477_v36  ;;  %v1480_v57 = vmul.f32 0.03125, %v1466_v45  ;;  %v1536_v29 = vpop.permute.xlu0 %1535 }
 0x36f   : > { %v1521_v5 = vpop.permute.xlu1 %1520 }
 0x370   : > { %v1481_v54 = vmul.f32 0.03125, %v1479_v52  ;;  %v1482_v56 = vmul.f32 %v1480_v57, %v1480_v57  ;;  %v1484_v59 = vsub.f32 %v1444_v42, %v1480_v57  ;;  %v1487_v6 = vsub.f32 %v1447_v58, %v1480_v57 }
 0x371   : > { %v1485_v60 = vsub.f32 %v1445_v21, %v1480_v57  ;;  %v1486_v63 = vsub.f32 %v1446_v19, %v1480_v57 }
 0x372   : > { %v1483_v0 = vsub.f32 %v1481_v54, %v1482_v56 }
 0x373   : > { %v1507_v7 = vpop.permute.xlu1 %1506 }
 0x374   : > { %v1488_v4 = vadd.f32 1e-05, %v1483_v0 }
 0x376   : > { %4341 = vrsqrt.f32 %v1488_v4 }
 0x377   : > { %v1531_v37 = vpop.permute.xlu1 %1530 }
 0x380   : > { %v4342_v9 = vpop.eup %4341 }
 0x381   : > { %v1490_v48 = vmul.f32 %v4342_v9, %v1484_v59  ;;  %v1493_v53 = vmul.f32 %v4342_v9, %v1487_v6  ;;  %v1491_v12 = vmul.f32 %v4342_v9, %v1485_v60  ;;  %v1492_v13 = vmul.f32 %v4342_v9, %v1486_v63 }
 0x383   : > { %v1514_v62 = vmul.f32 %v1497_v1, %v1490_v48  ;;  %v1517_v18 = vmul.f32 %v1512_v51, %v1493_v53  ;;  %v1515_v42 = vmul.f32 %v1502_v3, %v1491_v12  ;;  %v1516_v22 = vmul.f32 %v1507_v7, %v1492_v13 }
 0x385   : > { %v5206_v19 = vadd.f32 %v1526_v2, %v1515_v42  ;;  %v5208_v21 = vadd.f32 %v1536_v29, %v1517_v18  ;;  %v5210_v31 = vadd.f32 %v1521_v5, %v1514_v62  ;;  %v5212_v55 = vadd.f32 %v1531_v37, %v1516_v22 }
 0x387   : > { %v5215_v10 = vmul.f32 0.70710677, %v5206_v19  ;;  %v5218_v11 = vmul.f32 0.70710677, %v5208_v21  ;;  %v5221_v49 = vmul.f32 0.70710677, %v5210_v31 }
 0x388   : > { %v5224_v17 = vmul.f32 0.70710677, %v5212_v55 }
 0x389   : > { %v1551_v24 = vand.u32 2147483647, %v5215_v10  ;;  %v1553_v15 = vand.u32 2147483647, %v5218_v11  ;;  %v1550_v14 = vand.u32 2147483647, %v5221_v49 }
 0x38a   : > { %v1552_v50 = vand.u32 2147483647, %v5224_v17  ;;  %vm1631_vm13 = vcmp.ge.f32.partialorder %v5215_v10, 0.0  ;;  %vm1633_vm14 = vcmp.ge.f32.partialorder %v5218_v11, 0.0  ;;  %vm1630_vm15 = vcmp.ge.f32.partialorder %v5221_v49, 0.0 }
 0x38b   : > { %v1555_v58 = vmul.f32 0.3275911, %v1551_v24  ;;  %v1557_v8 = vmul.f32 0.3275911, %v1553_v15  ;;  %v1554_v30 = vmul.f32 0.3275911, %v1550_v14 }
 0x38c   : > { %v1556_v26 = vmul.f32 0.3275911, %v1552_v50  ;;  %v1607_v34 = vsub.f32 0.0, %v1551_v24  ;;  %v1609_v28 = vsub.f32 0.0, %v1553_v15  ;;  %v1606_v33 = vsub.f32 0.0, %v1550_v14 }
 0x38d   : > { %v1559_v25 = vadd.f32 1.0, %v1555_v58  ;;  %v1561_v16 = vadd.f32 1.0, %v1557_v8  ;;  %v1558_v27 = vadd.f32 1.0, %v1554_v30  ;;  %v1608_v52 = vsub.f32 0.0, %v1552_v50 }
 0x38e   : > { %v1560_v47 = vadd.f32 1.0, %v1556_v26  ;;  %v1611_v43 = vmul.f32 %v1607_v34, %v1551_v24  ;;  %v1613_v36 = vmul.f32 %v1609_v28, %v1553_v15  ;;  %v1610_v6 = vmul.f32 %v1606_v33, %v1550_v14 }
 0x38f   : > { %4343 = vrcp.f32 %v1559_v25  ;;  %v1612_v4 = vmul.f32 %v1608_v52, %v1552_v50  ;;  %v1542_v10 = vmul.f32 0.5, %v5210_v31  ;;  %vm1632_vm1 = vcmp.ge.f32.partialorder %v5224_v17, 0.0  ;;  %v3912_v31 = vld [vmem:[%s5943_s8 + $0x30] sm:$0xff]  ;;  %v3935_v17 = vld [vmem:[%s5969_s5 + $0x48] sm:$0xff] }
 0x390   : > { %4345 = vrcp.f32 %v1561_v16  ;;  %v1616_v56 = vmul.f32 1.442695, %v1611_v43  ;;  %v1620_v60 = vmul.f32 1.442695, %v1613_v36  ;;  %v1614_v9 = vmul.f32 1.442695, %v1610_v6  ;;  %2004 = vperm.xlu0 %4303, %v3935_v17  }
 0x391   : > { %4347 = vrcp.f32 %v1558_v27  ;;  %v1618_v62 = vmul.f32 1.442695, %v1612_v4 }
 0x392   : > { %4349 = vrcp.f32 %v1560_v47 }
 0x393   : > { %4351 = vpow2.f32 %v1616_v56 }
 0x394   : > { %4353 = vpow2.f32 %v1620_v60  ;;  %2049 = vperm.xlu0 %4303, %v5180_v61  }
 0x395   : > { %4355 = vpow2.f32 %v1614_v9 }
 0x396   : > { %4357 = vpow2.f32 %v1618_v62  ;;  %v1544_v62 = vmul.f32 0.5, %v5212_v55  ;;  %v3913_v55 = vld [vmem:[%s5943_s8 + $0x38] sm:$0xff] }
 0x399   : > { %v4344_v23 = vpop.eup %4343 }
 0x39a   : > { %v4346_v35 = vpop.eup %4345  ;;  %v1571_v45 = vmul.f32 1.0614054, %v4344_v23 }
 0x39b   : > { %v1573_v39 = vmul.f32 1.0614054, %v4346_v35  ;;  %v4348_v54 = vpop.eup %4347 }
 0x39c   : > { %v1575_v57 = vadd.f32 -1.4531521, %v1571_v45  ;;  %v1570_v63 = vmul.f32 1.0614054, %v4348_v54  ;;  %v4350_v1 = vpop.eup %4349 }
 0x39d   : > { %v1577_v59 = vadd.f32 -1.4531521, %v1573_v39  ;;  %v1572_v2 = vmul.f32 1.0614054, %v4350_v1  ;;  %v4352_v27 = vpop.eup %4351 }
 0x39e   : > { %v1579_v0 = vmul.f32 %v4344_v23, %v1575_v57  ;;  %v1574_v5 = vadd.f32 -1.4531521, %v1570_v63  ;;  %v4354_v34 = vpop.eup %4353 }
 0x39f   : > { %v1581_v3 = vmul.f32 %v4346_v35, %v1577_v59  ;;  %v1576_v48 = vadd.f32 -1.4531521, %v1572_v2  ;;  %v4356_v57 = vpop.eup %4355 }
 0x3a0   : > { %v1583_v51 = vadd.f32 1.4214138, %v1579_v0  ;;  %v1578_v53 = vmul.f32 %v4348_v54, %v1574_v5  ;;  %v4358_v63 = vpop.eup %4357 }
 0x3a1   : > { %v1585_v7 = vadd.f32 1.4214138, %v1581_v3  ;;  %v1580_v18 = vmul.f32 %v4350_v1, %v1576_v48 }
 0x3a2   : > { %v1587_v12 = vmul.f32 %v4344_v23, %v1583_v51  ;;  %v1582_v42 = vadd.f32 1.4214138, %v1578_v53 }
 0x3a3   : > { %v1589_v13 = vmul.f32 %v4346_v35, %v1585_v7  ;;  %v1584_v37 = vadd.f32 1.4214138, %v1580_v18 }
 0x3a4   : > { %v1591_v22 = vadd.f32 -0.28449672, %v1587_v12  ;;  %v1586_v24 = vmul.f32 %v4348_v54, %v1582_v42 }
 0x3a5   : > { %v1593_v29 = vadd.f32 -0.28449672, %v1589_v13  ;;  %v1588_v50 = vmul.f32 %v4350_v1, %v1584_v37  ;;  %v1663_v37 = vpop.permute.xlu1 %1662 }
 0x3a6   : > { %v1595_v15 = vmul.f32 %v4344_v23, %v1591_v22  ;;  %v1590_v58 = vadd.f32 -0.28449672, %v1586_v24 }
 0x3a7   : > { %v1597_v14 = vmul.f32 %v4346_v35, %v1593_v29  ;;  %v1592_v25 = vadd.f32 -0.28449672, %v1588_v50  ;;  %v1668_v29 = vpop.permute.xlu0 %1667 }
 0x3a8   : > { %v1599_v8 = vadd.f32 0.2548296, %v1595_v15  ;;  %v1594_v16 = vmul.f32 %v4348_v54, %v1590_v58 }
 0x3a9   : > { %v1601_v30 = vadd.f32 0.2548296, %v1597_v14  ;;  %v1596_v28 = vmul.f32 %v4350_v1, %v1592_v25 }
 0x3aa   : > { %v1603_v26 = vmul.f32 %v4344_v23, %v1599_v8  ;;  %v1598_v43 = vadd.f32 0.2548296, %v1594_v16 }
 0x3ab   : > { %v1605_v47 = vmul.f32 %v4346_v35, %v1601_v30  ;;  %v1600_v45 = vadd.f32 0.2548296, %v1596_v28  ;;  %v1678_v8 = vpop.permute.xlu0 %1677 }
 0x3ac   : > { %v1623_v33 = vmul.f32 %v4352_v27, %v1603_v26  ;;  %v1602_v39 = vmul.f32 %v4348_v54, %v1598_v43  ;;  %v1543_v54 = vmul.f32 0.5, %v5206_v19  ;;  %v1673_v26 = vpop.permute.xlu1 %1672 }
 0x3ad   : > { %v1625_v36 = vmul.f32 %v4354_v34, %v1605_v47  ;;  %v1604_v59 = vmul.f32 %v4350_v1, %v1600_v45  ;;  %v1545_v1 = vmul.f32 0.5, %v5208_v21  ;;  %v3911_v21 = vld [vmem:[%s5943_s8 + $0x28] sm:$0xff] }
 0x3ae   : > { %v1627_v52 = vsub.f32 1.0, %v1623_v33  ;;  %v1622_v6 = vmul.f32 %v4356_v57, %v1602_v39 }
 0x3af   : > { %v1629_v56 = vsub.f32 1.0, %v1625_v36  ;;  %v1624_v23 = vmul.f32 %v4358_v63, %v1604_v59 }
 0x3b0   : > { %v1635_v60 = vsub.f32 0.0, %v1627_v52  ;;  %v1626_v35 = vsub.f32 1.0, %v1622_v6 }
 0x3b1   : > { %v1637_v0 = vsub.f32 0.0, %v1629_v56  ;;  %v1628_v5 = vsub.f32 1.0, %v1624_v23 }
 0x3b2   : > { %v1639_v3 = vsel %vm1631_vm13, %v1627_v52, %v1635_v60  ;;  %v1634_v51 = vsub.f32 0.0, %v1626_v35 }
 0x3b3   : > { %v1641_v4 = vsel %vm1633_vm14, %v1629_v56, %v1637_v0  ;;  %v1643_v2 = vadd.f32 1.0, %v1639_v3  ;;  %v1636_v9 = vsub.f32 0.0, %v1628_v5 }
 0x3b4   : > { %v1645_v7 = vadd.f32 1.0, %v1641_v4  ;;  %v1638_v48 = vsel %vm1630_vm15, %v1626_v35, %v1634_v51 }
 0x3b5   : > { %v1642_v11 = vadd.f32 1.0, %v1638_v48  ;;  %v1647_v53 = vmul.f32 %v1643_v2, %v1543_v54  ;;  %v1640_v12 = vsel %vm1632_vm1, %v1628_v5, %v1636_v9  ;;  %v1831_v48 = vpop.permute.xlu0 %1830  ;;  %vm2898_vm1 = vcmask 80896  }
 0x3b6   : > { %v1649_v13 = vmul.f32 %v1645_v7, %v1545_v1  ;;  %v1644_v18 = vadd.f32 1.0, %v1640_v12 }
 0x3b7   : > { %v1646_v42 = vmul.f32 %v1642_v11, %v1542_v10  ;;  %v1826_v10 = vpop.permute.xlu1 %1825 }
 0x3b8   : > { %v1648_v19 = vmul.f32 %v1644_v18, %v1544_v62 }
 0x3b9   : > { %v4165_v22 = vpack.c.bf16 %v1647_v53, %v1646_v42  ;;  %v1850_v12 = vpop.permute.xlu0 %1849 }
 0x3ba   : > { %v4169_v49 = vpack.c.bf16 %v1649_v13, %v1648_v19 }
 0x3bb   : > { %4166 = vmatprep.subr.bf16.mxu1 %v4165_v22  ;;  %v1836_v13 = vpop.permute.xlu1 %1835 }
 0x3bc   : > { %4168 = vmatpush3.bf16.msra.mxu1 %v4165_v22 }
 0x3bd   : > { %4170 = vmatprep.subr.bf16.mxu1 %v4169_v49  ;;  %v1841_v62 = vpop.permute.xlu0 %1840 }
 0x3bf   : > { %v1855_v18 = vpop.permute.xlu1 %1854 }
 0x3c0   : > { %4172 = vmatpush3.bf16.msra.mxu1 %v4169_v49 }
 0x3c3   : > { %4090 = vmatmul.mubr.msk.f32.vlgmr.msra.gmra.mrb[0].mxu1 %vm1006_vm0, %v3911_v21 }
 0x3c4   : > { %4092 = vmatprep.mubr.msk.f32.mxu1 %vm1006_vm0, %v3912_v31 }
 0x3c7   : > { %4093 = vmatmul.mubr.msk.f32.gmra.mrb[2].mxu1 %vm1006_vm0, %v3913_v55 }
 0x496   : > { %v4091_v24 = vpop.f32.mrb[0].mxu1 }
 0x497   : > { %v1764_v15 = vadd.f32 %v4091_v24, %v1668_v29  ;;  %v1758_v14 = vpop.f32.mrb[1].mxu1  ;;  %v1860_v24 = vpop.permute.xlu1 %1859 }
 0x498   : > { %v1759_v50 = vadd.f32 %v1758_v14, %v1663_v37  ;;  %v1865_v37 = vpop.permute.xlu0 %1864 }
 0x499   : > { %v1797_v58 = vmul.f32 %v1764_v15, %v1764_v15 }
 0x49a   : > { %v1787_v30 = vadd.f32 %v1764_v15, %v1759_v50  ;;  %v1796_v25 = vmul.f32 %v1759_v50, %v1759_v50  ;;  %v4094_v16 = vpop.f32.mrb[2].mxu1 }
 0x49b   : > { %v1768_v27 = vpop.f32.mrb[3].mxu1  ;;  %v1774_v34 = vadd.f32 %v4094_v16, %v1678_v8 }
 0x49c   : > { %v1800_v47 = vadd.f32 %v1797_v58, %v1796_v25  ;;  %v1769_v28 = vadd.f32 %v1768_v27, %v1673_v26 }
 0x49d   : > { %v1799_v36 = vmul.f32 %v1774_v34, %v1774_v34 }
 0x49e   : > { %v1788_v43 = vadd.f32 %v1787_v30, %v1769_v28  ;;  %v1798_v33 = vmul.f32 %v1769_v28, %v1769_v28 }
 0x4a0   : > { %v1789_v61 = vadd.f32 %v1788_v43, %v1774_v34  ;;  %v1801_v45 = vadd.f32 %v1800_v47, %v1798_v33 }
 0x4a2   : > { %v1790_v39 = vrot.slane %v1789_v61, 4  ;;  %v1802_v52 = vadd.f32 %v1801_v45, %v1799_v36 }
 0x4a4   : > { %v1791_v57 = vadd.f32 %v1790_v39, %v1789_v61  ;;  %v1803_v56 = vrot.slane %v1802_v52, 4 }
 0x4a6   : > { %v1792_v59 = vrot.slane %v1791_v57, 2  ;;  %v1804_v6 = vadd.f32 %v1803_v56, %v1802_v52 }
 0x4a8   : > { %v1793_v60 = vadd.f32 %v1792_v59, %v1791_v57  ;;  %v1805_v63 = vrot.slane %v1804_v6, 2 }
 0x4aa   : > { %v1794_v0 = vrot.slane %v1793_v60, 1  ;;  %v1806_v23 = vadd.f32 %v1805_v63, %v1804_v6 }
 0x4ac   : > { %v1795_v35 = vadd.f32 %v1794_v0, %v1793_v60  ;;  %v1807_v3 = vrot.slane %v1806_v23, 1 }
 0x4ae   : > { %v1808_v4 = vadd.f32 %v1807_v3, %v1806_v23  ;;  %v1809_v2 = vmul.f32 0.03125, %v1795_v35 }
 0x4b0   : > { %v1810_v5 = vmul.f32 0.03125, %v1808_v4  ;;  %v1811_v51 = vmul.f32 %v1809_v2, %v1809_v2  ;;  %v1815_v54 = vsub.f32 %v1769_v28, %v1809_v2  ;;  %v1814_v7 = vsub.f32 %v1764_v15, %v1809_v2 }
 0x4b1   : > { %v1813_v1 = vsub.f32 %v1759_v50, %v1809_v2  ;;  %v1816_v9 = vsub.f32 %v1774_v34, %v1809_v2 }
 0x4b2   : > { %v1812_v11 = vsub.f32 %v1810_v5, %v1811_v51 }
 0x4b4   : > { %v1817_v53 = vadd.f32 1e-05, %v1812_v11 }
 0x4b6   : > { %4359 = vrsqrt.f32 %v1817_v53 }
 0x4c0   : > { %v4360_v42 = vpop.eup %4359 }
 0x4c1   : > { %v1821_v19 = vmul.f32 %v4360_v42, %v1815_v54  ;;  %v1820_v22 = vmul.f32 %v4360_v42, %v1814_v7  ;;  %v1819_v49 = vmul.f32 %v4360_v42, %v1813_v1  ;;  %v1822_v21 = vmul.f32 %v4360_v42, %v1816_v9 }
 0x4c3   : > { %v1845_v31 = vmul.f32 %v1836_v13, %v1821_v19  ;;  %v1844_v55 = vmul.f32 %v1831_v48, %v1820_v22  ;;  %v1843_v17 = vmul.f32 %v1826_v10, %v1819_v49  ;;  %v1846_v29 = vmul.f32 %v1841_v62, %v1822_v21 }
 0x4c5   : > { %v5254_v15 = vadd.f32 %v1860_v24, %v1845_v31  ;;  %v5256_v14 = vadd.f32 %v1855_v18, %v1844_v55  ;;  %v5258_v50 = vadd.f32 %v1850_v12, %v1843_v17  ;;  %v5260_v58 = vadd.f32 %v1865_v37, %v1846_v29 }
 0x4c7   : > { %v5263_v8 = vmul.f32 0.70710677, %v5254_v15  ;;  %v5266_v30 = vmul.f32 0.70710677, %v5256_v14  ;;  %v5269_v25 = vmul.f32 0.70710677, %v5258_v50 }
 0x4c8   : > { %v5272_v16 = vmul.f32 0.70710677, %v5260_v58 }
 0x4c9   : > { %v1881_v26 = vand.u32 2147483647, %v5263_v8  ;;  %v1880_v27 = vand.u32 2147483647, %v5266_v30  ;;  %v1879_v47 = vand.u32 2147483647, %v5269_v25 }
 0x4ca   : > { %v1882_v34 = vand.u32 2147483647, %v5272_v16  ;;  %vm1961_vm2 = vcmp.ge.f32.partialorder %v5263_v8, 0.0  ;;  %vm1960_vm3 = vcmp.ge.f32.partialorder %v5266_v30, 0.0  ;;  %vm1959_vm4 = vcmp.ge.f32.partialorder %v5269_v25, 0.0 }
 0x4cb   : > { %v1885_v28 = vmul.f32 0.3275911, %v1881_v26  ;;  %v1884_v43 = vmul.f32 0.3275911, %v1880_v27  ;;  %v1883_v33 = vmul.f32 0.3275911, %v1879_v47 }
 0x4cc   : > { %v1886_v45 = vmul.f32 0.3275911, %v1882_v34  ;;  %v1937_v57 = vsub.f32 0.0, %v1881_v26  ;;  %v1936_v56 = vsub.f32 0.0, %v1880_v27  ;;  %v1935_v60 = vsub.f32 0.0, %v1879_v47 }
 0x4cd   : > { %v1889_v36 = vadd.f32 1.0, %v1885_v28  ;;  %v1888_v61 = vadd.f32 1.0, %v1884_v43  ;;  %v1887_v39 = vadd.f32 1.0, %v1883_v33  ;;  %v1938_v3 = vsub.f32 0.0, %v1882_v34 }
 0x4ce   : > { %v1890_v52 = vadd.f32 1.0, %v1886_v45  ;;  %v1941_v6 = vmul.f32 %v1937_v57, %v1881_v26  ;;  %v1940_v0 = vmul.f32 %v1936_v56, %v1880_v27  ;;  %v1939_v54 = vmul.f32 %v1935_v60, %v1879_v47 }
 0x4cf   : > { %4361 = vrcp.f32 %v1889_v36  ;;  %v1942_v11 = vmul.f32 %v1938_v3, %v1882_v34  ;;  %v1871_v8 = vmul.f32 0.5, %v5258_v50  ;;  %vm1962_vm5 = vcmp.ge.f32.partialorder %v5272_v16, 0.0 }
 0x4d0   : > { %4363 = vrcp.f32 %v1888_v61  ;;  %v1947_v5 = vmul.f32 1.442695, %v1941_v6  ;;  %v1945_v7 = vmul.f32 1.442695, %v1940_v0  ;;  %v1943_v18 = vmul.f32 1.442695, %v1939_v54 }
 0x4d1   : > { %4365 = vrcp.f32 %v1887_v39  ;;  %v1949_v21 = vmul.f32 1.442695, %v1942_v11  ;;  %v1872_v11 = vmul.f32 0.5, %v5256_v14 }
 0x4d2   : > { %4367 = vrcp.f32 %v1890_v52 }
 0x4d3   : > { %4369 = vpow2.f32 %v1947_v5 }
 0x4d4   : > { %4371 = vpow2.f32 %v1945_v7 }
 0x4d5   : > { %4373 = vpow2.f32 %v1943_v18 }
 0x4d6   : > { %4375 = vpow2.f32 %v1949_v21 }
 0x4d9   : > { %v4362_v59 = vpop.eup %4361 }
 0x4da   : > { %v4364_v63 = vpop.eup %4363  ;;  %v1901_v23 = vmul.f32 1.0614054, %v4362_v59 }
 0x4db   : > { %v1900_v35 = vmul.f32 1.0614054, %v4364_v63  ;;  %v4366_v2 = vpop.eup %4365 }
 0x4dc   : > { %v1905_v4 = vadd.f32 -1.4531521, %v1901_v23  ;;  %v1899_v9 = vmul.f32 1.0614054, %v4366_v2  ;;  %v4368_v48 = vpop.eup %4367 }
 0x4dd   : > { %v1904_v51 = vadd.f32 -1.4531521, %v1900_v35  ;;  %v1902_v13 = vmul.f32 1.0614054, %v4368_v48  ;;  %v4370_v45 = vpop.eup %4369 }
 0x4de   : > { %v1909_v1 = vmul.f32 %v4362_v59, %v1905_v4  ;;  %v1903_v12 = vadd.f32 -1.4531521, %v1899_v9  ;;  %v4372_v52 = vpop.eup %4371 }
 0x4df   : > { %v1908_v10 = vmul.f32 %v4364_v63, %v1904_v51  ;;  %v1906_v22 = vadd.f32 -1.4531521, %v1902_v13  ;;  %v4374_v3 = vpop.eup %4373 }
 0x4e0   : > { %v1913_v53 = vadd.f32 1.4214138, %v1909_v1  ;;  %v1907_v19 = vmul.f32 %v4366_v2, %v1903_v12  ;;  %v4376_v7 = vpop.eup %4375 }
 0x4e1   : > { %v1912_v62 = vadd.f32 1.4214138, %v1908_v10  ;;  %v1910_v17 = vmul.f32 %v4368_v48, %v1906_v22 }
 0x4e2   : > { %v1917_v42 = vmul.f32 %v4362_v59, %v1913_v53  ;;  %v1911_v55 = vadd.f32 1.4214138, %v1907_v19 }
 0x4e3   : > { %v1916_v49 = vmul.f32 %v4364_v63, %v1912_v62  ;;  %v1914_v26 = vadd.f32 1.4214138, %v1910_v17  ;;  %v3941_v17 = vld [vmem:[%s5941_s6 + $0x58] sm:$0xff] }
 0x4e4   : > { %v1921_v31 = vadd.f32 -0.28449672, %v1917_v42  ;;  %v1915_v24 = vmul.f32 %v4366_v2, %v1911_v55  ;;  %v1873_v42 = vmul.f32 0.5, %v5254_v15  ;;  %v1874_v15 = vmul.f32 0.5, %v5260_v58 }
 0x4e5   : > { %v1920_v29 = vadd.f32 -0.28449672, %v1916_v49  ;;  %v1918_v28 = vmul.f32 %v4368_v48, %v1914_v26  ;;  %v3951_v26 = vld [vmem:[%s5944_s9 + $0x48] sm:$0xff] }
 0x4e6   : > { %v1925_v37 = vmul.f32 %v4362_v59, %v1921_v31  ;;  %v1919_v34 = vadd.f32 -0.28449672, %v1915_v24  ;;  %v3942_v24 = vld [vmem:[%s5942_s7 + $0x40] sm:$0xff] }
 0x4e7   : > { %v1924_v27 = vmul.f32 %v4364_v63, %v1920_v29  ;;  %v1922_v61 = vadd.f32 -0.28449672, %v1918_v28  ;;  %v3939_v29 = vld [vmem:[%s5941_s6 + $0x48] sm:$0xff] }
 0x4e8   : > { %v1929_v47 = vadd.f32 0.2548296, %v1925_v37  ;;  %v1923_v36 = vmul.f32 %v4366_v2, %v1919_v34  ;;  %v3945_v37 = vld [vmem:[%s5942_s7 + $0x58] sm:$0xff]  ;;  %v3944_v34 = vld [vmem:[%s5942_s7 + $0x50] sm:$0xff]  ;;  %v3959_v28 = vld [vmem:[%s5945_s10 + $0x48] sm:$0xff] }
 0x4e9   : > { %v1928_v43 = vadd.f32 0.2548296, %v1924_v27  ;;  %v1926_v6 = vmul.f32 %v4368_v48, %v1922_v61  ;;  %v3940_v27 = vld [vmem:[%s5941_s6 + $0x50] sm:$0xff]  ;;  %v3961_v61 = vld [vmem:[%s5945_s10 + $0x58] sm:$0xff] }
 0x4ea   : > { %v1933_v33 = vmul.f32 %v4362_v59, %v1929_v47  ;;  %v1927_v56 = vadd.f32 0.2548296, %v1923_v36  ;;  %v3953_v47 = vld [vmem:[%s5944_s9 + $0x58] sm:$0xff]  ;;  %v3952_v36 = vld [vmem:[%s5944_s9 + $0x50] sm:$0xff] }
 0x4eb   : > { %v1932_v39 = vmul.f32 %v4364_v63, %v1928_v43  ;;  %v1930_v35 = vadd.f32 0.2548296, %v1926_v6  ;;  %v3950_v43 = vld [vmem:[%s5944_s9 + $0x40] sm:$0xff]  ;;  %v2673_v6 = vld [vmem:[%s5948_s13 + $0x18] sm:$0xff] }
 0x4ec   : > { %v1953_v57 = vmul.f32 %v4370_v45, %v1933_v33  ;;  %v1931_v23 = vmul.f32 %v4366_v2, %v1927_v56  ;;  %v3963_v33 = vld [vmem:[%s5946_s11 + $0x48] sm:$0xff]  ;;  %v3958_v45 = vld [vmem:[%s5945_s10 + $0x40] sm:$0xff]  ;;  %v3960_v56 = vld [vmem:[%s5945_s10 + $0x50] sm:$0xff] }
 0x4ed   : > { %v1952_v60 = vmul.f32 %v4372_v52, %v1932_v39  ;;  %v1934_v54 = vmul.f32 %v4368_v48, %v1930_v35  ;;  %v3965_v39 = vld [vmem:[%s5946_s11 + $0x58] sm:$0xff]  ;;  %v3962_v52 = vld [vmem:[%s5946_s11 + $0x40] sm:$0xff] }
 0x4ee   : > { %v1957_v0 = vsub.f32 1.0, %v1953_v57  ;;  %v1951_v51 = vmul.f32 %v4374_v3, %v1931_v23  ;;  %v2672_v57 = vld [vmem:[%s5948_s13 + $0x10] sm:$0xff]  ;;  %v2671_v23 = vld [vmem:[%s5948_s13 + $0x8] sm:$0xff]  ;;  %v2677_v35 = vld [vmem:[%s5948_s13 + $0x38] sm:$0x3] }
 0x4ef   : > { %v1956_v4 = vsub.f32 1.0, %v1952_v60  ;;  %v1954_v9 = vmul.f32 %v4376_v7, %v1934_v54  ;;  %v3964_v60 = vld [vmem:[%s5946_s11 + $0x50] sm:$0xff]  ;;  %v2670_v3 = vld [vmem:[%s5948_s13] sm:$0xff]  ;;  %v2062_v7 = vpop.permute.xlu0 %2061 }
 0x4f0   : > { %v1965_v5 = vsub.f32 0.0, %v1957_v0  ;;  %v1955_v63 = vsub.f32 1.0, %v1951_v51  ;;  %v2676_v51 = vld [vmem:[%s5948_s13 + $0x30] sm:$0xff] }
 0x4f1   : > { %v1964_v1 = vsub.f32 0.0, %v1956_v4  ;;  %v1958_v12 = vsub.f32 1.0, %v1954_v9 }
 0x4f2   : > { %v1969_v59 = vsel %vm1961_vm2, %v1957_v0, %v1965_v5  ;;  %v1963_v2 = vsub.f32 0.0, %v1955_v63  ;;  %v2675_v0 = vld [vmem:[%s5948_s13 + $0x28] sm:$0xff]  ;;  %v2674_v5 = vld [vmem:[%s5948_s13 + $0x20] sm:$0xff]  ;;  %vm2995_vm2 = vcmask 1047554  }
 0x4f3   : > { %v1968_v10 = vsel %vm1960_vm3, %v1956_v4, %v1964_v1  ;;  %v1973_v13 = vadd.f32 1.0, %v1969_v59  ;;  %v1966_v18 = vsub.f32 0.0, %v1958_v12  ;;  %v2035_v4 = vpop.permute.xlu1 %2034  ;;  %v2105_v59 = vpop.permute.xlu0 %2104  ;;  %vm2997_vm3 = vcmask 1043456  }
 0x4f4   : > { %v1972_v53 = vadd.f32 1.0, %v1968_v10  ;;  %v1967_v48 = vsel %vm1959_vm4, %v1955_v63, %v1963_v2  ;;  %vm3298_vm4 = vcmask 1047557  }
 0x4f5   : > { %v1971_v30 = vadd.f32 1.0, %v1967_v48  ;;  %v1970_v14 = vsel %vm1962_vm5, %v1958_v12, %v1966_v18  ;;  %v1977_v22 = vmul.f32 %v1973_v13, %v1873_v42  ;;  %v3946_v48 = vld [vmem:[%s5943_s8 + $0x40] sm:$0xff]  ;;  %vm3300_vm5 = vcmask 1046528  }
 0x4f6   : > { %v1976_v62 = vmul.f32 %v1972_v53, %v1872_v11  ;;  %v1974_v21 = vadd.f32 1.0, %v1970_v14  ;;  %4103 = vmatprep.mubr.msk.f32.mxu0 %vm1006_vm0, %v3946_v48 }
 0x4f7   : > { %v1975_v49 = vmul.f32 %v1971_v30, %v1871_v8  ;;  %v2000_v54 = vpop.permute.xlu1 %1999  ;;  %v2109_v9 = vpop.permute.xlu0 %2108 }
 0x4f8   : > { %v5286_v19 = vadd.f32 %v1976_v62, %v5038_v32  ;;  %v5298_v32 = vadd.f32 %v1977_v22, %v5053_v44  ;;  %v1978_v16 = vmul.f32 %v1974_v21, %v1874_v15  ;;  %v3938_v44 = vld [vmem:[%s5941_s6 + $0x40] sm:$0xff] }
 0x4f9   : > { %v5293_v31 = vadd.f32 %v1975_v49, %v5048_v40  ;;  %v5307_v40 = vld [vmem:[%s4795_s20] ss:$0 sm:$0xff] }
 0x4fa   : > { %v5290_v25 = vmul.f32 %v5041_v38, %v5286_v19  ;;  %v5311_v58 = vmul.f32 %v5307_v40, %v5298_v32  ;;  %v5314_v55 = vadd.f32 %v1978_v16, %v5066_v46  ;;  %v3943_v46 = vld [vmem:[%s5942_s7 + $0x48] sm:$0xff] }
 0x4fb   : > { %v5302_v50 = vmul.f32 %v5041_v38, %v5293_v31  ;;  %v2045_v1 = vpop.permute.xlu1 %2044  ;;  %v2113_v11 = vpop.permute.xlu0 %2112 }
 0x4fc   : > { %2019 = vrot.lane.b32.xlu0 %v5290_v25, %s4579_s27  ;;  %v5320_v38 = vmul.f32 %v5307_v40, %v5314_v55 }
 0x4fd   : > { %2017 = vrot.lane.b32.xlu1 %v5302_v50, %s4579_s27 }
 0x4ff   : > { %v2066_v63 = vpop.permute.xlu1 %2065  ;;  %v2040_v2 = vpop.permute.xlu0 %2039 }
 0x500   : > { %2084 = vrot.lane.b32.xlu0 %v5302_v50, %s4580_s29 }
 0x501   : > { %2021 = vrot.lane.b32.xlu1 %v5311_v58, %s4579_s27 }
 0x503   : > { %v2010_v10 = vpop.permute.xlu1 %2009  ;;  %v2005_v13 = vpop.permute.xlu0 %2004 }
 0x504   : > { %2088 = vrot.lane.b32.xlu0 %v5311_v58, %s4580_s29 }
 0x505   : > { %2023 = vrot.lane.b32.xlu1 %v5320_v38, %s4579_s27 }
 0x507   : > { %v2070_v53 = vpop.permute.xlu1 %2069  ;;  %v2050_v18 = vpop.permute.xlu0 %2049 }
 0x508   : > { %2171 = vperm.xlu0 %4303, %v3938_v44  }
 0x509   : > { %2086 = vrot.lane.b32.xlu1 %v5290_v25, %s4580_s29 }
 0x50b   : > { %v2101_v12 = vpop.permute.xlu1 %2100 }
 0x50c   : > { %2200 = vperm.xlu0 %4303, %v3943_v46  }
 0x50d   : > { %2090 = vrot.lane.b32.xlu1 %v5320_v38, %s4580_s29 }
 0x50f   : > { %v2015_v62 = vpop.permute.xlu1 %2014 }
 0x510   : > { %2186 = vperm.xlu0 %4303, %v3941_v17  }
 0x511   : > { %2176 = vperm.xlu1 %4304, %v3939_v29  }
 0x513   : > { %v2074_v42 = vpop.permute.xlu1 %2073 }
 0x514   : > { %2210 = vperm.xlu0 %4303, %v3945_v37  }
 0x515   : > { %2195 = vperm.xlu1 %4304, %v3942_v24   ;;  %v2076_v24 = vmul.f32 %v2062_v7, %v5302_v50 }
 0x518   : > { %2342 = vperm.xlu0 %4303, %v3951_v26  }
 0x519   : > { %2181 = vperm.xlu1 %4304, %v3940_v27  }
 0x51c   : > { %2352 = vperm.xlu0 %4303, %v3953_v47  }
 0x51d   : > { %2205 = vperm.xlu1 %4304, %v3944_v34  }
 0x520   : > { %2505 = vperm.xlu0 %4303, %v3959_v28  }
 0x521   : > { %2337 = vperm.xlu1 %4304, %v3950_v43  }
 0x524   : > { %2529 = vperm.xlu0 %4303, %v3963_v33   ;;  %v2078_v33 = vmul.f32 %v2070_v53, %v5311_v58 }
 0x525   : > { %2347 = vperm.xlu1 %4304, %v3952_v36  }
 0x528   : > { %2515 = vperm.xlu0 %4303, %v3961_v61  }
 0x529   : > { %2500 = vperm.xlu1 %4304, %v3958_v45   ;;  %v2077_v45 = vmul.f32 %v2066_v63, %v5290_v25 }
 0x52c   : > { %2539 = vperm.xlu0 %4303, %v3965_v39  }
 0x52d   : > { %2524 = vperm.xlu1 %4304, %v3962_v52  }
 0x530   : > { %2690 = vperm.xlu0 %4303, %v2672_v57  }
 0x531   : > { %2510 = vperm.xlu1 %4304, %v3960_v56  }
 0x534   : > { %2695 = vperm.xlu0 %4303, %v2673_v6  }
 0x535   : > { %2534 = vperm.xlu1 %4304, %v3964_v60  }
 0x538   : > { %2705 = vperm.xlu0 %4303, %v2675_v0  }
 0x539   : > { %2685 = vperm.xlu1 %4304, %v2671_v23   ;;  %v2079_v23 = vmul.f32 %v2074_v42, %v5320_v38 }
 0x53c   : > { %2715 = vperm.xlu0 %4303, %v2677_v35  }
 0x53d   : > { %2680 = vperm.xlu1 %4304, %v2670_v3  }
 0x541   : > { %2700 = vperm.xlu1 %4304, %v2674_v5  }
 0x545   : > { %2710 = vperm.xlu1 %4304, %v2676_v51  }
 0x56e   : > { %v2020_v8 = vpop.permute.xlu0 %2019 }
 0x56f   : > { %v2018_v30 = vpop.permute.xlu1 %2017  ;;  %v2029_v21 = vsel %vm2025_vm6, %v2020_v8, 0.0 }
 0x570   : > { %v2028_v14 = vsel %vm2025_vm6, %v2018_v30, 0.0  ;;  %v2053_v46 = vmul.f32 %v2040_v2, %v2029_v21 }
 0x571   : > { %v2052_v49 = vmul.f32 %v2035_v4, %v2028_v14 }
 0x572   : > { %v2085_v22 = vpop.permute.xlu0 %2084  ;;  %v2057_v36 = vadd.f32 %v2053_v46, %v2005_v13 }
 0x573   : > { %v2022_v15 = vpop.permute.xlu1 %2021  ;;  %v2056_v16 = vadd.f32 %v2052_v49, %v2000_v54  ;;  %v2095_v17 = vsel %vm2092_vm7, %v2085_v22, 0.0 }
 0x574   : > { %v2030_v44 = vsel %vm2025_vm6, %v2022_v15, 0.0  ;;  %v2115_v34 = vmul.f32 %v2101_v12, %v2095_v17  ;;  %v2081_v60 = vadd.f32 %v2077_v45, %v2057_v36 }
 0x575   : > { %v2054_v29 = vmul.f32 %v2045_v1, %v2030_v44  ;;  %v2080_v47 = vadd.f32 %v2076_v24, %v2056_v16 }
 0x576   : > { %v2089_v37 = vpop.permute.xlu0 %2088 }
 0x577   : > { %v2058_v26 = vadd.f32 %v2054_v29, %v2010_v10  ;;  %v2024_v27 = vpop.permute.xlu1 %2023  ;;  %v2097_v28 = vsel %vm2092_vm7, %v2089_v37, 0.0  ;;  %v2119_v50 = vadd.f32 %v2115_v34, %v2080_v47 }
 0x578   : > { %v2031_v43 = vsel %vm2025_vm6, %v2024_v27, 0.0  ;;  %v2117_v52 = vmul.f32 %v2109_v9, %v2097_v28  ;;  %vm3428_vm6 = vcmask 1047559  }
 0x579   : > { %v2055_v61 = vmul.f32 %v2050_v18, %v2031_v43  ;;  %v2082_v39 = vadd.f32 %v2078_v33, %v2058_v26  ;;  %v2142_v58 = vmul.f32 %v2119_v50, %v2119_v50 }
 0x57b   : > { %v2087_v57 = vpop.permute.xlu1 %2086  ;;  %v2059_v6 = vadd.f32 %v2055_v61, %v2015_v62  ;;  %v2121_v35 = vadd.f32 %v2117_v52, %v2082_v39 }
 0x57c   : > { %v2096_v56 = vsel %vm2092_vm7, %v2087_v57, 0.0 }
 0x57d   : > { %v2116_v0 = vmul.f32 %v2105_v59, %v2096_v56  ;;  %v2083_v54 = vadd.f32 %v2079_v23, %v2059_v6  ;;  %v2144_v1 = vmul.f32 %v2121_v35, %v2121_v35 }
 0x57f   : > { %v2120_v3 = vadd.f32 %v2116_v0, %v2081_v60  ;;  %v2091_v4 = vpop.permute.xlu1 %2090 }
 0x580   : > { %v2098_v5 = vsel %vm2092_vm7, %v2091_v4, 0.0  ;;  %vm3154_vm7 = vcmask 1040384  }
 0x581   : > { %v2133_v25 = vadd.f32 %v2120_v3, %v2119_v50  ;;  %v2143_v51 = vmul.f32 %v2120_v3, %v2120_v3  ;;  %v2118_v7 = vmul.f32 %v2113_v11, %v2098_v5 }
 0x583   : > { %v2146_v63 = vadd.f32 %v2143_v51, %v2142_v58  ;;  %v2122_v9 = vadd.f32 %v2118_v7, %v2083_v54  ;;  %v2134_v10 = vadd.f32 %v2133_v25, %v2121_v35 }
 0x585   : > { %v2135_v53 = vadd.f32 %v2134_v10, %v2122_v9  ;;  %v2145_v2 = vmul.f32 %v2122_v9, %v2122_v9  ;;  %v2147_v59 = vadd.f32 %v2146_v63, %v2144_v1 }
 0x587   : > { %v2136_v12 = vrot.slane %v2135_v53, 4  ;;  %v2148_v38 = vadd.f32 %v2147_v59, %v2145_v2  ;;  %v2172_v37 = vpop.permute.xlu0 %2171 }
 0x589   : > { %v2137_v13 = vadd.f32 %v2136_v12, %v2135_v53  ;;  %v2149_v62 = vrot.slane %v2148_v38, 4 }
 0x58b   : > { %v2138_v48 = vrot.slane %v2137_v13, 2  ;;  %v2150_v18 = vadd.f32 %v2149_v62, %v2148_v38  ;;  %v2201_v27 = vpop.permute.xlu0 %2200 }
 0x58d   : > { %v2139_v42 = vadd.f32 %v2138_v48, %v2137_v13  ;;  %v2151_v41 = vrot.slane %v2150_v18, 2 }
 0x58f   : > { %v2140_v8 = vrot.slane %v2139_v42, 1  ;;  %v2152_v30 = vadd.f32 %v2151_v41, %v2150_v18  ;;  %v2187_v34 = vpop.permute.xlu0 %2186 }
 0x590   : > { %v2177_v24 = vpop.permute.xlu1 %2176 }
 0x591   : > { %v2141_v14 = vadd.f32 %v2140_v8, %v2139_v42  ;;  %v2153_v22 = vrot.slane %v2152_v30, 1 }
 0x593   : > { %v2154_v11 = vadd.f32 %v2153_v22, %v2152_v30  ;;  %v2155_v49 = vmul.f32 0.03125, %v2141_v14  ;;  %v2211_v56 = vpop.permute.xlu0 %2210 }
 0x594   : > { %v2196_v47 = vpop.permute.xlu1 %2195 }
 0x595   : > { %v2156_v21 = vmul.f32 0.03125, %v2154_v11  ;;  %v2157_v15 = vmul.f32 %v2155_v49, %v2155_v49  ;;  %v2159_v16 = vsub.f32 %v2119_v50, %v2155_v49  ;;  %v2162_v44 = vsub.f32 %v2122_v9, %v2155_v49 }
 0x596   : > { %v2160_v46 = vsub.f32 %v2120_v3, %v2155_v49  ;;  %v2161_v17 = vsub.f32 %v2121_v35, %v2155_v49 }
 0x597   : > { %v2158_v29 = vsub.f32 %v2156_v21, %v2157_v15 }
 0x598   : > { %v2182_v28 = vpop.permute.xlu1 %2181 }
 0x599   : > { %v2163_v26 = vadd.f32 1e-05, %v2158_v29 }
 0x59b   : > { %4377 = vrsqrt.f32 %v2163_v26 }
 0x59c   : > { %v2206_v6 = vpop.permute.xlu1 %2205 }
 0x5a5   : > { %v4378_v43 = vpop.eup %4377 }
 0x5a6   : > { %v2165_v33 = vmul.f32 %v4378_v43, %v2159_v16  ;;  %v2168_v36 = vmul.f32 %v4378_v43, %v2162_v44  ;;  %v2166_v61 = vmul.f32 %v4378_v43, %v2160_v46  ;;  %v2167_v45 = vmul.f32 %v4378_v43, %v2161_v17 }
 0x5a8   : > { %v2189_v39 = vmul.f32 %v2172_v37, %v2165_v33  ;;  %v2192_v52 = vmul.f32 %v2187_v34, %v2168_v36  ;;  %v2190_v57 = vmul.f32 %v2177_v24, %v2166_v61  ;;  %v2191_v50 = vmul.f32 %v2182_v28, %v2167_v45 }
 0x5aa   : > { %v5435_v60 = vadd.f32 %v2201_v27, %v2190_v57  ;;  %v5437_v0 = vadd.f32 %v2211_v56, %v2192_v52  ;;  %v5439_v23 = vadd.f32 %v2196_v47, %v2189_v39  ;;  %v5441_v35 = vadd.f32 %v2206_v6, %v2191_v50 }
 0x5ac   : > { %v5444_v3 = vmul.f32 0.70710677, %v5435_v60  ;;  %v5447_v4 = vmul.f32 0.70710677, %v5437_v0  ;;  %v5450_v58 = vmul.f32 0.70710677, %v5439_v23 }
 0x5ad   : > { %v5453_v5 = vmul.f32 0.70710677, %v5441_v35 }
 0x5ae   : > { %v2226_v25 = vand.u32 2147483647, %v5444_v3  ;;  %v2228_v51 = vand.u32 2147483647, %v5447_v4  ;;  %v2225_v54 = vand.u32 2147483647, %v5450_v58 }
 0x5af   : > { %v2227_v7 = vand.u32 2147483647, %v5453_v5  ;;  %vm2306_vm8 = vcmp.ge.f32.partialorder %v5444_v3, 0.0  ;;  %vm2308_vm9 = vcmp.ge.f32.partialorder %v5447_v4, 0.0  ;;  %vm2305_vm10 = vcmp.ge.f32.partialorder %v5450_v58, 0.0 }
 0x5b0   : > { %v2230_v1 = vmul.f32 0.3275911, %v2226_v25  ;;  %v2232_v63 = vmul.f32 0.3275911, %v2228_v51  ;;  %v2229_v9 = vmul.f32 0.3275911, %v2225_v54 }
 0x5b1   : > { %v2231_v2 = vmul.f32 0.3275911, %v2227_v7  ;;  %v2282_v38 = vsub.f32 0.0, %v2226_v25  ;;  %v2284_v13 = vsub.f32 0.0, %v2228_v51  ;;  %v2281_v18 = vsub.f32 0.0, %v2225_v54 }
 0x5b2   : > { %v2234_v10 = vadd.f32 1.0, %v2230_v1  ;;  %v2236_v53 = vadd.f32 1.0, %v2232_v63  ;;  %v2233_v59 = vadd.f32 1.0, %v2229_v9  ;;  %v2283_v14 = vsub.f32 0.0, %v2227_v7 }
 0x5b3   : > { %v2235_v12 = vadd.f32 1.0, %v2231_v2  ;;  %v2286_v48 = vmul.f32 %v2282_v38, %v2226_v25  ;;  %v2288_v41 = vmul.f32 %v2284_v13, %v2228_v51  ;;  %v2285_v15 = vmul.f32 %v2281_v18, %v2225_v54 }
 0x5b4   : > { %4379 = vrcp.f32 %v2234_v10  ;;  %v2287_v37 = vmul.f32 %v2283_v14, %v2227_v7  ;;  %v2217_v3 = vmul.f32 0.5, %v5439_v23  ;;  %vm2307_vm11 = vcmp.ge.f32.partialorder %v5453_v5, 0.0  ;;  %v3948_v23 = vld [vmem:[%s5943_s8 + $0x50] sm:$0xff]  ;;  %v2662_v5 = vld [vmem:[%s5947_s12] sm:$0xff] }
 0x5b5   : > { %4381 = vrcp.f32 %v2236_v53  ;;  %v2291_v49 = vmul.f32 1.442695, %v2286_v48  ;;  %v2295_v16 = vmul.f32 1.442695, %v2288_v41  ;;  %v2289_v34 = vmul.f32 1.442695, %v2285_v15  ;;  %4117 = vmatprep.mubr.msk.f32.mxu1 %vm1006_vm0, %v2662_v5 }
 0x5b6   : > { %4383 = vrcp.f32 %v2233_v59  ;;  %v2293_v61 = vmul.f32 1.442695, %v2287_v37 }
 0x5b7   : > { %4385 = vrcp.f32 %v2235_v12 }
 0x5b8   : > { %4387 = vpow2.f32 %v2291_v49 }
 0x5b9   : > { %4389 = vpow2.f32 %v2295_v16 }
 0x5ba   : > { %4391 = vpow2.f32 %v2289_v34 }
 0x5bb   : > { %4393 = vpow2.f32 %v2293_v61 }
 0x5be   : > { %v4380_v62 = vpop.eup %4379 }
 0x5bf   : > { %v4382_v42 = vpop.eup %4381  ;;  %v2246_v8 = vmul.f32 1.0614054, %v4380_v62 }
 0x5c0   : > { %v2248_v30 = vmul.f32 1.0614054, %v4382_v42  ;;  %v4384_v11 = vpop.eup %4383 }
 0x5c1   : > { %v2250_v22 = vadd.f32 -1.4531521, %v2246_v8  ;;  %v2245_v44 = vmul.f32 1.0614054, %v4384_v11  ;;  %v4386_v17 = vpop.eup %4385 }
 0x5c2   : > { %v2252_v21 = vadd.f32 -1.4531521, %v2248_v30  ;;  %v2247_v26 = vmul.f32 1.0614054, %v4386_v17  ;;  %v4388_v53 = vpop.eup %4387 }
 0x5c3   : > { %v2254_v46 = vmul.f32 %v4380_v62, %v2250_v22  ;;  %v2249_v24 = vadd.f32 -1.4531521, %v2245_v44  ;;  %v4390_v59 = vpop.eup %4389 }
 0x5c4   : > { %v2256_v29 = vmul.f32 %v4382_v42, %v2252_v21  ;;  %v2251_v43 = vadd.f32 -1.4531521, %v2247_v26  ;;  %v4392_v30 = vpop.eup %4391 }
 0x5c5   : > { %v2258_v27 = vadd.f32 1.4214138, %v2254_v46  ;;  %v2253_v28 = vmul.f32 %v4384_v11, %v2249_v24  ;;  %v4394_v15 = vpop.eup %4393  ;;  %v2218_v24 = vmul.f32 0.5, %v5435_v60 }
 0x5c6   : > { %v2260_v47 = vadd.f32 1.4214138, %v2256_v29  ;;  %v2255_v39 = vmul.f32 %v4386_v17, %v2251_v43 }
 0x5c7   : > { %v2262_v33 = vmul.f32 %v4380_v62, %v2258_v27  ;;  %v2257_v45 = vadd.f32 1.4214138, %v2253_v28 }
 0x5c8   : > { %v2264_v36 = vmul.f32 %v4382_v42, %v2260_v47  ;;  %v2259_v56 = vadd.f32 1.4214138, %v2255_v39  ;;  %v2343_v39 = vpop.permute.xlu0 %2342 }
 0x5c9   : > { %v2266_v52 = vadd.f32 -0.28449672, %v2262_v33  ;;  %v2261_v50 = vmul.f32 %v4384_v11, %v2257_v45 }
 0x5ca   : > { %v2268_v57 = vadd.f32 -0.28449672, %v2264_v36  ;;  %v2263_v54 = vmul.f32 %v4386_v17, %v2259_v56  ;;  %v2219_v36 = vmul.f32 0.5, %v5441_v35  ;;  %v3949_v35 = vld [vmem:[%s5943_s8 + $0x58] sm:$0xff] }
 0x5cb   : > { %v2270_v6 = vmul.f32 %v4380_v62, %v2266_v52  ;;  %v2265_v51 = vadd.f32 -0.28449672, %v2261_v50  ;;  %v2338_v52 = vpop.permute.xlu1 %2337 }
 0x5cc   : > { %v2272_v25 = vmul.f32 %v4382_v42, %v2268_v57  ;;  %v2267_v9 = vadd.f32 -0.28449672, %v2263_v54 }
 0x5cd   : > { %v2274_v7 = vadd.f32 0.2548296, %v2270_v6  ;;  %v2269_v63 = vmul.f32 %v4384_v11, %v2265_v51  ;;  %v2353_v51 = vpop.permute.xlu0 %2352 }
 0x5ce   : > { %v2276_v1 = vadd.f32 0.2548296, %v2272_v25  ;;  %v2271_v38 = vmul.f32 %v4386_v17, %v2267_v9 }
 0x5cf   : > { %v2278_v10 = vmul.f32 %v4380_v62, %v2274_v7  ;;  %v2273_v12 = vadd.f32 0.2548296, %v2269_v63  ;;  %v2348_v63 = vpop.permute.xlu1 %2347 }
 0x5d0   : > { %v2280_v2 = vmul.f32 %v4382_v42, %v2276_v1  ;;  %v2275_v41 = vadd.f32 0.2548296, %v2271_v38 }
 0x5d1   : > { %v2298_v13 = vmul.f32 %v4388_v53, %v2278_v10  ;;  %v2277_v18 = vmul.f32 %v4384_v11, %v2273_v12 }
 0x5d2   : > { %v2300_v48 = vmul.f32 %v4390_v59, %v2280_v2  ;;  %v2279_v49 = vmul.f32 %v4386_v17, %v2275_v41  ;;  %v2220_v17 = vmul.f32 0.5, %v5437_v0  ;;  %v3947_v0 = vld [vmem:[%s5943_s8 + $0x48] sm:$0xff] }
 0x5d3   : > { %v2302_v8 = vsub.f32 1.0, %v2298_v13  ;;  %v2297_v22 = vmul.f32 %v4392_v30, %v2277_v18 }
 0x5d4   : > { %v2304_v14 = vsub.f32 1.0, %v2300_v48  ;;  %v2299_v42 = vmul.f32 %v4394_v15, %v2279_v49 }
 0x5d5   : > { %v2310_v21 = vsub.f32 0.0, %v2302_v8  ;;  %v2301_v62 = vsub.f32 1.0, %v2297_v22 }
 0x5d6   : > { %v2312_v16 = vsub.f32 0.0, %v2304_v14  ;;  %v2303_v11 = vsub.f32 1.0, %v2299_v42 }
 0x5d7   : > { %v2314_v44 = vsel %vm2306_vm8, %v2302_v8, %v2310_v21  ;;  %v2309_v37 = vsub.f32 0.0, %v2301_v62  ;;  %vm3014_vm8 = vcmask 1045504  }
 0x5d8   : > { %v2316_v46 = vsel %vm2308_vm9, %v2304_v14, %v2312_v16  ;;  %v2318_v29 = vadd.f32 1.0, %v2314_v44  ;;  %v2311_v47 = vsub.f32 0.0, %v2303_v11  ;;  %vm3148_vm9 = vcmask 1044480  }
 0x5d9   : > { %v2320_v26 = vadd.f32 1.0, %v2316_v46  ;;  %v2313_v27 = vsel %vm2305_vm10, %v2301_v62, %v2309_v37  ;;  %vm3169_vm10 = vcmask 1042432  }
 0x5da   : > { %v2317_v34 = vadd.f32 1.0, %v2313_v27  ;;  %v2322_v4 = vmul.f32 %v2318_v29, %v2218_v24  ;;  %v2315_v28 = vsel %vm2307_vm11, %v2303_v11, %v2311_v47  ;;  %v2506_v27 = vpop.permute.xlu0 %2505  ;;  %v2501_v47 = vpop.permute.xlu1 %2500  ;;  %vm4581_vm11 = vmmov 1  }
 0x5db   : > { %v2324_v43 = vmul.f32 %v2320_v26, %v2220_v17  ;;  %v2319_v61 = vadd.f32 1.0, %v2315_v28 }
 0x5dc   : > { %v2321_v33 = vmul.f32 %v2317_v34, %v2217_v3 }
 0x5dd   : > { %v2323_v60 = vmul.f32 %v2319_v61, %v2219_v36 }
 0x5de   : > { %v4173_v45 = vpack.c.bf16 %v2322_v4, %v2321_v33  ;;  %v2530_v4 = vpop.permute.xlu0 %2529  ;;  %v2525_v28 = vpop.permute.xlu1 %2524 }
 0x5df   : > { %v4177_v58 = vpack.c.bf16 %v2324_v43, %v2323_v60 }
 0x5e0   : > { %4174 = vmatprep.subr.bf16.mxu0 %v4173_v45 }
 0x5e1   : > { %4176 = vmatpush3.bf16.msra.mxu0 %v4173_v45 }
 0x5e2   : > { %4178 = vmatprep.subr.bf16.mxu0 %v4177_v58  ;;  %v2516_v43 = vpop.permute.xlu0 %2515  ;;  %v2511_v33 = vpop.permute.xlu1 %2510 }
 0x5e5   : > { %4180 = vmatpush3.bf16.msra.mxu0 %v4177_v58 }
 0x5e8   : > { %4104 = vmatmul.mubr.msk.f32.vlgmr.msra.gmra.mrb[4].mxu0 %vm1006_vm0, %v3947_v0 }
 0x5e9   : > { %4106 = vmatprep.mubr.msk.f32.mxu0 %vm1006_vm0, %v3948_v23 }
 0x5ec   : > { %4107 = vmatmul.mubr.msk.f32.gmra.mrb[6].mxu0 %vm1006_vm0, %v3949_v35 }
 0x6bb   : > { %v4105_v57 = vpop.f32.mrb[4].mxu0 }
 0x6bc   : > { %v2439_v50 = vadd.f32 %v4105_v57, %v2343_v39  ;;  %v2433_v56 = vpop.f32.mrb[5].mxu0  ;;  %v2540_v39 = vpop.permute.xlu0 %2539 }
 0x6bd   : > { %v2434_v6 = vadd.f32 %v2433_v56, %v2338_v52  ;;  %v2535_v52 = vpop.permute.xlu1 %2534 }
 0x6be   : > { %v2472_v25 = vmul.f32 %v2439_v50, %v2439_v50 }
 0x6bf   : > { %v2462_v54 = vadd.f32 %v2439_v50, %v2434_v6  ;;  %v2471_v7 = vmul.f32 %v2434_v6, %v2434_v6  ;;  %v4108_v1 = vpop.f32.mrb[6].mxu0 }
 0x6c0   : > { %v2443_v9 = vpop.f32.mrb[7].mxu0  ;;  %v2449_v53 = vadd.f32 %v4108_v1, %v2353_v51 }
 0x6c1   : > { %v2475_v10 = vadd.f32 %v2472_v25, %v2471_v7  ;;  %v2444_v2 = vadd.f32 %v2443_v9, %v2348_v63 }
 0x6c2   : > { %v2474_v38 = vmul.f32 %v2449_v53, %v2449_v53 }
 0x6c3   : > { %v2463_v59 = vadd.f32 %v2462_v54, %v2444_v2  ;;  %v2473_v12 = vmul.f32 %v2444_v2, %v2444_v2 }
 0x6c5   : > { %v2464_v13 = vadd.f32 %v2463_v59, %v2449_v53  ;;  %v2476_v48 = vadd.f32 %v2475_v10, %v2473_v12 }
 0x6c7   : > { %v2465_v18 = vrot.slane %v2464_v13, 4  ;;  %v2477_v41 = vadd.f32 %v2476_v48, %v2474_v38 }
 0x6c9   : > { %v2466_v8 = vadd.f32 %v2465_v18, %v2464_v13  ;;  %v2478_v30 = vrot.slane %v2477_v41, 4 }
 0x6cb   : > { %v2467_v14 = vrot.slane %v2466_v8, 2  ;;  %v2479_v22 = vadd.f32 %v2478_v30, %v2477_v41 }
 0x6cd   : > { %v2468_v49 = vadd.f32 %v2467_v14, %v2466_v8  ;;  %v2480_v21 = vrot.slane %v2479_v22, 2 }
 0x6cf   : > { %v2469_v15 = vrot.slane %v2468_v49, 1  ;;  %v2481_v16 = vadd.f32 %v2480_v21, %v2479_v22 }
 0x6d1   : > { %v2470_v62 = vadd.f32 %v2469_v15, %v2468_v49  ;;  %v2482_v42 = vrot.slane %v2481_v16, 1 }
 0x6d3   : > { %v2483_v44 = vadd.f32 %v2482_v42, %v2481_v16  ;;  %v2484_v46 = vmul.f32 0.03125, %v2470_v62 }
 0x6d5   : > { %v2485_v29 = vmul.f32 0.03125, %v2483_v44  ;;  %v2486_v37 = vmul.f32 %v2484_v46, %v2484_v46  ;;  %v2490_v11 = vsub.f32 %v2444_v2, %v2484_v46  ;;  %v2488_v24 = vsub.f32 %v2434_v6, %v2484_v46 }
 0x6d6   : > { %v2489_v26 = vsub.f32 %v2439_v50, %v2484_v46  ;;  %v2491_v17 = vsub.f32 %v2449_v53, %v2484_v46 }
 0x6d7   : > { %v2487_v3 = vsub.f32 %v2485_v29, %v2486_v37 }
 0x6d9   : > { %v2492_v34 = vadd.f32 1e-05, %v2487_v3 }
 0x6db   : > { %4395 = vrsqrt.f32 %v2492_v34 }
 0x6e5   : > { %v4396_v36 = vpop.eup %4395 }
 0x6e6   : > { %v2496_v61 = vmul.f32 %v4396_v36, %v2490_v11  ;;  %v2494_v60 = vmul.f32 %v4396_v36, %v2488_v24  ;;  %v2495_v45 = vmul.f32 %v4396_v36, %v2489_v26  ;;  %v2497_v58 = vmul.f32 %v4396_v36, %v2491_v17 }
 0x6e8   : > { %v2520_v0 = vmul.f32 %v2511_v33, %v2496_v61  ;;  %v2518_v23 = vmul.f32 %v2501_v47, %v2494_v60  ;;  %v2519_v35 = vmul.f32 %v2506_v27, %v2495_v45  ;;  %v2521_v5 = vmul.f32 %v2516_v43, %v2497_v58 }
 0x6ea   : > { %v5483_v57 = vadd.f32 %v2535_v52, %v2520_v0  ;;  %v5485_v50 = vadd.f32 %v2525_v28, %v2518_v23  ;;  %v5487_v56 = vadd.f32 %v2530_v4, %v2519_v35  ;;  %v5489_v6 = vadd.f32 %v2540_v39, %v2521_v5 }
 0x6ec   : > { %v5492_v25 = vmul.f32 0.70710677, %v5483_v57  ;;  %v5495_v51 = vmul.f32 0.70710677, %v5485_v50  ;;  %v5498_v54 = vmul.f32 0.70710677, %v5487_v56 }
 0x6ed   : > { %v5501_v7 = vmul.f32 0.70710677, %v5489_v6 }
 0x6ee   : > { %v2556_v1 = vand.u32 2147483647, %v5492_v25  ;;  %v2554_v63 = vand.u32 2147483647, %v5495_v51  ;;  %v2555_v9 = vand.u32 2147483647, %v5498_v54 }
 0x6ef   : > { %v2557_v10 = vand.u32 2147483647, %v5501_v7  ;;  %vm2636_vm12 = vcmp.ge.f32.partialorder %v5492_v25, 0.0  ;;  %vm2634_vm13 = vcmp.ge.f32.partialorder %v5495_v51, 0.0  ;;  %vm2635_vm14 = vcmp.ge.f32.partialorder %v5498_v54, 0.0 }
 0x6f0   : > { %v2560_v53 = vmul.f32 0.3275911, %v2556_v1  ;;  %v2558_v2 = vmul.f32 0.3275911, %v2554_v63  ;;  %v2559_v59 = vmul.f32 0.3275911, %v2555_v9 }
 0x6f1   : > { %v2561_v13 = vmul.f32 0.3275911, %v2557_v10  ;;  %v2612_v41 = vsub.f32 0.0, %v2556_v1  ;;  %v2610_v8 = vsub.f32 0.0, %v2554_v63  ;;  %v2611_v30 = vsub.f32 0.0, %v2555_v9 }
 0x6f2   : > { %v2564_v12 = vadd.f32 1.0, %v2560_v53  ;;  %v2562_v38 = vadd.f32 1.0, %v2558_v2  ;;  %v2563_v48 = vadd.f32 1.0, %v2559_v59  ;;  %v2613_v62 = vsub.f32 0.0, %v2557_v10 }
 0x6f3   : > { %v2565_v18 = vadd.f32 1.0, %v2561_v13  ;;  %v2616_v22 = vmul.f32 %v2612_v41, %v2556_v1  ;;  %v2614_v21 = vmul.f32 %v2610_v8, %v2554_v63  ;;  %v2615_v44 = vmul.f32 %v2611_v30, %v2555_v9 }
 0x6f4   : > { %4397 = vrcp.f32 %v2564_v12  ;;  %v2617_v3 = vmul.f32 %v2613_v62, %v2557_v10  ;;  %vm2637_vm15 = vcmp.ge.f32.partialorder %v5501_v7, 0.0 }
 0x6f5   : > { %4399 = vrcp.f32 %v2562_v38  ;;  %v2622_v29 = vmul.f32 1.442695, %v2616_v22  ;;  %v2618_v24 = vmul.f32 1.442695, %v2614_v21  ;;  %v2620_v34 = vmul.f32 1.442695, %v2615_v44 }
 0x6f6   : > { %4401 = vrcp.f32 %v2563_v48  ;;  %v2624_v58 = vmul.f32 1.442695, %v2617_v3  ;;  %v2546_v3 = vmul.f32 0.5, %v5485_v50 }
 0x6f7   : > { %4403 = vrcp.f32 %v2565_v18 }
 0x6f8   : > { %4405 = vpow2.f32 %v2622_v29 }
 0x6f9   : > { %4407 = vpow2.f32 %v2618_v24 }
 0x6fa   : > { %4409 = vpow2.f32 %v2620_v34 }
 0x6fb   : > { %4411 = vpow2.f32 %v2624_v58 }
 0x6fe   : > { %v4398_v14 = vpop.eup %4397 }
 0x6ff   : > { %v4400_v49 = vpop.eup %4399  ;;  %v2576_v15 = vmul.f32 1.0614054, %v4398_v14 }
 0x700   : > { %v2574_v16 = vmul.f32 1.0614054, %v4400_v49  ;;  %v4402_v42 = vpop.eup %4401 }
 0x701   : > { %v2580_v46 = vadd.f32 -1.4531521, %v2576_v15  ;;  %v2575_v37 = vmul.f32 1.0614054, %v4402_v42  ;;  %v4404_v17 = vpop.eup %4403 }
 0x702   : > { %v2578_v11 = vadd.f32 -1.4531521, %v2574_v16  ;;  %v2577_v4 = vmul.f32 1.0614054, %v4404_v17  ;;  %v4406_v38 = vpop.eup %4405 }
 0x703   : > { %v2584_v26 = vmul.f32 %v4398_v14, %v2580_v46  ;;  %v2579_v27 = vadd.f32 -1.4531521, %v2575_v37  ;;  %v4408_v18 = vpop.eup %4407 }
 0x704   : > { %v2582_v47 = vmul.f32 %v4400_v49, %v2578_v11  ;;  %v2581_v36 = vadd.f32 -1.4531521, %v2577_v4  ;;  %v4410_v21 = vpop.eup %4409 }
 0x705   : > { %v2588_v28 = vadd.f32 1.4214138, %v2584_v26  ;;  %v2583_v43 = vmul.f32 %v4402_v42, %v2579_v27  ;;  %v4412_v37 = vpop.eup %4411 }
 0x706   : > { %v2586_v33 = vadd.f32 1.4214138, %v2582_v47  ;;  %v2585_v0 = vmul.f32 %v4404_v17, %v2581_v36 }
 0x707   : > { %v2592_v61 = vmul.f32 %v4398_v14, %v2588_v28  ;;  %v2587_v60 = vadd.f32 1.4214138, %v2583_v43  ;;  %v2547_v43 = vmul.f32 0.5, %v5487_v56 }
 0x708   : > { %v2590_v45 = vmul.f32 %v4400_v49, %v2586_v33  ;;  %v2589_v39 = vadd.f32 1.4214138, %v2585_v0 }
 0x709   : > { %v2596_v23 = vadd.f32 -0.28449672, %v2592_v61  ;;  %v2591_v35 = vmul.f32 %v4402_v42, %v2587_v60  ;;  %v2549_v60 = vmul.f32 0.5, %v5489_v6 }
 0x70a   : > { %v2594_v5 = vadd.f32 -0.28449672, %v2590_v45  ;;  %v2593_v9 = vmul.f32 %v4404_v17, %v2589_v39  ;;  %v2668_v39 = vld [vmem:[%s5947_s12 + $0x30] sm:$0xff] }
 0x70b   : > { %v2600_v52 = vmul.f32 %v4398_v14, %v2596_v23  ;;  %v2595_v1 = vadd.f32 -0.28449672, %v2591_v35 }
 0x70c   : > { %v2598_v63 = vmul.f32 %v4400_v49, %v2594_v5  ;;  %v2597_v59 = vadd.f32 -0.28449672, %v2593_v9  ;;  %v2667_v5 = vld [vmem:[%s5947_s12 + $0x28] sm:$0xff]  ;;  %v2691_v9 = vpop.permute.xlu0 %2690 }
 0x70d   : > { %v2604_v10 = vadd.f32 0.2548296, %v2600_v52  ;;  %v2599_v53 = vmul.f32 %v4402_v42, %v2595_v1  ;;  %v2669_v52 = vld [vmem:[%s5947_s12 + $0x38] sm:$0x3]  ;;  %v5554_v1 = vld [vmem:[%s5949_s14] sm:$0xff] }
 0x70e   : > { %v2602_v2 = vadd.f32 0.2548296, %v2598_v63  ;;  %v2601_v41 = vmul.f32 %v4404_v17, %v2597_v59  ;;  %4133 = vmatprep.mubr.msk.f32.mxu0 %vm2898_vm1, %v5554_v1  ;;  %v2686_v63 = vpop.permute.xlu1 %2685 }
 0x70f   : > { %v2608_v12 = vmul.f32 %v4398_v14, %v2604_v10  ;;  %v2603_v13 = vadd.f32 0.2548296, %v2599_v53 }
 0x710   : > { %v2606_v48 = vmul.f32 %v4400_v49, %v2602_v2  ;;  %v2605_v15 = vadd.f32 0.2548296, %v2601_v41 }
 0x711   : > { %v2628_v8 = vmul.f32 %v4406_v38, %v2608_v12  ;;  %v2607_v30 = vmul.f32 %v4402_v42, %v2603_v13  ;;  %v2548_v42 = vmul.f32 0.5, %v5483_v57  ;;  %v2696_v12 = vpop.permute.xlu0 %2695  ;;  %v5561_v13 = vld [vmem:[%s4795_s20] ss:$0 sm:$0xff] }
 0x712   : > { %v2626_v22 = vmul.f32 %v4408_v18, %v2606_v48  ;;  %v2609_v46 = vmul.f32 %v4404_v17, %v2605_v15  ;;  %v2681_v53 = vpop.permute.xlu1 %2680 }
 0x713   : > { %v2632_v16 = vsub.f32 1.0, %v2628_v8  ;;  %v2627_v62 = vmul.f32 %v4410_v21, %v2607_v30 }
 0x714   : > { %v2630_v44 = vsub.f32 1.0, %v2626_v22  ;;  %v2629_v14 = vmul.f32 %v4412_v37, %v2609_v46 }
 0x715   : > { %v2640_v29 = vsub.f32 0.0, %v2632_v16  ;;  %v2631_v11 = vsub.f32 1.0, %v2627_v62  ;;  %v2706_v46 = vpop.permute.xlu0 %2705 }
 0x716   : > { %v2638_v24 = vsub.f32 0.0, %v2630_v44  ;;  %v2633_v34 = vsub.f32 1.0, %v2629_v14 }
 0x717   : > { %v2644_v49 = vsel %vm2636_vm12, %v2632_v16, %v2640_v29  ;;  %v2639_v26 = vsub.f32 0.0, %v2631_v11  ;;  %v2701_v16 = vpop.permute.xlu1 %2700 }
 0x718   : > { %v2642_v27 = vsel %vm2634_vm13, %v2630_v44, %v2638_v24  ;;  %v2648_v47 = vadd.f32 1.0, %v2644_v49  ;;  %v2641_v51 = vsub.f32 0.0, %v2633_v34 }
 0x719   : > { %v2646_v17 = vadd.f32 1.0, %v2642_v27  ;;  %v2643_v4 = vsel %vm2635_vm14, %v2631_v11, %v2639_v26  ;;  %vm2987_vm14 = vcmp.eq.s32.totalorder %v4782_v20, 0 }
 0x71a   : > { %v2652_v28 = vmul.f32 %v2648_v47, %v2548_v42  ;;  %v2647_v25 = vadd.f32 1.0, %v2643_v4  ;;  %v2645_v57 = vsel %vm2637_vm15, %v2633_v34, %v2641_v51 }
 0x71b   : > { %v2650_v33 = vmul.f32 %v2646_v17, %v2546_v3  ;;  %v2649_v50 = vadd.f32 1.0, %v2645_v57 }
 0x71c   : > { %v2651_v36 = vmul.f32 %v2647_v25, %v2547_v43  ;;  %v2656_v54 = vadd.f32 %v2652_v28, %v5298_v32  ;;  %v2664_v32 = vld [vmem:[%s5947_s12 + $0x10] sm:$0xff] }
 0x71d   : > { %v2654_v61 = vadd.f32 %v2650_v33, %v5293_v31  ;;  %v2653_v0 = vmul.f32 %v2649_v50, %v2549_v60  ;;  %v2711_v33 = vpop.permute.xlu1 %2710 }
 0x71e   : > { %v2655_v45 = vadd.f32 %v2651_v36, %v5286_v19  ;;  %v2660_v7 = vmul.f32 %v5307_v40, %v2656_v54  ;;  %v2663_v19 = vld [vmem:[%s5947_s12 + $0x8] sm:$0xff] }
 0x71f   : > { %v2658_v58 = vmul.f32 %v5307_v40, %v2654_v61  ;;  %v2657_v23 = vadd.f32 %v2653_v0, %v5314_v55  ;;  %v2666_v55 = vld [vmem:[%s5947_s12 + $0x20] sm:$0xff] }
 0x720   : > { %v2659_v56 = vmul.f32 %v5307_v40, %v2655_v45 }
 0x721   : > { %v2661_v31 = vmul.f32 %v5307_v40, %v2657_v23  ;;  %v2665_v40 = vld [vmem:[%s5947_s12 + $0x18] sm:$0xff] }
 0x722   : > { %v4181_v35 = vpack.c.bf16 %v2659_v56, %v2658_v58 }
 0x723   : > { %v4185_v6 = vpack.c.bf16 %v2661_v31, %v2660_v7 }
 0x724   : > { %4182 = vmatprep.subr.bf16.mxu1 %v4181_v35 }
 0x725   : > { %4184 = vmatpush3.bf16.msra.mxu1 %v4181_v35 }
 0x726   : > { %4186 = vmatprep.subr.bf16.mxu1 %v4185_v6 }
 0x729   : > { %4188 = vmatpush3.bf16.msra.mxu1 %v4185_v6 }
 0x72c   : > { %4118 = vmatmul.mubr.msk.f32.vlgmr.msra.gmra.mrb[4].mxu1 %vm1006_vm0, %v2663_v19 }
 0x72d   : > { %4120 = vmatprep.mubr.msk.f32.mxu1 %vm1006_vm0, %v2664_v32 }
 0x730   : > { %4121 = vmatmul.mubr.msk.f32.gmra.mrb[6].mxu1 %vm1006_vm0, %v2665_v40 }
 0x731   : > { %4123 = vmatprep.mubr.msk.f32.mxu1 %vm1006_vm0, %v2666_v55 }
 0x734   : > { %4124 = vmatmul.mubr.msk.f32.gmra.mrb[8].mxu1 %vm1006_vm0, %v2667_v5 }
 0x735   : > { %4126 = vmatprep.mubr.msk.f32.mxu1 %vm1006_vm0, %v2668_v39 }
 0x738   : > { %4127 = vmatmul.mubr.msk.f32.gmra.mrb[10].mxu1 %vm1006_vm0, %v2669_v52  ;;  %vm2868_vm0 = vcmask 1041408  }
 0x739   : > { %4154 = vmatprep.mubr.msk.f32.mxu1 %vm2898_vm1, %v5554_v1  ;;  %vm5662_vm12 = vmpackc.low %vm2868_vm0, %vm4581_vm11 }
 0x7ff   : > { %v4119_v10 = vpop.f32.mrb[4].mxu1 }
 0x800   : > { %v2814_v2 = vadd.f32 %v4119_v10, %v2686_v63  ;;  %v2808_v59 = vpop.f32.mrb[5].mxu1 }
 0x801   : > { %v2809_v38 = vadd.f32 %v2808_v59, %v2681_v53 }
 0x802   : > { %v2848_v48 = vmul.f32 %v5561_v13, %v2814_v2 }
 0x803   : > { %v2847_v18 = vmul.f32 %v5561_v13, %v2809_v38  ;;  %v4122_v41 = vpop.f32.mrb[6].mxu1 }
 0x804   : > { %v5565_v8 = vmul.f32 0.17677669, %v2848_v48  ;;  %v2824_v30 = vadd.f32 %v4122_v41, %v2696_v12  ;;  %v2818_v22 = vpop.f32.mrb[7].mxu1 }
 0x805   : > { %v5567_v21 = vmul.f32 0.17677669, %v2847_v18  ;;  %v2819_v15 = vadd.f32 %v2818_v22, %v2691_v9 }
 0x806   : > { %v2869_v62 = vsel %vm2868_vm0, %v5565_v8, -inf  ;;  %v5572_v44 = vmul.f32 %v5561_v13, %v2824_v30  ;;  %v2996_v3 = vsel %vm2995_vm2, %v5565_v8, -inf }
 0x807   : > { %v2870_v29 = vmax.f32 %v5567_v21, %v2869_v62  ;;  %v5576_v37 = vmul.f32 %v5561_v13, %v2819_v15  ;;  %v4125_v11 = vpop.f32.mrb[8].mxu1 }
 0x808   : > { %v3129_v24 = vand.u32 2147483647, %v5572_v44  ;;  %v2834_v14 = vadd.f32 %v4125_v11, %v2706_v46  ;;  %v2828_v49 = vpop.f32.mrb[9].mxu1  ;;  %v5585_v4 = vmul.f32 0.17677669, %v5572_v44 }
 0x809   : > { %v2871_v26 = vrot.slane %v2870_v29, 4  ;;  %v5580_v27 = vmul.f32 0.17677669, %v5576_v37  ;;  %v3128_v42 = vand.u32 2147483647, %v5576_v37  ;;  %v2829_v17 = vadd.f32 %v2828_v49, %v2701_v16 }
 0x80a   : > { %v3131_v47 = vsub.f32 0.0, %v3129_v24  ;;  %v2852_v61 = vmul.f32 %v5561_v13, %v2834_v14  ;;  %v3299_v23 = vsel %vm3298_vm4, %v5585_v4, -inf }
 0x80b   : > { %v2872_v34 = vmax.f32 %v2870_v29, %v2871_v26  ;;  %v2998_v28 = vsel %vm2997_vm3, %v5580_v27, -inf  ;;  %v3130_v43 = vsub.f32 0.0, %v3128_v42  ;;  %v5588_v25 = vpop.f32.mrb[10].mxu1  ;;  %v2851_v57 = vmul.f32 %v5561_v13, %v2829_v17 }
 0x80c   : > { %v3134_v51 = vmul.f32 1.442695, %v3131_v47  ;;  %v2999_v36 = vmax.f32 %v2996_v3, %v2998_v28  ;;  %v2838_v60 = vpop.f32.mrb[11].mxu1  ;;  %v5599_v31 = vmul.f32 0.17677669, %v2852_v61 }
 0x80d   : > { %v2873_v50 = vrot.slane %v2872_v34, 2  ;;  %v3132_v54 = vmul.f32 1.442695, %v3130_v43  ;;  %v2839_v45 = vadd.f32 %v2838_v60, %v2711_v33  ;;  %v5592_v0 = vmul.f32 0.17677669, %v2851_v57 }
 0x80e   : > { %4413 = vpow2.f32 %v3134_v51  ;;  %v3000_v58 = vrot.slane %v2999_v36, 4  ;;  %v3127_v57 = vmax.f32 %v5572_v44, 0.0 }
 0x80f   : > { %v2874_v56 = vmax.f32 %v2872_v34, %v2873_v50  ;;  %4415 = vpow2.f32 %v3132_v54  ;;  %v5597_v7 = vmul.f32 %v5561_v13, %v2839_v45  ;;  %v3301_v6 = vsel %vm3300_vm5, %v5592_v0, -inf }
 0x810   : > { %v3001_v35 = vmax.f32 %v2999_v36, %v3000_v58  ;;  %v3429_v19 = vsel %vm3428_vm6, %v5592_v0, -inf  ;;  %v3302_v40 = vmax.f32 %v3299_v23, %v3301_v6  ;;  %v3126_v58 = vmax.f32 %v5576_v37, 0.0 }
 0x811   : > { %v2875_v32 = vrot.slane %v2874_v56, 1  ;;  %v3297_v5 = vmul.f32 0.17677669, %v5597_v7  ;;  %v3431_v39 = vmax.f32 %v3429_v19, %v5599_v31 }
 0x812   : > { %v3002_v55 = vrot.slane %v3001_v35, 2  ;;  %v3303_v63 = vrot.slane %v3302_v40, 4 }
 0x813   : > { %v2876_v52 = vmax.f32 %v2874_v56, %v2875_v32  ;;  %v3430_v10 = vsel %vm3154_vm7, %v3297_v5, -inf }
 0x814   : > { %v3003_v9 = vmax.f32 %v3001_v35, %v3002_v55  ;;  %v3304_v59 = vmax.f32 %v3302_v40, %v3303_v63  ;;  %v3432_v38 = vmax.f32 %v3431_v39, %v3430_v10 }
 0x815   : > { %v2877_v53 = vsub.f32 %v5567_v21, %v2876_v52  ;;  %v2878_v2 = vsub.f32 %v5565_v8, %v2876_v52 }
 0x816   : > { %v3004_v12 = vrot.slane %v3003_v9, 1  ;;  %v3305_v41 = vrot.slane %v3304_v59, 2  ;;  %v3433_v15 = vrot.slane %v3432_v38, 4 }
 0x817   : > { %v2879_v48 = vmul.f32 1.442695, %v2877_v53  ;;  %v2881_v18 = vmul.f32 1.442695, %v2878_v2 }
 0x818   : > { %v4414_v30 = vpop.eup %4413  ;;  %v3005_v22 = vmax.f32 %v3003_v9, %v3004_v12  ;;  %v3306_v46 = vmax.f32 %v3304_v59, %v3305_v41  ;;  %v3434_v14 = vmax.f32 %v3432_v38, %v3433_v15 }
 0x819   : > { %v4416_v16 = vpop.eup %4415  ;;  %4417 = vpow2.f32 %v2879_v48  ;;  %v3137_v62 = vadd.f32 1.0, %v4414_v30 }
 0x81a   : > { %4419 = vpow2.f32 %v2881_v18  ;;  %v3006_v29 = vsub.f32 %v5565_v8, %v3005_v22  ;;  %v3007_v21 = vsub.f32 %v5580_v27, %v3005_v22  ;;  %v3136_v11 = vadd.f32 1.0, %v4416_v16 }
 0x81b   : > { %4421 = vlog2.f32 %v3137_v62  ;;  %v3307_v24 = vrot.slane %v3306_v46, 1  ;;  %v3435_v47 = vrot.slane %v3434_v14, 2 }
 0x81c   : > { %v3008_v49 = vmul.f32 1.442695, %v3006_v29  ;;  %v3010_v26 = vmul.f32 1.442695, %v3007_v21  ;;  %4423 = vlog2.f32 %v3136_v11 }
 0x81d   : > { %v3308_v42 = vmax.f32 %v3306_v46, %v3307_v24  ;;  %v3436_v34 = vmax.f32 %v3434_v14, %v3435_v47 }
 0x81e   : > { %4425 = vpow2.f32 %v3008_v49 }
 0x81f   : > { %4427 = vpow2.f32 %v3010_v26  ;;  %v3309_v3 = vsub.f32 %v5585_v4, %v3308_v42  ;;  %v3310_v17 = vsub.f32 %v5592_v0, %v3308_v42  ;;  %v3437_v43 = vrot.slane %v3436_v34, 1 }
 0x821   : > { %v3311_v28 = vmul.f32 1.442695, %v3309_v3  ;;  %v3313_v8 = vmul.f32 1.442695, %v3310_v17  ;;  %v3438_v33 = vmax.f32 %v3436_v34, %v3437_v43 }
 0x823   : > { %v5613_v27 = vpop.eup %4417  ;;  %4429 = vpow2.f32 %v3311_v28  ;;  %v3439_v4 = vsub.f32 %v5592_v0, %v3438_v33  ;;  %v3440_v60 = vsub.f32 %v5599_v31, %v3438_v33  ;;  %v3441_v56 = vsub.f32 %v3297_v5, %v3438_v33 }
 0x824   : > { %v5615_v51 = vpop.eup %4419  ;;  %4431 = vpow2.f32 %v3313_v8 }
 0x825   : > { %v4422_v36 = vpop.eup %4421  ;;  %v2883_v61 = vsel %vm2868_vm0, %v5615_v51, 0.0  ;;  %v3442_v35 = vmul.f32 1.442695, %v3439_v4  ;;  %v3444_v6 = vmul.f32 1.442695, %v3440_v60 }
 0x826   : > { %v4424_v50 = vpop.eup %4423  ;;  %v2884_v54 = vadd.f32 %v5613_v27, %v2883_v61  ;;  %v3141_v45 = vmul.f32 0.6931472, %v4422_v36  ;;  %v3446_v55 = vmul.f32 1.442695, %v3441_v56 }
 0x827   : > { %v3139_v23 = vmul.f32 0.6931472, %v4424_v50  ;;  %4433 = vpow2.f32 %v3442_v35 }
 0x828   : > { %v5624_v19 = vpop.eup %4425  ;;  %v2885_v32 = vrot.slane %v2884_v54, 4  ;;  %v3143_v40 = vadd.f32 %v3141_v45, %v3127_v57  ;;  %4435 = vpow2.f32 %v3444_v6 }
 0x829   : > { %v5626_v44 = vpop.eup %4427  ;;  %v3142_v0 = vadd.f32 %v3139_v23, %v3126_v58  ;;  %v3015_v31 = vrot.slane %v5624_v19, 2  ;;  %4437 = vpow2.f32 %v3446_v55 }
 0x82a   : > { %v2886_v39 = vadd.f32 %v2885_v32, %v2884_v54  ;;  %v5629_v52 = vadd.f32 0.001, %v3143_v40  ;;  %v3016_v37 = vrot.slane %v5626_v44, 2 }
 0x82b   : > { %v3144_v5 = vadd.f32 0.001, %v3142_v0 }
 0x82c   : > { %v2887_v63 = vrot.slane %v2886_v39, 2  ;;  %v3150_v9 = vrot.slane %v5629_v52, 3  ;;  %v3017_v10 = vsel %vm3014_vm8, %v3015_v31, %v3016_v37  ;;  %v3020_v59 = vsel %vm2868_vm0, %v3016_v37, 0.0 }
 0x82d   : > { %v5634_v53 = vpop.eup %4429  ;;  %v3149_v2 = vrot.slane %v3144_v5, 3  ;;  %v3021_v18 = vadd.f32 %v3020_v59, %v3017_v10 }
 0x82e   : > { %v5637_v12 = vpop.eup %4431  ;;  %v2888_v38 = vadd.f32 %v2887_v63, %v2886_v39  ;;  %v3317_v48 = vrot.slane %v5634_v53, 5 }
 0x82f   : > { %v3318_v41 = vrot.slane %v5637_v12, 5  ;;  %v5643_v30 = vsel %vm3148_vm9, %v3149_v2, %v3150_v9  ;;  %v3022_v15 = vrot.slane %v3021_v18, 4 }
 0x830   : > { %v2889_v22 = vrot.slane %v2888_v38, 1 }
 0x831   : > { %v3319_v16 = vsel %vm3169_vm10, %v3317_v48, %v3318_v41  ;;  %v3322_v62 = vsel %vm2868_vm0, %v3318_v41, 0.0  ;;  %v3023_v21 = vadd.f32 %v3022_v15, %v3021_v18  ;;  %v5647_v11 = vpop.eup %4433 }
 0x832   : > { %v3323_v46 = vadd.f32 %v3322_v62, %v3319_v16  ;;  %v2890_v29 = vadd.f32 %v2889_v22, %v2888_v38  ;;  %v5649_v24 = vpop.eup %4435  ;;  %v3451_v49 = vrot.slane %v5647_v11, 7 }
 0x833   : > { %v5652_v26 = vpop.eup %4437  ;;  %v3452_v42 = vrot.slane %v5649_v24, 7  ;;  %v3024_v47 = vrot.slane %v3023_v21, 2 }
 0x834   : > { %v3324_v14 = vrot.slane %v3323_v46, 4  ;;  %4439 = vrcp.f32 %v2890_v29  ;;  %v3454_v3 = vrot.slane %v5652_v26, 7 }
 0x835   : > { %v3453_v34 = vsel %vm3154_vm7, %v3451_v49, %v3452_v42  ;;  %v3025_v28 = vadd.f32 %v3024_v47, %v3023_v21 }
 0x836   : > { %v3325_v17 = vadd.f32 %v3324_v14, %v3323_v46  ;;  %v3455_v8 = vsel %vm3154_vm7, %v3452_v42, %v3454_v3 }
 0x837   : > { %v3458_v33 = vsel %vm2868_vm0, %v3455_v8, 0.0  ;;  %v3026_v36 = vrot.slane %v3025_v28, 1 }
 0x838   : > { %v3326_v43 = vrot.slane %v3325_v17, 2  ;;  %v3459_v61 = vadd.f32 %v3458_v33, %v3453_v34 }
 0x839   : > { %v3027_v4 = vadd.f32 %v3026_v36, %v3025_v28 }
 0x83a   : > { %v3327_v57 = vadd.f32 %v3326_v43, %v3325_v17  ;;  %v3460_v60 = vrot.slane %v3459_v61, 4 }
 0x83b   : > { %4441 = vrcp.f32 %v3027_v4 }
 0x83c   : > { %v3328_v50 = vrot.slane %v3327_v57, 1  ;;  %v3461_v45 = vadd.f32 %v3460_v60, %v3459_v61 }
 0x83e   : > { %v4440_v54 = vpop.eup %4439  ;;  %v3329_v58 = vadd.f32 %v3328_v50, %v3327_v57  ;;  %v3462_v35 = vrot.slane %v3461_v45, 2 }
 0x83f   : > { %v2892_v56 = vmul.f32 %v4440_v54, %v5613_v27  ;;  %v2893_v23 = vmul.f32 %v4440_v54, %v5615_v51  ;;  %v2856_v27 = vld [vmem:[%s5949_s14 + $0x8] sm:$0x7] }
 0x840   : > { %4443 = vrcp.f32 %v3329_v58  ;;  %v3463_v40 = vadd.f32 %v3462_v35, %v3461_v45  ;;  %v3572_v45 = vand.u32 2147483647, %v5597_v7  ;;  %v5711_v35 = vadd.s32 8, %v4782_v20 }
 0x841   : > { %v2894_v6 = vmul.f32 0.99, %v2892_v56  ;;  %v2895_v32 = vmul.f32 0.99, %v2893_v23 }
 0x842   : > { %v3464_v31 = vrot.slane %v3463_v40, 1  ;;  %v3574_v56 = vsub.f32 0.0, %v3572_v45  ;;  %vm2990_vm13 = vcmp.eq.s32.totalorder %v5711_v35, 10 }
 0x843   : > { %v2896_v55 = vadd.f32 0.001, %v2894_v6  ;;  %v2897_v0 = vadd.f32 0.001, %v2895_v32  ;;  %v5714_v32 = vld [vmem:[%s4787_s19] sm:$0xf] }
 0x844   : > { %v3465_v5 = vadd.f32 %v3464_v31, %v3463_v40  ;;  %v3576_v6 = vmul.f32 1.442695, %v3574_v56  ;;  %v5717_v40 = vclamps-f32 %v5714_v32, 5.0  ;;  %s5835_s19 = sand.u32 1, %s4562_s22  }
 0x845   : > { %v4189_v37 = vpack.c.bf16 %v2897_v0, %v2896_v55  ;;  %v4442_v63 = vpop.eup %4441  ;;  %s3886_s29 = sshll.u32 %s5835_s19, 2  ;;  %s3887_s30 = sshll.u32 %s5835_s19, 1 }
 0x846   : > { %4445 = vrcp.f32 %v3465_v5  ;;  %v3029_v51 = vmul.f32 %v4442_v63, %v5624_v19  ;;  %v3030_v10 = vmul.f32 %v4442_v63, %v5626_v44  ;;  %s527_s3 = scalar_lea.vmem [#allocation2], %s3886_s29  ;;  %s534_s18 = scalar_lea.vmem [#allocation4], %s3887_s30 }
 0x847   : > { %4191 = vmatprep.subr.msk.bf16.mxu0 %vm5662_vm12, %v4189_v37  ;;  %s3769_s27 = sshll.u32 %s527_s3, 4  ;;  %s3782_s2 = sshll.u32 %s534_s18, 4  ;;  %s5865_s27 = int_to_ptr.vmem [resolvable:$true] %s3769_s27  ;;  %s5872_s2 = int_to_ptr.vmem [resolvable:$true] %s3782_s2 }
 0x848   : > { %4194 = vmatpush3.bf16.msk.msra.mxu0 %vm5662_vm12, %v4189_v37  ;;  %v3031_v59 = vmul.f32 0.99, %v3029_v51  ;;  %v3032_v38 = vmul.f32 0.99, %v3030_v10  ;;  %v4582_v10 = vmov 0.0   ;;  %s5870_s30 = scalar_lea.hbm %s5951_s16, %s4012_s23  ;;  %s3751_s28 = scalar_lea.sflag [#allocation3], %s5835_s19 }
 0x849   : > { %s4476_s1 = scalar_lea.vmem %s5865_s27, 64 }
 0x84a   : > { %v4444_v2 = vpop.eup %4443  ;;  %v3033_v41 = vadd.f32 0.001, %v3031_v59  ;;  %v3034_v22 = vadd.f32 0.001, %v3032_v38  ;;  %p4477_p11 = scmp.ne.s32.totalorder %s5865_s27, %s4476_s1 }
 0x84b   : > { %4134 = vmatmul.mubr.msk.f32.vlgmr.msra.gmra.mrb[8].mxu0 %vm2898_vm1, %v2856_v27  ;;  %v3331_v48 = vmul.f32 %v4444_v2, %v5634_v53  ;;  %v3332_v18 = vmul.f32 %v4444_v2, %v5637_v12 }
 0x84c   : > { %4140 = vmatprep.mubr.msk.f32.mxu0 %vm2898_vm1, %v5554_v1  ;;  %v3037_v62 = vrot.slane %v3033_v41, 2  ;;  %v3038_v19 = vrot.slane %v3034_v22, 2  ;;  %p4478_p12 = pnand %p4477_p11, %p4708_p5 }
 0x84d   : > { %v3333_v15 = vmul.f32 0.99, %v3331_v48  ;;  %v3334_v16 = vmul.f32 0.99, %v3332_v18 }
 0x84e   : > { %v3039_v29 = vsel %vm3014_vm8, %v3037_v62, %v3038_v19  ;;  %p4479_p13 = pneg %p4478_p12 }
 0x84f   : > { %v3335_v46 = vadd.f32 0.001, %v3333_v15  ;;  %v3336_v44 = vadd.f32 0.001, %v3334_v16  ;;  %v4195_v21 = vpack.c.bf16 %v3038_v19, %v3039_v29 }
 0x850   : > { %v4446_v42 = vpop.eup %4445 }
 0x851   : > { %v3339_v14 = vrot.slane %v3335_v46, 5  ;;  %v3340_v49 = vrot.slane %v3336_v44, 5  ;;  %4197 = vmatprep.subr.msk.bf16.mxu0 %vm5662_vm12, %v4195_v21  ;;  %v3467_v12 = vmul.f32 %v4446_v42, %v5647_v11  ;;  %v3468_v47 = vmul.f32 %v4446_v42, %v5649_v24 }
 0x852   : > { %v3469_v3 = vmul.f32 %v4446_v42, %v5652_v26  ;;  %4200 = vmatpush3.bf16.msk.msra.mxu0 %vm5662_vm12, %v4195_v21  ;;  %v3596_v46 = vsub.s32 3, %v4782_v20 }
 0x853   : > { %v3341_v53 = vsel %vm3169_vm10, %v3339_v14, %v3340_v49  ;;  %v3470_v34 = vmul.f32 0.99, %v3467_v12  ;;  %v3471_v28 = vmul.f32 0.99, %v3468_v47 }
 0x854   : > { %v4201_v17 = vpack.c.bf16 %v3340_v49, %v3341_v53  ;;  %v3472_v8 = vmul.f32 0.99, %v3469_v3  ;;  %v3597_v47 = vrot.slane %v5717_v40, %v3596_v46 }
 0x855   : > { %4141 = vmatmul.mubr.msk.f32.vlgmr.msra.gmra.mrb[10].mxu0 %vm2898_vm1, %v2856_v27  ;;  %v3473_v43 = vadd.f32 0.001, %v3470_v34  ;;  %v3474_v33 = vadd.f32 0.001, %v3471_v28 }
 0x856   : > { %4203 = vmatprep.subr.msk.bf16.mxu0 %vm5662_vm12, %v4201_v17  ;;  %v3475_v36 = vadd.f32 0.001, %v3472_v8  ;;  %4147 = vmatprep.mubr.msk.f32.mxu0 %vm2898_vm1, %v5554_v1  ;;  %v2716_v1 = vpop.permute.xlu0 %2715 }
 0x857   : > { %4206 = vmatpush3.bf16.msk.msra.mxu0 %vm5662_vm12, %v4201_v17  ;;  %v3479_v11 = vrot.slane %v3473_v43, 7  ;;  %v3480_v24 = vrot.slane %v3474_v33, 7  ;;  %v2844_v60 = vadd.f32 %v5588_v25, %v2716_v1  ;;  %v3161_v25 = vsub.s32 2, %v4782_v20 }
 0x858   : > { %v3482_v26 = vrot.slane %v3475_v36, 7 }
 0x859   : > { %v3481_v61 = vsel %vm3154_vm7, %v3479_v11, %v3480_v24  ;;  %v5706_v50 = vmul.f32 %v5561_v13, %v2844_v60  ;;  %v3162_v37 = vrot.slane %v5717_v40, %v3161_v25 }
 0x85a   : > { %4148 = vmatmul.mubr.msk.f32.vlgmr.msra.gmra.mrb[12].mxu0 %vm2898_vm1, %v2856_v27  ;;  %v3483_v57 = vsel %vm3154_vm7, %v3480_v24, %v3482_v26 }
 0x85b   : > { %v4207_v4 = vpack.c.bf16 %v3483_v57, %v3481_v61  ;;  %v3573_v54 = vand.u32 2147483647, %v5706_v50 }
 0x85d   : > { %4209 = vmatprep.subr.msk.bf16.mxu1 %vm5662_vm12, %v4207_v4  ;;  %v3575_v58 = vsub.f32 0.0, %v3573_v54 }
 0x85e   : > { %4212 = vmatpush3.bf16.msk.msra.mxu1 %vm5662_vm12, %v4207_v4 }
 0x85f   : > { %v3578_v23 = vmul.f32 1.442695, %v3575_v58 }
 0x861   : > { %4155 = vmatmul.mubr.msk.f32.vlgmr.msra.gmra.mrb[12].mxu1 %vm2898_vm1, %v2856_v27  ;;  %4447 = vpow2.f32 %v3578_v23 }
 0x862   : > { %4449 = vpow2.f32 %v3576_v6 }
 0x86b   : > { %v4448_v18 = vpop.eup %4447 }
 0x86c   : > { %v4450_v15 = vpop.eup %4449  ;;  %v3581_v19 = vadd.f32 1.0, %v4448_v18 }
 0x86d   : > { %v3580_v44 = vadd.f32 1.0, %v4450_v15 }
 0x86e   : > { %4451 = vlog2.f32 %v3581_v19 }
 0x86f   : > { %4453 = vlog2.f32 %v3580_v44 }
 0x878   : > { %v4452_v58 = vpop.eup %4451 }
 0x879   : > { %v4454_v56 = vpop.eup %4453 }
 0x91e   : > { %v4135_v13 = vpop.f32.mrb[8].mxu0 }
 0x91f   : > { %v2984_v55 = vmul.f32 10.0, %v4135_v13  ;;  %v2974_v0 = vpop.f32.mrb[9].mxu0 }
 0x920   : > { %v2983_v31 = vmul.f32 10.0, %v2974_v0  ;;  %v3570_v0 = vmax.f32 %v5597_v7, 0.0 }
 0x921   : > { %v3979_v39 = vadd.f32 -5.0, %v2984_v55  ;;  %v3571_v55 = vmax.f32 %v5706_v50, 0.0 }
 0x922   : > { %v3978_v5 = vadd.f32 -5.0, %v2983_v31 }
 0x923   : > { %v5725_v63 = vsel %vm2990_vm13, 5.0, %v3979_v39 }
 0x924   : > { %v3158_v27 = vsel %vm2990_vm13, 5.000001, %v5725_v63  ;;  %v5732_v51 = vsel %vm2987_vm14, -5.0, %v3978_v5  ;;  %v3583_v5 = vmul.f32 0.6931472, %v4454_v56 }
 0x925   : > { %vm3164_vm15 = vcmp.ge.f32.partialorder %v3162_v37, %v3158_v27  ;;  %vm3163_vm1 = vcmp.ge.f32.partialorder %v3162_v37, %v5732_v51  ;;  %v3585_v37 = vmul.f32 0.6931472, %v4452_v58  ;;  %v3155_v27 = vsel %vm3154_vm7, 1.0, %v5643_v30 }
 0x926   : > { %v3986_v2 = vsel %vm3164_vm15, 1.0, %v4582_v10  ;;  %v3985_v59 = vsel %vm3163_vm1, 1.0, %v4582_v10 }
 0x927   : > { %v3170_v38 = vsel %vm3169_vm10, %v3986_v2, 0.0  ;;  %v3156_v2 = vsel %vm2868_vm0, %v3150_v9, 1.0 }
 0x928   : > { %v3171_v48 = vadd.f32 %v3985_v59, %v3170_v38  ;;  %v4142_v22 = vpop.f32.mrb[10].mxu0 }
 0x929   : > { %v3109_v16 = vpop.f32.mrb[11].mxu0  ;;  %v3119_v4 = vmul.f32 10.0, %v4142_v22 }
 0x92a   : > { %v3172_v41 = vrot.slane %v3171_v48, 4  ;;  %v3118_v60 = vmul.f32 10.0, %v3109_v16 }
 0x92b   : > { %v3984_v6 = vadd.f32 -5.0, %v3119_v4 }
 0x92c   : > { %v3173_v62 = vadd.f32 %v3172_v41, %v3171_v48  ;;  %v3983_v13 = vadd.f32 -5.0, %v3118_v60 }
 0x92d   : > { %v4149_v21 = vpop.f32.mrb[12].mxu0  ;;  %v3123_v38 = vsel %vm2990_vm13, 5.0, %v3984_v6 }
 0x92e   : > { %v3174_v29 = vrot.slane %v3173_v62, 2  ;;  %v3421_v14 = vmul.f32 10.0, %v4149_v21  ;;  %v3411_v49 = vpop.f32.mrb[13].mxu0  ;;  %v3124_v48 = vsel %vm2987_vm14, -5.0, %v3983_v13 }
 0x92f   : > { %v3420_v53 = vmul.f32 10.0, %v3411_v49 }
 0x930   : > { %v3175_v42 = vadd.f32 %v3174_v29, %v3173_v62  ;;  %v3996_v12 = vadd.f32 -5.0, %v3421_v14 }
 0x931   : > { %v3995_v17 = vadd.f32 -5.0, %v3420_v53 }
 0x932   : > { %v3176_v3 = vrot.slane %v3175_v42, 1  ;;  %v5742_v34 = vsel %vm2990_vm13, 5.0, %v3996_v12 }
 0x933   : > { %v3593_v8 = vsel %vm2990_vm13, 5.000001, %v5742_v34  ;;  %v5749_v43 = vsel %vm2987_vm14, -5.0, %v3995_v17 }
 0x934   : > { %v3177_v28 = vadd.f32 %v3176_v3, %v3175_v42  ;;  %vm3599_vm2 = vcmp.ge.f32.partialorder %v3597_v47, %v3593_v8  ;;  %vm3598_vm3 = vcmp.ge.f32.partialorder %v3597_v47, %v5749_v43  ;;  %v5752_v33 = vpop.f32.mrb[12].mxu1 }
 0x935   : > { %v4003_v11 = vsel %vm3599_vm2, 1.0, %v4582_v10  ;;  %v4002_v24 = vsel %vm3598_vm3, 1.0, %v4582_v10  ;;  %v5756_v26 = vpop.f32.mrb[13].mxu1 }
 0x936   : > { %v3987_v36 = vadd.f32 -1.0, %v3177_v28  ;;  %v3604_v61 = vsel %vm3169_vm10, %v4003_v11, 0.0  ;;  %v3587_v11 = vadd.f32 %v3585_v37, %v3571_v55  ;;  %v3563_v55 = vmul.f32 10.0, %v5752_v33 }
 0x937   : > { %v3605_v1 = vadd.f32 %v4002_v24, %v3604_v61 }
 0x938   : > { %v3179_v57 = vmax.f32 %v3987_v36, 0.0 }
 0x939   : > { %v3606_v45 = vrot.slane %v3605_v1, 4 }
 0x93a   : > { %v3180_v54 = vmin.f32 %v3179_v57, 9.0 }
 0x93b   : > { %v3607_v25 = vadd.f32 %v3606_v45, %v3605_v1  ;;  %v3586_v45 = vadd.f32 %v3583_v5, %v3570_v0  ;;  %v3562_v0 = vmul.f32 10.0, %v5756_v26 }
 0x93c   : > { %v4213_v23 = vtrunc.f32 %v3180_v54 }
 0x93d   : > { %v3608_v39 = vrot.slane %v3607_v25, 2 }
 0x93e   : > { %v4214_v31 = vcvt.f32.s32 %v4213_v23 }
 0x93f   : > { %v3609_v30 = vadd.f32 %v3608_v39, %v3607_v25 }
 0x940   : > { %vm3182_vm4 = vcmp.eq.s32.totalorder %v4782_v20, %v4214_v31  ;;  %v3188_v59 = vadd.s32 1, %v4214_v31  ;;  %vm3183_vm5 = vcmp.eq.s32.totalorder %v5711_v35, %v4214_v31 }
 0x941   : > { %v3988_v7 = vsel %vm3182_vm4, 1.0, %v4582_v10  ;;  %v3989_v50 = vsel %vm3183_vm5, 1.0, %v4582_v10  ;;  %v3610_v57 = vrot.slane %v3609_v30, 1 }
 0x942   : > { %vm3189_vm6 = vcmp.eq.s32.totalorder %v4782_v20, %v3188_v59  ;;  %v3195_v52 = vmul.f32 %v3988_v7, %v5732_v51  ;;  %v3235_v9 = vmul.f32 %v3988_v7, %v3155_v27  ;;  %vm3190_vm8 = vcmp.eq.s32.totalorder %v5711_v35, %v3188_v59 }
 0x943   : > { %v3990_v18 = vsel %vm3189_vm6, 1.0, %v4582_v10  ;;  %v3991_v41 = vsel %vm3190_vm8, 1.0, %v4582_v10  ;;  %v3196_v22 = vmul.f32 %v3989_v50, %v5725_v63  ;;  %v3216_v15 = vmul.f32 %v3989_v50, %v3123_v38 }
 0x944   : > { %v3205_v16 = vmul.f32 %v3990_v18, %v5732_v51  ;;  %v3245_v62 = vmul.f32 %v3990_v18, %v3155_v27  ;;  %v3206_v19 = vmul.f32 %v3991_v41, %v5725_v63  ;;  %v3226_v46 = vmul.f32 %v3991_v41, %v3123_v38 }
 0x945   : > { %v3197_v44 = vsel %vm3169_vm10, %v3196_v22, 0.0  ;;  %v3217_v29 = vsel %vm3169_vm10, %v3216_v15, 0.0  ;;  %v3236_v21 = vmul.f32 %v3989_v50, %v3156_v2  ;;  %v3246_v14 = vmul.f32 %v3991_v41, %v3156_v2 }
 0x946   : > { %v3198_v49 = vadd.f32 %v3197_v44, %v3195_v52  ;;  %v3207_v42 = vsel %vm3169_vm10, %v3206_v19, 0.0  ;;  %v3227_v53 = vsel %vm3169_vm10, %v3226_v46, 0.0  ;;  %v3215_v12 = vmul.f32 %v3988_v7, %v3124_v48 }
 0x947   : > { %v3208_v47 = vadd.f32 %v3207_v42, %v3205_v16  ;;  %v3237_v3 = vsel %vm3169_vm10, %v3236_v21, 0.0  ;;  %v3247_v51 = vsel %vm3169_vm10, %v3246_v14, 0.0  ;;  %v3225_v17 = vmul.f32 %v3990_v18, %v3124_v48 }
 0x948   : > { %v3199_v63 = vrot.slane %v3198_v49, 4  ;;  %v3238_v28 = vadd.f32 %v3237_v3, %v3235_v9  ;;  %v3248_v8 = vadd.f32 %v3247_v51, %v3245_v62  ;;  %v3218_v36 = vadd.f32 %v3217_v29, %v3215_v12 }
 0x949   : > { %v3209_v24 = vrot.slane %v3208_v47, 4  ;;  %v3228_v61 = vadd.f32 %v3227_v53, %v3225_v17  ;;  %v3611_v23 = vadd.f32 %v3610_v57, %v3609_v30  ;;  %v3589_v41 = vadd.f32 0.001, %v3587_v11 }
 0x94a   : > { %v3200_v4 = vadd.f32 %v3199_v63, %v3198_v49  ;;  %v3239_v1 = vrot.slane %v3238_v28, 4  ;;  %v3249_v60 = vrot.slane %v3248_v8, 4  ;;  %v3219_v54 = vrot.slane %v3218_v36, 4 }
 0x94b   : > { %v3210_v58 = vadd.f32 %v3209_v24, %v3208_v47  ;;  %v3229_v56 = vrot.slane %v3228_v61, 4  ;;  %v4004_v2 = vadd.f32 -1.0, %v3611_v23  ;;  %v4001_v46 = vadd.f32 -5.0, %v3563_v55 }
 0x94c   : > { %v3201_v6 = vrot.slane %v3200_v4, 2  ;;  %v3240_v25 = vadd.f32 %v3239_v1, %v3238_v28  ;;  %v3250_v13 = vadd.f32 %v3249_v60, %v3248_v8  ;;  %v3220_v31 = vadd.f32 %v3219_v54, %v3218_v36 }
 0x94d   : > { %v3211_v39 = vrot.slane %v3210_v58, 2  ;;  %v3230_v27 = vadd.f32 %v3229_v56, %v3228_v61  ;;  %v3613_v52 = vmax.f32 %v4004_v2, 0.0  ;;  %v3588_v49 = vadd.f32 0.001, %v3586_v45 }
 0x94e   : > { %v3202_v37 = vadd.f32 %v3201_v6, %v3200_v4  ;;  %v3241_v59 = vrot.slane %v3240_v25, 2  ;;  %v3251_v38 = vrot.slane %v3250_v13, 2  ;;  %v3221_v7 = vrot.slane %v3220_v31, 2 }
 0x94f   : > { %v3212_v50 = vadd.f32 %v3211_v39, %v3210_v58  ;;  %v3231_v48 = vrot.slane %v3230_v27, 2  ;;  %v3614_v16 = vmin.f32 %v3613_v52, 9.0  ;;  %v4000_v53 = vadd.f32 -5.0, %v3562_v0 }
 0x950   : > { %v3203_v5 = vrot.slane %v3202_v37, 1  ;;  %v3242_v30 = vadd.f32 %v3241_v59, %v3240_v25  ;;  %v3252_v9 = vadd.f32 %v3251_v38, %v3250_v13  ;;  %v3222_v18 = vadd.f32 %v3221_v7, %v3220_v31 }
 0x951   : > { %v3213_v22 = vrot.slane %v3212_v50, 1  ;;  %v3232_v15 = vadd.f32 %v3231_v48, %v3230_v27  ;;  %v4215_v14 = vtrunc.f32 %v3614_v16  ;;  %v3591_v17 = vsel %vm2868_vm0, %v3589_v41, 1.0 }
 0x952   : > { %v3243_v62 = vrot.slane %v3242_v30, 1  ;;  %v3253_v19 = vrot.slane %v3252_v9, 1  ;;  %v3223_v33 = vrot.slane %v3222_v18, 1  ;;  %v3204_v44 = vadd.f32 %v3203_v5, %v3202_v37 }
 0x953   : > { %v3214_v29 = vadd.f32 %v3213_v22, %v3212_v50  ;;  %v3233_v21 = vrot.slane %v3232_v15, 1  ;;  %v4216_v51 = vcvt.f32.s32 %v4215_v14  ;;  %v3567_v28 = vsel %vm2990_vm13, 5.0, %v4001_v46 }
 0x954   : > { %v5790_v42 = vadd.f32 %v3243_v62, %v3242_v30  ;;  %v3254_v26 = vadd.f32 %v3253_v19, %v3252_v9  ;;  %v5792_v47 = vadd.f32 %v3223_v33, %v3222_v18  ;;  %v3590_v11 = vsel %vm3154_vm7, 1.0, %v3588_v49 }
 0x955   : > { %v3255_v12 = vsub.f32 %v3214_v29, %v3204_v44  ;;  %v3234_v3 = vadd.f32 %v3233_v21, %v3232_v15  ;;  %vm3616_vm9 = vcmp.eq.s32.totalorder %v4782_v20, %v4216_v51  ;;  %v3622_v36 = vadd.s32 1, %v4216_v51 }
 0x956   : > { %v5796_v63 = vadd.f32 %v3254_v26, %v5790_v42  ;;  %v4005_v24 = vsel %vm3616_vm9, 1.0, %v4582_v10  ;;  %vm3617_vm11 = vcmp.eq.s32.totalorder %v5711_v35, %v4216_v51  ;;  %v3568_v61 = vsel %vm2987_vm14, -5.0, %v4000_v53 }
 0x957   : > { %4455 = vrcp.f32 %v3255_v12  ;;  %v5801_v8 = vsub.f32 %v3234_v3, %v5792_v47  ;;  %vm3623_vm12 = vcmp.eq.s32.totalorder %v4782_v20, %v3622_v36  ;;  %v3629_v57 = vmul.f32 %v4005_v24, %v5749_v43 }
 0x958   : > { %v3669_v4 = vmul.f32 %v4005_v24, %v3590_v11  ;;  %v4006_v1 = vsel %vm3617_vm11, 1.0, %v4582_v10  ;;  %v4007_v60 = vsel %vm3623_vm12, 1.0, %v4582_v10  ;;  %vm3624_vm13 = vcmp.eq.s32.totalorder %v5711_v35, %v3622_v36 }
 0x959   : > { %v3630_v54 = vmul.f32 %v4006_v1, %v5742_v34  ;;  %v3650_v45 = vmul.f32 %v4006_v1, %v3567_v28  ;;  %v3639_v58 = vmul.f32 %v4007_v60, %v5749_v43  ;;  %v3679_v56 = vmul.f32 %v4007_v60, %v3590_v11 }
 0x95a   : > { %v4008_v23 = vsel %vm3624_vm13, 1.0, %v4582_v10  ;;  %v3670_v6 = vmul.f32 %v4006_v1, %v3591_v17  ;;  %v3649_v2 = vmul.f32 %v4005_v24, %v3568_v61  ;;  %v3659_v59 = vmul.f32 %v4007_v60, %v3568_v61 }
 0x95b   : > { %v3631_v20 = vsel %vm3169_vm10, %v3630_v54, 0.0  ;;  %v3640_v25 = vmul.f32 %v4008_v23, %v5742_v34  ;;  %v3651_v13 = vsel %vm3169_vm10, %v3650_v45, 0.0  ;;  %v3660_v31 = vmul.f32 %v4008_v23, %v3567_v28 }
 0x95c   : > { %v3632_v39 = vadd.f32 %v3631_v20, %v3629_v57  ;;  %v3671_v27 = vsel %vm3169_vm10, %v3670_v6, 0.0  ;;  %v3680_v35 = vmul.f32 %v4008_v23, %v3591_v17  ;;  %v3652_v50 = vadd.f32 %v3651_v13, %v3649_v2 }
 0x95d   : > { %v3641_v55 = vsel %vm3169_vm10, %v3640_v25, 0.0  ;;  %v3661_v43 = vsel %vm3169_vm10, %v3660_v31, 0.0  ;;  %v3672_v37 = vadd.f32 %v3671_v27, %v3669_v4  ;;  %v3260_v34 = vsub.f32 %v5717_v40, %v3204_v44 }
 0x95e   : > { %v3633_v10 = vrot.slane %v3632_v39, 4  ;;  %v3642_v38 = vadd.f32 %v3641_v55, %v3639_v58  ;;  %v3681_v7 = vsel %vm3169_vm10, %v3680_v35, 0.0  ;;  %v3662_v0 = vadd.f32 %v3661_v43, %v3659_v59 }
 0x95f   : > { %v3673_v48 = vrot.slane %v3672_v37, 4  ;;  %v3682_v52 = vadd.f32 %v3681_v7, %v3679_v56  ;;  %v3653_v18 = vrot.slane %v3652_v50, 4  ;;  %vm2863_vm10 = vcmp.ge.f32.partialorder %v5714_v32, -5.0 }
 0x960   : > { %v3634_v30 = vadd.f32 %v3633_v10, %v3632_v39  ;;  %v3643_v9 = vrot.slane %v3642_v38, 4  ;;  %v3663_v46 = vrot.slane %v3662_v0, 4  ;;  %vm2864_vm14 = vcmp.le.f32.partialorder %v5714_v32, 5.0 }
 0x961   : > { %v4456_v5 = vpop.eup %4455  ;;  %v3674_v15 = vadd.f32 %v3673_v48, %v3672_v37  ;;  %v3683_v16 = vrot.slane %v3682_v52, 4  ;;  %v3654_v33 = vadd.f32 %v3653_v18, %v3652_v50  ;;  %vm5837_vm15 = vmand %vm2863_vm10, %vm2864_vm14 }
 0x962   : > { %v3261_v41 = vmul.f32 %v4456_v5, %v3260_v34  ;;  %v3259_v22 = vmul.f32 %v4456_v5, %v5801_v8  ;;  %v3635_v62 = vrot.slane %v3634_v30, 2  ;;  %v3644_v19 = vadd.f32 %v3643_v9, %v3642_v38 }
 0x963   : > { %v3675_v12 = vrot.slane %v3674_v15, 2  ;;  %v3684_v3 = vadd.f32 %v3683_v16, %v3682_v52  ;;  %v3664_v60 = vadd.f32 %v3663_v46, %v3662_v0 }
 0x964   : > { %v3262_v29 = vsub.f32 1.0, %v3261_v41  ;;  %v3278_v21 = vmul.f32 %v3261_v41, %v3254_v26  ;;  %v3264_v14 = vmul.f32 %v3261_v41, %v3259_v22  ;;  %v3270_v44 = vmul.f32 2.0, %v3259_v22 }
 0x965   : > { %v3636_v49 = vadd.f32 %v3635_v62, %v3634_v30  ;;  %v3645_v53 = vrot.slane %v3644_v19, 2  ;;  %v3676_v57 = vadd.f32 %v3675_v12, %v3674_v15  ;;  %v3685_v1 = vrot.slane %v3684_v3, 2 }
 0x966   : > { %v3279_v51 = vmul.f32 %v3278_v21, %v3261_v41  ;;  %v3282_v17 = vmul.f32 %v3262_v29, %v5790_v42  ;;  %v3263_v28 = vmul.f32 %v3262_v29, %v3261_v41  ;;  %v3265_v36 = vmul.f32 %v3264_v14, %v3261_v41 }
 0x967   : > { %v3271_v11 = vsub.f32 %v5796_v63, %v3270_v44  ;;  %v3637_v24 = vrot.slane %v3636_v49, 1  ;;  %v3646_v61 = vadd.f32 %v3645_v53, %v3644_v19  ;;  %v3655_v26 = vrot.slane %v3654_v33, 2 }
 0x968   : > { %v3266_v4 = vmul.f32 %v3263_v28, %v5790_v42  ;;  %v3677_v58 = vrot.slane %v3676_v57, 1  ;;  %v3686_v23 = vadd.f32 %v3685_v1, %v3684_v3  ;;  %v3665_v20 = vrot.slane %v3664_v60, 2 }
 0x969   : > { %v3272_v54 = vmul.f32 %v3271_v11, %v3263_v28  ;;  %v3647_v45 = vrot.slane %v3646_v61, 1  ;;  %v3656_v6 = vadd.f32 %v3655_v26, %v3654_v33  ;;  %v3638_v13 = vadd.f32 %v3637_v24, %v3636_v49 }
 0x96a   : > { %v3267_v56 = vadd.f32 %v3266_v4, %v3265_v36  ;;  %v3687_v39 = vrot.slane %v3686_v23, 1  ;;  %v3666_v35 = vadd.f32 %v3665_v20, %v3664_v60  ;;  %v3280_v2 = vmul.f32 %v3270_v44, %v3263_v28 }
 0x96b   : > { %v3273_v25 = vadd.f32 %v3272_v54, %v3259_v22  ;;  %v3648_v31 = vadd.f32 %v3647_v45, %v3646_v61  ;;  %v3657_v27 = vrot.slane %v3656_v6, 1  ;;  %v3678_v55 = vadd.f32 %v3677_v58, %v3676_v57 }
 0x96c   : > { %v3268_v63 = vmul.f32 %v3267_v56, %v5801_v8  ;;  %v3688_v43 = vadd.f32 %v3687_v39, %v3686_v23  ;;  %v3667_v37 = vrot.slane %v3666_v35, 1  ;;  %v3283_v59 = vmul.f32 %v3282_v17, %v3262_v29 }
 0x96d   : > { %4457 = vrcp.f32 %v3273_v25  ;;  %v3689_v42 = vsub.f32 %v3648_v31, %v3638_v13  ;;  %v3281_v10 = vadd.f32 %v3280_v2, %v3279_v51  ;;  %v3658_v7 = vadd.f32 %v3657_v27, %v3656_v6 }
 0x96e   : > { %v3703_v38 = vadd.f32 %v3688_v43, %v3678_v55  ;;  %v3668_v50 = vadd.f32 %v3667_v37, %v3666_v35  ;;  %v3277_v34 = vmul.f32 %v3259_v22, %v3259_v22  ;;  %v3694_v30 = vsub.f32 %v5717_v40, %v3638_v13 }
 0x96f   : > { %4459 = vrcp.f32 %v3689_v42  ;;  %v3284_v48 = vadd.f32 %v3283_v59, %v3281_v10  ;;  %v4475_v10 = vld [vmem:[%s4795_s20] ss:$0 sm:$0xff]  ;;  %s4583_s20 = smov [#allocation2]  }
 0x970   : > { %4461 = vlog2.f32 %v3273_v25  ;;  %v3690_v52 = vsub.f32 %v3668_v50, %v3658_v7  ;;  %s4480_s26 = sshll.u32 %s4583_s20, 4  ;;  %s4481_s26 = int_to_ptr.vmem [resolvable:$false] %s4480_s26 }
 0x971   : > { %v3285_v8 = vmul.f32 %v3284_v48, %v3277_v34  ;;  %s4482_s5 = scalar_lea.vmem %s4481_s26, 128  ;;  %p4483_p0 = scmp.lt.s32.totalorder %s5865_s27, %s4481_s26 }
 0x972   : > { %p4484_p1 = scmp.lt.s32.totalorder %s4482_s5, %s4476_s1 }
 0x973   : > { %4463 = vlog2.f32 %v3285_v8 }
 0x974   : > { %p4485_p2 = por %p4484_p1, %p4483_p0 }
 0x976   : > { %p4486_p3 = pnand %p4485_p2, %p4479_p13 }
 0x977   : > { %v4458_v0 = vpop.eup %4457 }
 0x978   : > { %v3275_v5 = vmul.f32 %v4458_v0, %v3268_v63 }
 0x979   : > { %v4460_v9 = vpop.eup %4459 }
 0x97a   : > { %v4462_v18 = vpop.eup %4461  ;;  %v3276_v41 = vadd.f32 %v3275_v5, %v5792_v47  ;;  %v3695_v15 = vmul.f32 %v4460_v9, %v3694_v30  ;;  %v3693_v16 = vmul.f32 %v4460_v9, %v3690_v52 }
 0x97b   : > { %v3289_v62 = vmul.f32 0.6931472, %v4462_v18 }
 0x97c   : > { %v3696_v19 = vsub.f32 1.0, %v3695_v15  ;;  %v3712_v33 = vmul.f32 %v3695_v15, %v3688_v43  ;;  %v3698_v46 = vmul.f32 %v3695_v15, %v3693_v16  ;;  %v3704_v29 = vmul.f32 2.0, %v3693_v16 }
 0x97d   : > { %v4464_v49 = vpop.eup %4463  ;;  %v3290_v12 = vmul.f32 2.0, %v3289_v62  ;;  %v3711_v57 = vmul.f32 %v3693_v16, %v3693_v16  ;;  %v3292_v6 = vsel %vm5837_vm15, %v3276_v41, %v5714_v32 }
 0x97e   : > { %v3713_v22 = vmul.f32 %v3712_v33, %v3695_v15  ;;  %v3716_v21 = vmul.f32 %v3696_v19, %v3678_v55  ;;  %v3697_v14 = vmul.f32 %v3696_v19, %v3695_v15  ;;  %v3699_v44 = vmul.f32 %v3698_v46, %v3695_v15 }
 0x97f   : > { %v3705_v53 = vsub.f32 %v3703_v38, %v3704_v29  ;;  %v3287_v40 = vmul.f32 0.6931472, %v4464_v49  ;;  %v3729_v31 = vrot.slane %v3292_v6, 2 }
 0x980   : > { %v3700_v3 = vmul.f32 %v3697_v14, %v3678_v55  ;;  %v3714_v51 = vmul.f32 %v3704_v29, %v3697_v14  ;;  %v3717_v17 = vmul.f32 %v3716_v21, %v3696_v19 }
 0x981   : > { %v3706_v47 = vmul.f32 %v3705_v53, %v3697_v14  ;;  %v3291_v36 = vsub.f32 %v3287_v40, %v3290_v12 }
 0x982   : > { %v3701_v28 = vadd.f32 %v3700_v3, %v3699_v44  ;;  %v3715_v11 = vadd.f32 %v3714_v51, %v3713_v22 }
 0x983   : > { %v3707_v24 = vadd.f32 %v3706_v47, %v3693_v16  ;;  %v3293_v39 = vsel %vm5837_vm15, %v3291_v36, 0.0 }
 0x984   : > { %v3702_v61 = vmul.f32 %v3701_v28, %v3690_v52  ;;  %v3718_v4 = vadd.f32 %v3717_v17, %v3715_v11  ;;  %v3736_v55 = vrot.slane %v3293_v39, 2 }
 0x985   : > { %4465 = vrcp.f32 %v3707_v24 }
 0x986   : > { %v3719_v1 = vmul.f32 %v3718_v4, %v3711_v57  ;;  %4467 = vlog2.f32 %v3707_v24 }
 0x988   : > { %4469 = vlog2.f32 %v3719_v1 }
 0x98f   : > { %v4466_v26 = vpop.eup %4465 }
 0x990   : > { %v4468_v54 = vpop.eup %4467  ;;  %v3709_v45 = vmul.f32 %v4466_v26, %v3702_v61 }
 0x991   : > { %v3723_v58 = vmul.f32 0.6931472, %v4468_v54 }
 0x992   : > { %v4470_v56 = vpop.eup %4469  ;;  %v3710_v23 = vadd.f32 %v3709_v45, %v3658_v7 }
 0x993   : > { %v3721_v20 = vmul.f32 0.6931472, %v4470_v56  ;;  %v3724_v25 = vmul.f32 2.0, %v3723_v58 }
 0x994   : > { %v3726_v13 = vsel %vm5837_vm15, %v3710_v23, %v5714_v32 }
 0x995   : > { %v3732_v63 = vrot.slane %v3726_v13, 2  ;;  %v3725_v27 = vsub.f32 %v3721_v20, %v3724_v25 }
 0x997   : > { %v3734_v35 = vsel %vm3154_vm7, %v3729_v31, %v3732_v63  ;;  %v3727_v42 = vsel %vm5837_vm15, %v3725_v27, 0.0 }
 0x998   : > { %v3743_v2 = vrot.slane %v3734_v35, 6  ;;  %v3739_v43 = vrot.slane %v3727_v42, 2 }
 0x99a   : > { %v3745_v37 = vsel %vm2868_vm0, %v5714_v32, %v3743_v2  ;;  %v3741_v59 = vsel %vm3154_vm7, %v3736_v55, %v3739_v43 }
 0x99b   : > { %v3746_v38 = vmul.f32 %v4475_v10, %v3745_v37  ;;  %v3748_v7 = vmul.f32 %v4475_v10, %v3741_v59 }
 0x99d   : > { %3747 = vst [vmem:[%s527_s3] sm:$0xf] %v3746_v38  ;;  %3749 = vst [vmem:[%s534_s18] sm:$0x3] %v3748_v7 }
 0x99e   : > { %4489 = shalt.err (!%p4486_p3)
}
 0x99f   : > { %s4490_s3 = scalar_lea.hbm %s5861_s4, 64  ;;  %s4494_s25 = scalar_lea.hbm %s5950_s15, 128 }
 0x9a0   : > { %p4491_p4 = scmp.ne.s32.totalorder %s5861_s4, %s4490_s3  ;;  %p4495_p9 = scmp.lt.u32.totalorder %s5861_s4, %s5950_s15 }
 0x9a1   : > { %p4496_p10 = scmp.lt.u32.totalorder %s4494_s25, %s4490_s3  ;;  %p4498_p12 = scmp.lt.u32.totalorder %s4490_s3, %s5861_s4 }
 0x9a2   : > { %p4492_p7 = pnand %p4491_p4, %p4708_p5 }
 0x9a3   : > { %p4497_p11 = por %p4496_p10, %p4495_p9 }
 0x9a4   : > { %p4493_p8 = pneg %p4492_p7 }
 0x9a5   : > { %p4499_p13 = por %p4498_p12, %p4497_p11 }
 0x9a7   : > { %p4500_p0 = pnand %p4499_p13, %p4493_p8 }
 0x9a9   : > { %4503 = shalt.err (!%p4500_p0)
}
 0x9aa   : > { %4217 = dma.vmem_to_hbm [thread:$0]  (%p4708_p5), %s5865_s27, 64, %s5861_s4, %s3751_s28  }
 0x9ab   : > { %s3756_s5 = scalar_lea.sflag [#allocation5], %s5835_s19  ;;  %s4504_s1 = scalar_lea.vmem %s5872_s2, 32 }
 0x9ac   : > { %p4505_p1 = scmp.ne.s32.totalorder %s5872_s2, %s4504_s1  ;;  %s4584_s26 = smov [#allocation4]  }
 0x9ad   : > { %s4508_s3 = sshll.u32 %s4584_s26, 4  ;;  %s4509_s3 = int_to_ptr.vmem [resolvable:$false] %s4508_s3 }
 0x9ae   : > { %p4506_p2 = pnand %p4505_p1, %p4708_p5  ;;  %s4510_s23 = scalar_lea.vmem %s4509_s3, 64 }
 0x9af   : > { %p4511_p4 = scmp.lt.s32.totalorder %s5872_s2, %s4509_s3  ;;  %p4512_p7 = scmp.lt.s32.totalorder %s4510_s23, %s4504_s1 }
 0x9b0   : > { %p4507_p3 = pneg %p4506_p2 }
 0x9b1   : > { %p4513_p8 = por %p4512_p7, %p4511_p4 }
 0x9b3   : > { %p4514_p9 = pnand %p4513_p8, %p4507_p3 }
 0x9b5   : > { %4517 = shalt.err (!%p4514_p9)
}
 0x9b6   : > { %s4518_s4 = scalar_lea.hbm %s5870_s30, 32  ;;  %s4522_s28 = scalar_lea.hbm %s5951_s16, 64 }
 0x9b7   : > { %p4519_p10 = scmp.ne.s32.totalorder %s5870_s30, %s4518_s4  ;;  %p4523_p13 = scmp.lt.u32.totalorder %s5870_s30, %s5951_s16 }
 0x9b8   : > { %p4524_p0 = scmp.lt.u32.totalorder %s4522_s28, %s4518_s4  ;;  %p4526_p2 = scmp.lt.u32.totalorder %s4518_s4, %s5870_s30 }
 0x9b9   : > { %p4520_p11 = pnand %p4519_p10, %p4708_p5 }
 0x9ba   : > { %p4525_p1 = por %p4524_p0, %p4523_p13 }
 0x9bb   : > { %p4521_p12 = pneg %p4520_p11 }
 0x9bc   : > { %p4527_p3 = por %p4526_p2, %p4525_p1 }
 0x9be   : > { %p4528_p4 = pnand %p4527_p3, %p4521_p12 }
 0x9c0   : > { %4531 = shalt.err (!%p4528_p4)
}
 0x9c1   : > { %4218 = dma.vmem_to_hbm [thread:$0]  (%p4708_p5), %s5872_s2, 32, %s5870_s30, %s3756_s5  }
 0x9c2 PF: > { %p4228_p7 = scmp.ge.s32.totalorder %s4570_s24, 2  ;;  %s3794_s29 = sand.u32 1, %s4558_s21  }
 0x9c3   : > { %s3795_s20 = scalar_lea.sflag [#allocation3], %s3794_s29 }
 0x9c4   : > { %p4222_p8 = pnand %p4228_p7, %p4712_p6 }
 0x9c6   : > { %4549 = dma.done.wait (!%p4222_p8), %s3795_s20, 64  }
 0x9c7   : > { %4551 = vsyncadd (!%p4222_p8), %s3795_s20, 4294967232  ;;  %s3804_s1 = scalar_lea.sflag [#allocation5], %s3794_s29 }
 0x9c8   : > { %4553 = dma.done.wait (!%p4222_p8), %s3804_s1, 32  }
 0x9c9   : > { %4555 = vsyncadd (!%p4222_p8), %s3804_s1, 4294967264  ;;  %s5976_s24 = sld [smem:[#allocation9_spill]]  ;;  %s5977_s0 = sld [smem:[#allocation8_spill]] }
 0x9ca   : > { %s5978_s23 = sld [smem:[#allocation10_spill]]  ;;  %s5979_s21 = smov %s4562_s22 }
 0x9cf   : > { %p30_p5 = scmp.ge.s32.totalorder %s5976_s24, 4   ;;  %s5980_s22 = smov %s5977_s0 }
 0x9d1   :  { %32 = sbr.rel (!%p30_p5) target bundleno = 12 (0xc), region = 151 }
 0x9d8   :  { %3809 = vsyncpa [#allocation3], 1 }
 0x9d9   :  { %3811 = vsyncpa [#allocation3 + $0x1], 1 }
 0x9da   :  { %3812 = vsyncpa [#allocation5], 1 }
 0x9db   :  { %3814 = vsyncpa [#allocation5 + $0x1], 1 }

</bundles_post_ra>
